<compile_context>
chip_gen: v6e
topology: v6e:2x2x1
jax: 0.10.0
libtpu: 0.0.40
codegen_flags: <defaults>
</compile_context>

<pallas_src>
import functools

import jax
import jax.numpy as jnp
from jax.experimental import pallas as pl
from jax.experimental.pallas import tpu as pltpu


def _round_up(x, m):
    return (x + m - 1) // m * m


def _vmem_limit_bytes():
    # Generation-aware scoped-VMEM limit: half the physical VMEM
    # (-> 64 MiB on v5e/v6e, 32 MiB on v7x), capped at 64 MiB.
    try:
        cap = pltpu.get_tpu_info().vmem_capacity_bytes
        return int(min(cap // 2, 64 * 1024 * 1024))
    except Exception:
        return 32 * 1024 * 1024


def _matmul_m_target():
    # v5e MXU is 4x128x128 (M=128 already saturates); v6e/v7x are 256-wide.
    try:
        kind = jax.devices()[0].device_kind.lower()
        if "v5e" in kind or "v5 lite" in kind or "v5litepod" in kind:
            return 128
    except Exception:
        pass
    return 256


def _conv3x3_bn_relu_kernel(x_ref, w_ref, bias_ref, o_ref, *, stride, r, wc):
    # stride == 1:
    #   x_ref: (Hp, Wp, Cin)            whole padded image for one batch elem
    # stride == 2:
    #   x_ref: (4, Hh, Wh, Cin)         space-to-depth planes, plane
    #                                   p = 2*(row parity) + (col parity)
    # w_ref:    (9, Cin, Cp)            per-tap weights, BN scale folded in,
    #                                   Cout zero-padded to Cp (mult of 128)
    # bias_ref: (1, Cp)                 folded BN/conv bias
    # o_ref:    (R*Wc, Cp)              one flat block of R output rows (bf16)
    cin = x_ref.shape[-1]
    rb = pl.program_id(1)
    row0 = pl.multiple_of(rb * r, r)          # first output row of this block

    acc = None
    for kh in range(3):
        for kw in range(3):
            if stride == 1:
                piece = x_ref[pl.ds(row0 + kh, r), pl.ds(kw, wc), :]
            else:  # stride == 2, de-interleaved input: all loads unit-stride
                plane = 2 * (kh & 1) + (kw & 1)
                piece = x_ref[plane,
                              pl.ds(row0 + (kh >> 1), r),
                              pl.ds(kw >> 1, wc), :]
            prod = jnp.dot(piece.reshape(r * wc, cin), w_ref[kh * 3 + kw],
                           preferred_element_type=jnp.float32)
            acc = prod if acc is None else acc + prod

    # Epilogue once per block: folded bias + ReLU, single lane-dense store.
    y = jnp.maximum(acc + bias_ref[...], 0.0)
    o_ref[...] = y.astype(o_ref.dtype)


def conv3x3_bn_relu(x_nchw, conv_w, conv_b, gamma, beta, running_mean,
                    running_var, *, stride=1, padding=0, eps=1e-5,
                    compute_dtype=jnp.bfloat16, out_dtype=jnp.bfloat16):
    assert stride in (1, 2)
    n, cin, h, w = x_nchw.shape
    cout = conv_w.shape[0]
    hout = (h + 2 * padding - 3) // stride + 1
    wout = (w + 2 * padding - 3) // stride + 1

    # --- tiling parameters -------------------------------------------------
    cp = _round_up(cout, 128)                 # lane-dense output channels
    wc = _round_up(wout, 8)                   # computed width (sublane aligned)
    m_target = _matmul_m_target()
    r = max(1, min(hout, pl.cdiv(m_target, wc)))   # rows/block: M = r*wc
    hc = _round_up(hout, r)                   # computed height (mult of r)
    n_rb = hc // r
    # TODO(synk): for tiny feature maps (8x8 / 17x17 Inception-B/C) fold batch
    # into the row-block axis so M stays at the target and n_rb > 1.

    # --- input: NCHW -> NHWC, zero-pad halo + alignment overcompute --------
    x = jnp.transpose(x_nchw, (0, 2, 3, 1)).astype(compute_dtype)        # NHWC

    if stride == 1:
        hin_req = hc + 2
        win_req = wc + 2
        pad_bot = max(0, hin_req - padding - h)
        pad_right = max(0, win_req - padding - w)
        x = jnp.pad(x, ((0, 0), (padding, pad_bot), (padding, pad_right), (0, 0)))
        hp, wp = x.shape[1], x.shape[2]
        x_spec = pl.BlockSpec((None, hp, wp, cin), lambda b, rb: (b, 0, 0, 0))
    else:
        # stride 2: pad to even extents covering 2*hc+2 / 2*wc+2, then
        # space-to-depth: planes[b, 2*ph+pw, i, j, c] = x[b, 2i+ph, 2j+pw, c]
        hin_tgt = max(2 * (hc + 1), _round_up(padding + h, 2))
        win_tgt = max(2 * (wc + 1), _round_up(padding + w, 2))
        pad_bot = hin_tgt - padding - h
        pad_right = win_tgt - padding - w
        x = jnp.pad(x, ((0, 0), (padding, pad_bot), (padding, pad_right), (0, 0)))
        hh, wh = x.shape[1] // 2, x.shape[2] // 2
        x = x.reshape(n, hh, 2, wh, 2, cin).transpose(0, 2, 4, 1, 3, 5)
        x = x.reshape(n, 4, hh, wh, cin)
        x_spec = pl.BlockSpec((None, 4, hh, wh, cin),
                              lambda b, rb: (b, 0, 0, 0, 0))

    # --- fold conv bias + BatchNorm (running stats) into weights / bias ----
    inv_std = jax.lax.rsqrt(running_var.astype(jnp.float32) + eps)
    scale = gamma.astype(jnp.float32) * inv_std                          # (Cout,)
    bias = beta.astype(jnp.float32) + (
        conv_b.astype(jnp.float32) - running_mean.astype(jnp.float32)) * scale

    # weights: OIHW -> (kh, kw, Cin, Cout); fold scale in f32, then bf16 cast.
    w_hwio = jnp.transpose(conv_w, (2, 3, 1, 0)).astype(jnp.float32)
    w_hwio = w_hwio * scale[None, None, None, :]
    w_k = w_hwio.reshape(9, cin, cout).astype(compute_dtype)
    w_k = jnp.pad(w_k, ((0, 0), (0, 0), (0, cp - cout)))
    bias2d = jnp.pad(bias, (0, cp - cout)).reshape(1, cp)

    kernel = functools.partial(_conv3x3_bn_relu_kernel, stride=stride, r=r, wc=wc)

    out = pl.pallas_call(
        kernel,
        out_shape=jax.ShapeDtypeStruct((n, hc * wc, cp), out_dtype),
        grid=(n, n_rb),
        in_specs=[
            # whole (de-interleaved) padded image per batch element; stays
            # VMEM-resident across the row-block axis.
            x_spec,
            pl.BlockSpec((9, cin, cp), lambda b, rb: (0, 0, 0)),
            pl.BlockSpec((1, cp), lambda b, rb: (0, 0)),
        ],
        out_specs=pl.BlockSpec((None, r * wc, cp), lambda b, rb: (b, rb, 0)),
        compiler_params=pltpu.CompilerParams(
            dimension_semantics=("parallel", "parallel"),
            vmem_limit_bytes=_vmem_limit_bytes()),
    )(x, w_k, bias2d)

    out = out.reshape(n, hc, wc, cp)[:, :hout, :wout, :cout]   # drop overcompute
    return jnp.transpose(out, (0, 3, 1, 2))                    # NCHW (bf16)


if __name__ == "__main__":
    key = jax.random.PRNGKey(0)
    k_x, k_w, k_b, k_g, k_be, k_m, k_v = jax.random.split(key, 7)

    N, Cin, H, W = 2, 4, 16, 16
    Cout = 8

    x = jax.random.normal(k_x, (N, Cin, H, W), jnp.float32)
    conv_w = 0.1 * jax.random.normal(k_w, (Cout, Cin, 3, 3), jnp.float32)
    conv_b = 0.1 * jax.random.normal(k_b, (Cout,), jnp.float32)
    gamma = 1.0 + 0.1 * jax.random.normal(k_g, (Cout,), jnp.float32)
    beta = 0.1 * jax.random.normal(k_be, (Cout,), jnp.float32)
    running_mean = 0.1 * jax.random.normal(k_m, (Cout,), jnp.float32)
    running_var = jnp.abs(jax.random.normal(k_v, (Cout,), jnp.float32)) + 0.5

    def reference(x_nchw, stride, padding):
        xb = jnp.transpose(x_nchw, (0, 2, 3, 1)).astype(jnp.bfloat16)
        wb = jnp.transpose(conv_w, (2, 3, 1, 0)).astype(jnp.bfloat16)
        y = jax.lax.conv_general_dilated(
            xb, wb, window_strides=(stride, stride),
            padding=[(padding, padding), (padding, padding)],
            dimension_numbers=("NHWC", "HWIO", "NHWC"),
            preferred_element_type=jnp.float32)
        inv_std = jax.lax.rsqrt(running_var + 1e-5)
        scale = gamma * inv_std
        bias = beta + (conv_b - running_mean) * scale
        y = jnp.maximum(y * scale + bias, 0.0)
        return jnp.transpose(y, (0, 3, 1, 2))

    # stride=1/padding=0 (stem-style), stride=1/padding=1 (ResNet-A branch),
    # stride=2/padding=0 (Reduction-A/B style)
    for (s, p) in [(1, 0), (1, 1), (2, 0)]:
        out = conv3x3_bn_relu(x, conv_w, conv_b, gamma, beta, running_mean,
                              running_var, stride=s, padding=p)
        jax.block_until_ready(out)
        hout = (H + 2 * p - 3) // s + 1
        assert out.shape == (N, Cout, hout, hout), (s, p, out.shape)
        assert bool(jnp.all(out >= 0.0))                     # ReLU sanity
        ref = reference(x, s, p)
        err = float(jnp.max(jnp.abs(out.astype(jnp.float32) - ref)))
        assert err < 5e-2, f"stride={s} pad={p} max abs err {err}"
    print("KERNEL_OK")
</pallas_src>

<mosaic_0001>
module attributes {stable_mosaic.version = 11 : i64} {
  func.func @_conv3x3_bn_relu_kernel(%arg0: i32, %arg1: i32, %arg2: memref<1x16x18x4xbf16, #tpu.memory_space<vmem>>, %arg3: memref<9x4x128xbf16, #tpu.memory_space<vmem>>, %arg4: memref<1x128xf32, #tpu.memory_space<vmem>>, %arg5: memref<1x224x128xbf16, #tpu.memory_space<vmem>>) attributes {dimension_semantics = [#tpu.dimension_semantics<parallel>, #tpu.dimension_semantics<parallel>], iteration_bounds = array<i64: 2, 1>, scalar_prefetch = 0 : i64, scratch_operands = 0 : i64, tpu.core_type = #tpu.core_type<tc>, window_params = [{transform_indices = @transform_0, window_bounds = array<i64: 1, 16, 18, 4>}, {pipeline_mode = #tpu.pipeline_mode<synchronous>, transform_indices = @transform_1, window_bounds = array<i64: 9, 4, 128>}, {pipeline_mode = #tpu.pipeline_mode<synchronous>, transform_indices = @transform_2, window_bounds = array<i64: 1, 128>}, {transform_indices = @transform_3, window_bounds = array<i64: 1, 224, 128>}]} {
    %c14_i32 = arith.constant 14 : i32
    %0 = arith.muli %arg1, %c14_i32 : i32
    %1 = tpu.assume_multiple %0, 14 : i32
    %c0_i32 = arith.constant 0 : i32
    %2 = arith.addi %1, %c0_i32 : i32
    %c0 = arith.constant 0 : index
    %3 = arith.index_cast %2 : i32 to index
    %c0_0 = arith.constant 0 : index
    %c0_1 = arith.constant 0 : index
    %4 = vector.load %arg2[%c0, %3, %c0_0, %c0_1] : memref<1x16x18x4xbf16, #tpu.memory_space<vmem>>, vector<1x14x16x4xbf16>
    %5 = vector.shape_cast %4 : vector<1x14x16x4xbf16> to vector<14x16x4xbf16>
    %6 = vector.shape_cast %5 : vector<14x16x4xbf16> to vector<224x4xbf16>
    %c0_2 = arith.constant 0 : index
    %c0_3 = arith.constant 0 : index
    %c0_4 = arith.constant 0 : index
    %7 = vector.load %arg3[%c0_2, %c0_3, %c0_4] : memref<9x4x128xbf16, #tpu.memory_space<vmem>>, vector<1x4x128xbf16>
    %8 = vector.shape_cast %7 : vector<1x4x128xbf16> to vector<4x128xbf16>
    %cst = arith.constant dense<0.000000e+00> : vector<224x128xf32>
    %9 = tpu.matmul %6, %8, %cst {dimension_numbers = #tpu.dot_dimension_numbers<[1], [0], [0], [1], [0, 0, 1, 1], [], []>} : vector<224x4xbf16>, vector<4x128xbf16>, vector<224x128xf32> -> vector<224x128xf32>
    %c0_i32_5 = arith.constant 0 : i32
    %10 = arith.addi %1, %c0_i32_5 : i32
    %c0_6 = arith.constant 0 : index
    %11 = arith.index_cast %10 : i32 to index
    %c1 = arith.constant 1 : index
    %c0_7 = arith.constant 0 : index
    %12 = vector.load %arg2[%c0_6, %11, %c1, %c0_7] : memref<1x16x18x4xbf16, #tpu.memory_space<vmem>>, vector<1x14x16x4xbf16>
    %13 = vector.shape_cast %12 : vector<1x14x16x4xbf16> to vector<14x16x4xbf16>
    %14 = vector.shape_cast %13 : vector<14x16x4xbf16> to vector<224x4xbf16>
    %c1_8 = arith.constant 1 : index
    %c0_9 = arith.constant 0 : index
    %c0_10 = arith.constant 0 : index
    %15 = vector.load %arg3[%c1_8, %c0_9, %c0_10] : memref<9x4x128xbf16, #tpu.memory_space<vmem>>, vector<1x4x128xbf16>
    %16 = vector.shape_cast %15 : vector<1x4x128xbf16> to vector<4x128xbf16>
    %cst_11 = arith.constant dense<0.000000e+00> : vector<224x128xf32>
    %17 = tpu.matmul %14, %16, %cst_11 {dimension_numbers = #tpu.dot_dimension_numbers<[1], [0], [0], [1], [0, 0, 1, 1], [], []>} : vector<224x4xbf16>, vector<4x128xbf16>, vector<224x128xf32> -> vector<224x128xf32>
    %18 = arith.addf %9, %17 : vector<224x128xf32>
    %c0_i32_12 = arith.constant 0 : i32
    %19 = arith.addi %1, %c0_i32_12 : i32
    %c0_13 = arith.constant 0 : index
    %20 = arith.index_cast %19 : i32 to index
    %c2 = arith.constant 2 : index
    %c0_14 = arith.constant 0 : index
    %21 = vector.load %arg2[%c0_13, %20, %c2, %c0_14] : memref<1x16x18x4xbf16, #tpu.memory_space<vmem>>, vector<1x14x16x4xbf16>
    %22 = vector.shape_cast %21 : vector<1x14x16x4xbf16> to vector<14x16x4xbf16>
    %23 = vector.shape_cast %22 : vector<14x16x4xbf16> to vector<224x4xbf16>
    %c2_15 = arith.constant 2 : index
    %c0_16 = arith.constant 0 : index
    %c0_17 = arith.constant 0 : index
    %24 = vector.load %arg3[%c2_15, %c0_16, %c0_17] : memref<9x4x128xbf16, #tpu.memory_space<vmem>>, vector<1x4x128xbf16>
    %25 = vector.shape_cast %24 : vector<1x4x128xbf16> to vector<4x128xbf16>
    %cst_18 = arith.constant dense<0.000000e+00> : vector<224x128xf32>
    %26 = tpu.matmul %23, %25, %cst_18 {dimension_numbers = #tpu.dot_dimension_numbers<[1], [0], [0], [1], [0, 0, 1, 1], [], []>} : vector<224x4xbf16>, vector<4x128xbf16>, vector<224x128xf32> -> vector<224x128xf32>
    %27 = arith.addf %18, %26 : vector<224x128xf32>
    %c1_i32 = arith.constant 1 : i32
    %28 = arith.addi %1, %c1_i32 : i32
    %c0_19 = arith.constant 0 : index
    %29 = arith.index_cast %28 : i32 to index
    %c0_20 = arith.constant 0 : index
    %c0_21 = arith.constant 0 : index
    %30 = vector.load %arg2[%c0_19, %29, %c0_20, %c0_21] : memref<1x16x18x4xbf16, #tpu.memory_space<vmem>>, vector<1x14x16x4xbf16>
    %31 = vector.shape_cast %30 : vector<1x14x16x4xbf16> to vector<14x16x4xbf16>
    %32 = vector.shape_cast %31 : vector<14x16x4xbf16> to vector<224x4xbf16>
    %c3 = arith.constant 3 : index
    %c0_22 = arith.constant 0 : index
    %c0_23 = arith.constant 0 : index
    %33 = vector.load %arg3[%c3, %c0_22, %c0_23] : memref<9x4x128xbf16, #tpu.memory_space<vmem>>, vector<1x4x128xbf16>
    %34 = vector.shape_cast %33 : vector<1x4x128xbf16> to vector<4x128xbf16>
    %cst_24 = arith.constant dense<0.000000e+00> : vector<224x128xf32>
    %35 = tpu.matmul %32, %34, %cst_24 {dimension_numbers = #tpu.dot_dimension_numbers<[1], [0], [0], [1], [0, 0, 1, 1], [], []>} : vector<224x4xbf16>, vector<4x128xbf16>, vector<224x128xf32> -> vector<224x128xf32>
    %36 = arith.addf %27, %35 : vector<224x128xf32>
    %c1_i32_25 = arith.constant 1 : i32
    %37 = arith.addi %1, %c1_i32_25 : i32
    %c0_26 = arith.constant 0 : index
    %38 = arith.index_cast %37 : i32 to index
    %c1_27 = arith.constant 1 : index
    %c0_28 = arith.constant 0 : index
    %39 = vector.load %arg2[%c0_26, %38, %c1_27, %c0_28] : memref<1x16x18x4xbf16, #tpu.memory_space<vmem>>, vector<1x14x16x4xbf16>
    %40 = vector.shape_cast %39 : vector<1x14x16x4xbf16> to vector<14x16x4xbf16>
    %41 = vector.shape_cast %40 : vector<14x16x4xbf16> to vector<224x4xbf16>
    %c4 = arith.constant 4 : index
    %c0_29 = arith.constant 0 : index
    %c0_30 = arith.constant 0 : index
    %42 = vector.load %arg3[%c4, %c0_29, %c0_30] : memref<9x4x128xbf16, #tpu.memory_space<vmem>>, vector<1x4x128xbf16>
    %43 = vector.shape_cast %42 : vector<1x4x128xbf16> to vector<4x128xbf16>
    %cst_31 = arith.constant dense<0.000000e+00> : vector<224x128xf32>
    %44 = tpu.matmul %41, %43, %cst_31 {dimension_numbers = #tpu.dot_dimension_numbers<[1], [0], [0], [1], [0, 0, 1, 1], [], []>} : vector<224x4xbf16>, vector<4x128xbf16>, vector<224x128xf32> -> vector<224x128xf32>
    %45 = arith.addf %36, %44 : vector<224x128xf32>
    %c1_i32_32 = arith.constant 1 : i32
    %46 = arith.addi %1, %c1_i32_32 : i32
    %c0_33 = arith.constant 0 : index
    %47 = arith.index_cast %46 : i32 to index
    %c2_34 = arith.constant 2 : index
    %c0_35 = arith.constant 0 : index
    %48 = vector.load %arg2[%c0_33, %47, %c2_34, %c0_35] : memref<1x16x18x4xbf16, #tpu.memory_space<vmem>>, vector<1x14x16x4xbf16>
    %49 = vector.shape_cast %48 : vector<1x14x16x4xbf16> to vector<14x16x4xbf16>
    %50 = vector.shape_cast %49 : vector<14x16x4xbf16> to vector<224x4xbf16>
    %c5 = arith.constant 5 : index
    %c0_36 = arith.constant 0 : index
    %c0_37 = arith.constant 0 : index
    %51 = vector.load %arg3[%c5, %c0_36, %c0_37] : memref<9x4x128xbf16, #tpu.memory_space<vmem>>, vector<1x4x128xbf16>
    %52 = vector.shape_cast %51 : vector<1x4x128xbf16> to vector<4x128xbf16>
    %cst_38 = arith.constant dense<0.000000e+00> : vector<224x128xf32>
    %53 = tpu.matmul %50, %52, %cst_38 {dimension_numbers = #tpu.dot_dimension_numbers<[1], [0], [0], [1], [0, 0, 1, 1], [], []>} : vector<224x4xbf16>, vector<4x128xbf16>, vector<224x128xf32> -> vector<224x128xf32>
    %54 = arith.addf %45, %53 : vector<224x128xf32>
    %c2_i32 = arith.constant 2 : i32
    %55 = arith.addi %1, %c2_i32 : i32
    %c0_39 = arith.constant 0 : index
    %56 = arith.index_cast %55 : i32 to index
    %c0_40 = arith.constant 0 : index
    %c0_41 = arith.constant 0 : index
    %57 = vector.load %arg2[%c0_39, %56, %c0_40, %c0_41] : memref<1x16x18x4xbf16, #tpu.memory_space<vmem>>, vector<1x14x16x4xbf16>
    %58 = vector.shape_cast %57 : vector<1x14x16x4xbf16> to vector<14x16x4xbf16>
    %59 = vector.shape_cast %58 : vector<14x16x4xbf16> to vector<224x4xbf16>
    %c6 = arith.constant 6 : index
    %c0_42 = arith.constant 0 : index
    %c0_43 = arith.constant 0 : index
    %60 = vector.load %arg3[%c6, %c0_42, %c0_43] : memref<9x4x128xbf16, #tpu.memory_space<vmem>>, vector<1x4x128xbf16>
    %61 = vector.shape_cast %60 : vector<1x4x128xbf16> to vector<4x128xbf16>
    %cst_44 = arith.constant dense<0.000000e+00> : vector<224x128xf32>
    %62 = tpu.matmul %59, %61, %cst_44 {dimension_numbers = #tpu.dot_dimension_numbers<[1], [0], [0], [1], [0, 0, 1, 1], [], []>} : vector<224x4xbf16>, vector<4x128xbf16>, vector<224x128xf32> -> vector<224x128xf32>
    %63 = arith.addf %54, %62 : vector<224x128xf32>
    %c2_i32_45 = arith.constant 2 : i32
    %64 = arith.addi %1, %c2_i32_45 : i32
    %c0_46 = arith.constant 0 : index
    %65 = arith.index_cast %64 : i32 to index
    %c1_47 = arith.constant 1 : index
    %c0_48 = arith.constant 0 : index
    %66 = vector.load %arg2[%c0_46, %65, %c1_47, %c0_48] : memref<1x16x18x4xbf16, #tpu.memory_space<vmem>>, vector<1x14x16x4xbf16>
    %67 = vector.shape_cast %66 : vector<1x14x16x4xbf16> to vector<14x16x4xbf16>
    %68 = vector.shape_cast %67 : vector<14x16x4xbf16> to vector<224x4xbf16>
    %c7 = arith.constant 7 : index
    %c0_49 = arith.constant 0 : index
    %c0_50 = arith.constant 0 : index
    %69 = vector.load %arg3[%c7, %c0_49, %c0_50] : memref<9x4x128xbf16, #tpu.memory_space<vmem>>, vector<1x4x128xbf16>
    %70 = vector.shape_cast %69 : vector<1x4x128xbf16> to vector<4x128xbf16>
    %cst_51 = arith.constant dense<0.000000e+00> : vector<224x128xf32>
    %71 = tpu.matmul %68, %70, %cst_51 {dimension_numbers = #tpu.dot_dimension_numbers<[1], [0], [0], [1], [0, 0, 1, 1], [], []>} : vector<224x4xbf16>, vector<4x128xbf16>, vector<224x128xf32> -> vector<224x128xf32>
    %72 = arith.addf %63, %71 : vector<224x128xf32>
    %c2_i32_52 = arith.constant 2 : i32
    %73 = arith.addi %1, %c2_i32_52 : i32
    %c0_53 = arith.constant 0 : index
    %74 = arith.index_cast %73 : i32 to index
    %c2_54 = arith.constant 2 : index
    %c0_55 = arith.constant 0 : index
    %75 = vector.load %arg2[%c0_53, %74, %c2_54, %c0_55] : memref<1x16x18x4xbf16, #tpu.memory_space<vmem>>, vector<1x14x16x4xbf16>
    %76 = vector.shape_cast %75 : vector<1x14x16x4xbf16> to vector<14x16x4xbf16>
    %77 = vector.shape_cast %76 : vector<14x16x4xbf16> to vector<224x4xbf16>
    %c8 = arith.constant 8 : index
    %c0_56 = arith.constant 0 : index
    %c0_57 = arith.constant 0 : index
    %78 = vector.load %arg3[%c8, %c0_56, %c0_57] : memref<9x4x128xbf16, #tpu.memory_space<vmem>>, vector<1x4x128xbf16>
    %79 = vector.shape_cast %78 : vector<1x4x128xbf16> to vector<4x128xbf16>
    %cst_58 = arith.constant dense<0.000000e+00> : vector<224x128xf32>
    %80 = tpu.matmul %77, %79, %cst_58 {dimension_numbers = #tpu.dot_dimension_numbers<[1], [0], [0], [1], [0, 0, 1, 1], [], []>} : vector<224x4xbf16>, vector<4x128xbf16>, vector<224x128xf32> -> vector<224x128xf32>
    %81 = arith.addf %72, %80 : vector<224x128xf32>
    %c0_59 = arith.constant 0 : index
    %c0_60 = arith.constant 0 : index
    %82 = vector.load %arg4[%c0_59, %c0_60] : memref<1x128xf32, #tpu.memory_space<vmem>>, vector<1x128xf32>
    %83 = vector.broadcast %82 : vector<1x128xf32> to vector<224x128xf32>
    %84 = arith.addf %81, %83 : vector<224x128xf32>
    %cst_61 = arith.constant 0.000000e+00 : f32
    %85 = vector.broadcast %cst_61 : f32 to vector<224x128xf32>
    %86 = arith.maximumf %84, %85 : vector<224x128xf32>
    %87 = arith.truncf %86 : vector<224x128xf32> to vector<224x128xbf16>
    %c0_62 = arith.constant 0 : index
    %c0_63 = arith.constant 0 : index
    %c0_64 = arith.constant 0 : index
    %88 = vector.load %arg5[%c0_62, %c0_63, %c0_64] : memref<1x224x128xbf16, #tpu.memory_space<vmem>>, vector<1x224x128xbf16>
    %89 = vector.shape_cast %88 : vector<1x224x128xbf16> to vector<224x128xbf16>
    %90 = vector.shape_cast %87 : vector<224x128xbf16> to vector<1x224x128xbf16>
    tpu.vector_store %arg5[%c0_62, %c0_63, %c0_64], %90 {strides = array<i32>} : memref<1x224x128xbf16, #tpu.memory_space<vmem>>, vector<1x224x128xbf16>,
    return
  }
  func.func @transform_0(%arg0: i32, %arg1: i32) -> (i32, i32, i32, i32) {
    %c0_i32 = arith.constant 0 : i32
    %c0_i32_0 = arith.constant 0 : i32
    %c0_i32_1 = arith.constant 0 : i32
    %c0_i32_2 = arith.constant 0 : i32
    return %arg0, %c0_i32, %c0_i32_0, %c0_i32_1 : i32, i32, i32, i32
  }
  func.func @transform_1(%arg0: i32, %arg1: i32) -> (i32, i32, i32) {
    %c0_i32 = arith.constant 0 : i32
    %c0_i32_0 = arith.constant 0 : i32
    %c0_i32_1 = arith.constant 0 : i32
    %c0_i32_2 = arith.constant 0 : i32
    return %c0_i32, %c0_i32_0, %c0_i32_1 : i32, i32, i32
  }
  func.func @transform_2(%arg0: i32, %arg1: i32) -> (i32, i32) {
    %c0_i32 = arith.constant 0 : i32
    %c0_i32_0 = arith.constant 0 : i32
    %c0_i32_1 = arith.constant 0 : i32
    return %c0_i32, %c0_i32_0 : i32, i32
  }
  func.func @transform_3(%arg0: i32, %arg1: i32) -> (i32, i32, i32) {
    %c0_i32 = arith.constant 0 : i32
    %c0_i32_0 = arith.constant 0 : i32
    return %arg0, %arg1, %c0_i32 : i32, i32, i32
  }
}

</mosaic_0001>

<bundles_post_ra>
// kernel: tpu_custom_call.1
= control target key start
LH: loop header
LB: loop body
LE: loop exit
PB: predicated region body
PF: predicated region fallthrough
CT: control target
= control target key end

     0   :  { %8 = vsyncpa [#allocation3], 0  ;;  %s8013_s0 = inlined_call_operand.vmem [shape: bf16[2,16,18,4], index: 0, kind: input, shape index: {}]   ;;  %s8014_s1 = inlined_call_operand.vmem [shape: bf16[9,4,128], index: 1, kind: input, shape index: {}]   ;;  %s8015_s2 = inlined_call_operand.vmem [shape: f32[1,128], index: 2, kind: input, shape index: {}]   ;;  %s8016_s3 = inlined_call_operand.hbm [shape: bf16[2,224,128], index: 3, kind: output, shape index: {}]  }
   0x1   :  { %10 = vsyncpa [#allocation3 + $0x1], 0  ;;  %s5769_s12 = smov 0   ;;  %s5771_s13 = smov 0  }
   0x2   :  { %s5773_s14 = smov 0   ;;  %s5775_s15 = smov 0  }
   0x3   :  { %s5777_s16 = smov 0   ;;  %s5779_s17 = smov 0  }
   0x4 LB: > { %s4530_s18 = sadd.s32 4294967295, %s5744_s17   ;;  %s4531_s19 = sadd.s32 4294967294, %s5744_s17   ;;  %s5744_s17 = sphi %s5779_s17, %s16_s17   ;;  %s5740_s16 = sphi %s5777_s16, %s8139_s16   ;;  %s5736_s15 = sphi %s5775_s15, %s8138_s15   ;;  %s5732_s14 = sphi %s5773_s14, %s8137_s14   ;;  %s5728_s13 = sphi %s5771_s13, %s8136_s13   ;;  %s5724_s12 = sphi %s5769_s12, %s8135_s12  }
   0x5   : > { %s28_s20 = sadd.s32 1, %s5740_s16  ;;  %s105_s21 = sadd.s32 1, %s5732_s14 }
   0x6   : > { %p30_p0 = scmp.ge.s32.totalorder %s28_s20, 2  ;;  %p115_p1 = scmp.ne.s32.totalorder %s5732_s14, %s5728_s13 }
   0x7   : > { %p116_p2 = scmp.eq.s32.totalorder %s4530_s18, 1  ;;  %p121_p3 = scmp.ne.s32.totalorder %s5728_s13, %s5724_s12 }
   0x8   : > { %s8141_s20 = smov (%p30_p0, %s28_s20), 0  ;;  %p122_p5 = scmp.eq.s32.totalorder %s4531_s19, 1 }
   0x9   : > { %p5809_p4 = por %p116_p2, %p115_p1  ;;  %s100_s23 = ssub.s32 %s5740_s16, %s8141_s20 }
   0xa   : > { %p4534_p6 = scmp.ge.s32.totalorder %s5744_s17, 1  ;;  %p103_p7 = scmp.eq.s32.totalorder %s100_s23, 0 }
   0xb   : > { %p5816_p8 = por %p122_p5, %p121_p3  ;;  %p154_p9 = scmp.lt.s32.totalorder %s5744_s17, 3 }
   0xc   : > { %s5822_s25 = scalar_select %p103_p7, %s5732_s14, %s105_s21  }
   0xd   : > { %p155_p10 = pnand %p4534_p6, %p154_p9 }
   0xf   : > { %158 = sbr.rel (%p155_p10) target bundleno = 539 (0x21b), region = 32 }
  0x14   : > { %v4536_v0 = vld [vmem:[%s8014_s1 + $0x2] sm:$0x3]  ;;  %vm658_vm0 = vcmask 1041408   ;;  %p178_p11 = scmp.lt.s32.totalorder %s5736_s15, 1  ;;  %v4607_v2 = vld [vmem:[%s8014_s1 + $0x4] sm:$0x3] }
  0x15   : > { %5556 = vmatprep.subr.msk.bf16.mxu0 %vm658_vm0, %v4536_v0  ;;  %5557 = vmatprep.subr.msk.bf16.mxu1 %vm658_vm0, %v4536_v0  ;;  %v660_v1 = vsel %vm658_vm0, %v4536_v0, 0  ;;  %v5838_v3 = vld [vmem:[%s8014_s1] sm:$0x3]  ;;  %vm232_vm1 = vsmask.f32 3328  ;;  %vm615_vm3 = vcmask 31744  }
  0x16   : > { %5285 = vmatpush3.bf16.msra.mxu0 %v660_v1  ;;  %5555 = vmatpush3.bf16.msra.mxu1 %v660_v1  ;;  %s179_s30 = scalar_select %p178_p11, %s5736_s15, 1  ;;  %vm233_vm2 = vsmask.f32 7440  ;;  %v5889_v33 = vsel %vm658_vm0, %v4607_v2, 0  ;;  %v5917_v60 = vsel %vm658_vm0, %v5838_v3, 0  ;;  %vm1109_vm5 = vcmask 1042432  }
  0x17   : > { %5559 = vmatprep.subr.msk.bf16.mxu0 %vm658_vm0, %v4607_v2  ;;  %5558 = vmatprep.subr.msk.bf16.mxu1 %vm658_vm0, %v5838_v3  ;;  %vm5884_vm4 = vmor %vm232_vm1, %vm233_vm2  ;;  %vm1110_vm6 = vcmask 1046532   ;;  %s175_s7 = sand.u32 1, %s5728_s13   ;;  %s5568_s10 = smul.u32 1792, %s5736_s15 }
  0x18   : > { %s5567_s6 = smul.u32 192, %s179_s30  ;;  %vm6144_vm7 = vmor %vm1109_vm5, %vm1110_vm6  ;;  %s7968_s15 = scalar_lea.sflag [#allocation3], %s175_s7 }
  0x19   : > { %s5566_s8 = smul.u32 112, %s175_s7  ;;  %s7960_s21 = scalar_lea.hbm %s8016_s3, %s5568_s10 }
  0x1a   : > { %s5846_s9 = scalar_lea.vmem %s8013_s0, %s5567_s6  ;;  %s5746_s26 = smov [#allocation2]  }
  0x1b   : > { %v5849_v4 = vld [vmem:[%s5846_s9] sm:$0xf]  ;;  %v5852_v5 = vld [vmem:[%s5846_s9 + $0x4] sm:$0xf]  ;;  %v5855_v6 = vld [vmem:[%s5846_s9 + $0x8] sm:$0x1] }
  0x1c   : > { %v236_v7 = vshrl.u32 %v5849_v4, 16  ;;  %v239_v8 = vshll.u32 %v5849_v4, 16  ;;  %v245_v9 = vshll.u32 %v5852_v5, 16  ;;  %v249_v10 = vshrl.u32 %v5852_v5, 16  ;;  %v5862_v11 = vld [vmem:[%s5846_s9 + $0x60] sm:$0xf] }
  0x1d   : > { %8024 = vst [vmem:[#allocation5_spill] sm:$0xff] %v5862_v11  ;;  %v255_v12 = vshll.u32 %v5855_v6, 16  ;;  %v5866_v13 = vld [vmem:[%s5846_s9 + $0x64] sm:$0xf]  ;;  %v5869_v14 = vld [vmem:[%s5846_s9 + $0x68] sm:$0x1] }
  0x1e   : > { %8025 = vst [vmem:[#allocation6_spill] sm:$0xff] %v5869_v14  ;;  %v238_v15 = vrot.slane %v236_v7, 4  ;;  %v241_v16 = vrot.slane %v239_v8, 5  ;;  %v247_v17 = vrot.slane %v245_v9, 5  ;;  %v251_v18 = vrot.slane %v249_v10, 4  ;;  %s5672_s27 = sshll.u32 %s5746_s26, 4  ;;  %s5673_s27 = int_to_ptr.vmem [resolvable:$false] %s5672_s27 }
  0x1f   : > { %v257_v19 = vrot.slane %v255_v12, 5  ;;  %v428_v20 = vshrl.u32 %v5862_v11, 16  ;;  %v431_v21 = vshll.u32 %v5862_v11, 16  ;;  %v437_v22 = vshll.u32 %v5866_v13, 16  ;;  %v5877_v27 = vld [vmem:[%s5846_s9 + $0xc] sm:$0xf] }
  0x20   : > { %v242_v23 = vor.u32 %v241_v16, %v238_v15  ;;  %v252_v24 = vor.u32 %v251_v18, %v247_v17  ;;  %v441_v25 = vshrl.u32 %v5866_v13, 16  ;;  %v447_v26 = vshll.u32 %v5869_v14, 16  ;;  %v5880_v28 = vld [vmem:[%s5846_s9 + $0x10] sm:$0xf]  ;;  %v5892_v39 = vld [vmem:[%s5846_s9 + $0x14] sm:$0x1] }
  0x21   : > { %v430_v30 = vrot.slane %v428_v20, 4  ;;  %v433_v31 = vrot.slane %v431_v21, 5  ;;  %v439_v32 = vrot.slane %v437_v22, 5  ;;  %v260_v40 = vshrl.u32 %v5877_v27, 16  ;;  %v5903_v51 = vld [vmem:[%s5846_s9 + $0x6c] sm:$0xf] }
  0x22   : > { %v243_v34 = vrot.slane %v242_v23, 4  ;;  %v253_v35 = vrot.slane %v252_v24, 4  ;;  %v443_v36 = vrot.slane %v441_v25, 4  ;;  %v449_v37 = vrot.slane %v447_v26, 5  ;;  %v5907_v56 = vld [vmem:[%s5846_s9 + $0x70] sm:$0xf] }
  0x23   : > { %v434_v38 = vor.u32 %v433_v31, %v430_v30  ;;  %v263_v41 = vshll.u32 %v5877_v27, 16  ;;  %v269_v42 = vshll.u32 %v5880_v28, 16  ;;  %v273_v46 = vshrl.u32 %v5880_v28, 16  ;;  %v5913_v59 = vld [vmem:[%s5846_s9 + $0x74] sm:$0x1]  ;;  %s5674_s28 = scalar_lea.vmem %s5673_s27, 3584 }
  0x24   : > { %v248_v43 = vsel %vm5884_vm4, %v243_v34, %v247_v17  ;;  %v258_v44 = vsel %vm5884_vm4, %v253_v35, %v257_v19  ;;  %v444_v45 = vor.u32 %v443_v36, %v439_v32  ;;  %v262_v49 = vrot.slane %v260_v40, 4  ;;  %v5925_v2 = vld [vmem:[%s5846_s9 + $0x18] sm:$0xf]  ;;  %v5932_v17 = vld [vmem:[%s5846_s9 + $0x1c] sm:$0xf] }
  0x25   : > { %v4537_v47 = vcombine.low %v248_v43, %v258_v44  ;;  %v435_v48 = vrot.slane %v434_v38, 4  ;;  %v265_v50 = vrot.slane %v263_v41, 5  ;;  %v271_v53 = vrot.slane %v269_v42, 5  ;;  %v5938_v21 = vld [vmem:[%s5846_s9 + $0x20] sm:$0x1] }
  0x26   : > { %v445_v52 = vrot.slane %v444_v45, 4  ;;  %v275_v54 = vrot.slane %v273_v46, 4  ;;  %v279_v55 = vshll.u32 %v5892_v39, 16  ;;  %v452_v1 = vshrl.u32 %v5903_v51, 16  ;;  %v5945_v30 = vld [vmem:[%s5846_s9 + $0x78] sm:$0xf] }
  0x27   : > { %5286 = vmatprep.mubr.msk.bf16.mxu0 %vm615_vm3, %v4537_v47  ;;  %v440_v57 = vsel %vm5884_vm4, %v435_v48, %v439_v32  ;;  %v266_v58 = vor.u32 %v265_v50, %v262_v49  ;;  %v455_v9 = vshll.u32 %v5903_v51, 16  ;;  %v461_v3 = vshll.u32 %v5907_v56, 16  ;;  %v5951_v36 = vld [vmem:[%s8014_s1 + $0x8] sm:$0x3]  ;;  %v5956_v42 = vld [vmem:[%s5846_s9 + $0x7c] sm:$0xf] }
  0x28   : > { %v450_v62 = vsel %vm5884_vm4, %v445_v52, %v449_v37  ;;  %v276_v63 = vor.u32 %v275_v54, %v271_v53  ;;  %v281_v0 = vrot.slane %v279_v55, 5  ;;  %v454_v12 = vrot.slane %v452_v1, 4  ;;  %v5963_v52 = vld [vmem:[%s5846_s9 + $0x80] sm:$0x1]  ;;  %v5977_v1 = vld [vmem:[%s5846_s9 + $0x28] sm:$0xf] }
  0x29   : > { %v4545_v7 = vcombine.low %v440_v57, %v450_v62  ;;  %v267_v8 = vrot.slane %v266_v58, 4  ;;  %v465_v15 = vshrl.u32 %v5907_v56, 16  ;;  %v471_v16 = vshll.u32 %v5913_v59, 16  ;;  %v5969_v58 = vld [vmem:[%s5846_s9 + $0x24] sm:$0xf] }
  0x2a   : > { %v277_v10 = vrot.slane %v276_v63, 4  ;;  %v457_v19 = vrot.slane %v455_v9, 5  ;;  %v463_v20 = vrot.slane %v461_v3, 5  ;;  %v284_v22 = vshrl.u32 %v5925_v2, 16 }
  0x2b   : > { %5302 = vmatprep.mubr.msk.bf16.mxu1 %vm615_vm3, %v4545_v7  ;;  %v272_v18 = vsel %vm5884_vm4, %v267_v8, %v271_v53  ;;  %v467_v24 = vrot.slane %v465_v15, 4  ;;  %v473_v25 = vrot.slane %v471_v16, 5  ;;  %v287_v26 = vshll.u32 %v5925_v2, 16 }
  0x2c   : > { %v282_v23 = vsel %vm5884_vm4, %v277_v10, %v281_v0  ;;  %v458_v32 = vor.u32 %v457_v19, %v454_v12  ;;  %v286_v34 = vrot.slane %v284_v22, 4  ;;  %v293_v35 = vshll.u32 %v5932_v17, 16  ;;  %v5983_v10 = vld [vmem:[%s8014_s1 + $0x6] sm:$0x3] }
  0x2d   : > { %v4538_v31 = vcombine.low %v272_v18, %v282_v23  ;;  %v468_v37 = vor.u32 %v467_v24, %v463_v20  ;;  %v289_v38 = vrot.slane %v287_v26, 5  ;;  %v297_v40 = vshrl.u32 %v5932_v17, 16  ;;  %v5988_v18 = vld [vmem:[%s5846_s9 + $0x2c] sm:$0x1] }
  0x2e   : > { %v303_v41 = vshll.u32 %v5938_v21, 16  ;;  %v459_v43 = vrot.slane %v458_v32, 4  ;;  %v295_v44 = vrot.slane %v293_v35, 5  ;;  %v476_v45 = vshrl.u32 %v5945_v30, 16  ;;  %v6002_v35 = vld [vmem:[%s5846_s9 + $0x88] sm:$0xf] }
  0x2f   : > { %5287 = vmatmul.mubr.msk.bf16.vlgmr.msra.gmra.mxu0 %vm615_vm3, %v4538_v31  ;;  %v479_v46 = vshll.u32 %v5945_v30, 16  ;;  %v469_v47 = vrot.slane %v468_v37, 4  ;;  %v290_v48 = vor.u32 %v289_v38, %v286_v34  ;;  %v299_v49 = vrot.slane %v297_v40, 4 }
  0x30   : > { %5345 = vmatpush3.bf16.msra.mxu0 %v5889_v33  ;;  %v305_v50 = vrot.slane %v303_v41, 5  ;;  %v464_v53 = vsel %vm5884_vm4, %v459_v43, %v463_v20  ;;  %v478_v54 = vrot.slane %v476_v45, 4  ;;  %v485_v57 = vshll.u32 %v5956_v42, 16  ;;  %v6010_v45 = vld [vmem:[%s5846_s9 + $0x8c] sm:$0x1] }
  0x31   : > { %v481_v55 = vrot.slane %v479_v46, 5  ;;  %5561 = vmatprep.subr.msk.bf16.mxu0 %vm658_vm0, %v5951_v36  ;;  %v474_v33 = vsel %vm5884_vm4, %v469_v47, %v473_v25  ;;  %v291_v62 = vrot.slane %v290_v48, 4  ;;  %v300_v63 = vor.u32 %v299_v49, %v295_v44  ;;  %v5995_v25 = vld [vmem:[%s5846_s9 + $0x84] sm:$0xf] }
  0x32   : > { %v489_v0 = vshrl.u32 %v5956_v42, 16  ;;  %v4546_v7 = vcombine.low %v464_v53, %v474_v33  ;;  %v487_v9 = vrot.slane %v485_v57, 5  ;;  %v495_v3 = vshll.u32 %v5963_v52, 16  ;;  %v6018_v53 = vld [vmem:[%s5846_s9 + $0x30] sm:$0xf] }
  0x33   : > { %v482_v8 = vor.u32 %v481_v55, %v478_v54  ;;  %v296_v12 = vsel %vm5884_vm4, %v291_v62, %v295_v44  ;;  %v301_v15 = vrot.slane %v300_v63, 4  ;;  %v308_v19 = vshrl.u32 %v5969_v58, 16  ;;  %v6023_v62 = vld [vmem:[%s5846_s9 + $0x34] sm:$0xf] }
  0x34   : > { %v491_v16 = vrot.slane %v489_v0, 4  ;;  %5303 = vmatmul.mubr.msk.bf16.vlgmr.msra.gmra.mxu1 %vm615_vm3, %v4546_v7  ;;  %v497_v22 = vrot.slane %v495_v3, 5  ;;  %v311_v23 = vshll.u32 %v5969_v58, 16  ;;  %v317_v24 = vshll.u32 %v5977_v1, 16 }
  0x35   : > { %v483_v20 = vrot.slane %v482_v8, 4  ;;  %5315 = vmatpush3.bf16.msra.mxu1 %v5917_v60  ;;  %v306_v26 = vsel %vm5884_vm4, %v301_v15, %v305_v50  ;;  %v310_v32 = vrot.slane %v308_v19, 4  ;;  %v321_v34 = vshrl.u32 %v5977_v1, 16 }
  0x36   : > { %v492_v31 = vor.u32 %v491_v16, %v487_v9  ;;  %v4539_v37 = vcombine.low %v296_v12, %v306_v26  ;;  %v313_v40 = vrot.slane %v311_v23, 5  ;;  %v319_v41 = vrot.slane %v317_v24, 5  ;;  %5560 = vmatprep.subr.msk.bf16.mxu1 %vm658_vm0, %v5983_v10  ;;  %v6036_v24 = vld [vmem:[%s5846_s9 + $0x90] sm:$0xf] }
  0x37   : > { %v488_v38 = vsel %vm5884_vm4, %v483_v20, %v487_v9  ;;  %v323_v43 = vrot.slane %v321_v34, 4  ;;  %v327_v44 = vshll.u32 %v5988_v18, 16  ;;  %v500_v46 = vshrl.u32 %v5995_v25, 16  ;;  %v6031_v20 = vld [vmem:[%s5846_s9 + $0x38] sm:$0x1] }
  0x38   : > { %v493_v60 = vrot.slane %v492_v31, 4  ;;  %5290 = vmatprep.mubr.msk.bf16.mxu0 %vm615_vm3, %v4539_v37  ;;  %v314_v47 = vor.u32 %v313_v40, %v310_v32  ;;  %v503_v48 = vshll.u32 %v5995_v25, 16  ;;  %v509_v49 = vshll.u32 %v6002_v35, 16  ;;  %v6041_v37 = vld [vmem:[%s5846_s9 + $0x94] sm:$0xf] }
  0x39   : > { %v513_v50 = vshrl.u32 %v6002_v35, 16  ;;  %v324_v55 = vor.u32 %v323_v43, %v319_v41  ;;  %v329_v57 = vrot.slane %v327_v44, 5  ;;  %v502_v33 = vrot.slane %v500_v46, 4 }
  0x3a   : > { %v498_v54 = vsel %vm5884_vm4, %v493_v60, %v497_v22  ;;  %v315_v0 = vrot.slane %v314_v47, 4  ;;  %v505_v7 = vrot.slane %v503_v48, 5  ;;  %v511_v8 = vrot.slane %v509_v49, 5  ;;  %v6046_v47 = vld [vmem:[%s5846_s9 + $0x98] sm:$0x1] }
  0x3b   : > { %v4547_v63 = vcombine.low %v488_v38, %v498_v54  ;;  %v325_v9 = vrot.slane %v324_v55, 4  ;;  %v515_v3 = vrot.slane %v513_v50, 4  ;;  %v519_v12 = vshll.u32 %v6010_v45, 16  ;;  %8028 = vst [vmem:[#allocation7_spill] sm:$0xff] %v6046_v47 }
  0x3c   : > { %v332_v15 = vshrl.u32 %v6018_v53, 16  ;;  %v320_v16 = vsel %vm5884_vm4, %v315_v0, %v319_v41  ;;  %v506_v19 = vor.u32 %v505_v7, %v502_v33  ;;  %v335_v22 = vshll.u32 %v6018_v53, 16  ;;  %v6058_v33 = vld [vmem:[%s5846_s9 + $0x40] sm:$0xf] }
  0x3d   : > { %5306 = vmatprep.mubr.msk.bf16.mxu1 %vm615_vm3, %v4547_v63  ;;  %v341_v23 = vshll.u32 %v6023_v62, 16  ;;  %v330_v26 = vsel %vm5884_vm4, %v325_v9, %v329_v57  ;;  %v516_v31 = vor.u32 %v515_v3, %v511_v8  ;;  %v521_v32 = vrot.slane %v519_v12, 5  ;;  %v6055_v57 = vld [vmem:[%s5846_s9 + $0x3c] sm:$0xf] }
  0x3e   : > { %v334_v34 = vrot.slane %v332_v15, 4  ;;  %v4540_v38 = vcombine.low %v320_v16, %v330_v26  ;;  %v507_v40 = vrot.slane %v506_v19, 4  ;;  %v337_v41 = vrot.slane %v335_v22, 5  ;;  %v6063_v16 = vld [vmem:[%s5846_s9 + $0x44] sm:$0x1] }
  0x3f   : > { %v343_v60 = vrot.slane %v341_v23, 5  ;;  %v517_v43 = vrot.slane %v516_v31, 4  ;;  %v345_v44 = vshrl.u32 %v6023_v62, 16  ;;  %v351_v46 = vshll.u32 %v6031_v20, 16  ;;  %v6069_v31 = vld [vmem:[%s5846_s9 + $0x9c] sm:$0xf] }
  0x40   : > { %v524_v48 = vshrl.u32 %v6036_v24, 16  ;;  %5291 = vmatmul.mubr.msk.bf16.gmra.mxu0 %vm615_vm3, %v4540_v38  ;;  %v512_v49 = vsel %vm5884_vm4, %v507_v40, %v511_v8  ;;  %v338_v50 = vor.u32 %v337_v41, %v334_v34  ;;  %v527_v54 = vshll.u32 %v6036_v24, 16 }
  0x41   : > { %v533_v55 = vshll.u32 %v6041_v37, 16  ;;  %v522_v63 = vsel %vm5884_vm4, %v517_v43, %v521_v32  ;;  %v347_v0 = vrot.slane %v345_v44, 4  ;;  %v353_v7 = vrot.slane %v351_v46, 5 }
  0x42   : > { %v526_v9 = vrot.slane %v524_v48, 4  ;;  %v4548_v3 = vcombine.low %v512_v49, %v522_v63  ;;  %v339_v12 = vrot.slane %v338_v50, 4  ;;  %v529_v15 = vrot.slane %v527_v54, 5 }
  0x43   : > { %v535_v8 = vrot.slane %v533_v55, 5  ;;  %v348_v19 = vor.u32 %v347_v0, %v343_v60  ;;  %v537_v22 = vshrl.u32 %v6041_v37, 16  ;;  %v543_v23 = vshll.u32 %v6046_v47, 16  ;;  %v6081_v0 = vld [vmem:[%s5846_s9 + $0xa0] sm:$0xf] }
  0x44   : > { %v356_v26 = vshrl.u32 %v6055_v57, 16  ;;  %5307 = vmatmul.mubr.msk.bf16.gmra.mxu1 %vm615_vm3, %v4548_v3  ;;  %v344_v32 = vsel %vm5884_vm4, %v339_v12, %v343_v60  ;;  %v530_v34 = vor.u32 %v529_v15, %v526_v9  ;;  %v359_v38 = vshll.u32 %v6055_v57, 16  ;;  %v6084_v9 = vld [vmem:[%s5846_s9 + $0xa4] sm:$0x1]  ;;  %v1067_v47 = vld [vmem:[%s5846_s9] sm:$0xe] }
  0x45   : > { %v365_v40 = vshll.u32 %v6058_v33, 16  ;;  %v349_v41 = vrot.slane %v348_v19, 4  ;;  %v539_v43 = vrot.slane %v537_v22, 4  ;;  %v545_v44 = vrot.slane %v543_v23, 5  ;;  %8029 = vst [vmem:[#allocation8_spill] sm:$0xff] %v6084_v9 }
  0x46   : > { %v358_v46 = vrot.slane %v356_v26, 4  ;;  %v531_v48 = vrot.slane %v530_v34, 4  ;;  %v361_v49 = vrot.slane %v359_v38, 5  ;;  %v369_v54 = vshrl.u32 %v6058_v33, 16  ;;  %v6090_v23 = vld [vmem:[%s5846_s9 + $0x48] sm:$0xf] }
  0x47   : > { %v367_v50 = vrot.slane %v365_v40, 5  ;;  %v354_v55 = vsel %vm5884_vm4, %v349_v41, %v353_v7  ;;  %v540_v60 = vor.u32 %v539_v43, %v535_v8  ;;  %v375_v63 = vshll.u32 %v6063_v16, 16 }
  0x48   : > { %v548_v3 = vshrl.u32 %v6069_v31, 16  ;;  %v4541_v12 = vcombine.low %v344_v32, %v354_v55  ;;  %v536_v15 = vsel %vm5884_vm4, %v531_v48, %v535_v8  ;;  %v362_v19 = vor.u32 %v361_v49, %v358_v46  ;;  %v6097_v8 = vld [vmem:[%s5846_s9 + $0x4c] sm:$0xf] }
  0x49   : > { %v371_v22 = vrot.slane %v369_v54, 4  ;;  %v541_v7 = vrot.slane %v540_v60, 4  ;;  %v377_v26 = vrot.slane %v375_v63, 5  ;;  %v551_v38 = vshll.u32 %v6069_v31, 16  ;;  %v6103_v54 = vld [vmem:[%s5846_s9 + $0x50] sm:$0x1] }
  0x4a   : > { %v550_v34 = vrot.slane %v548_v3, 4  ;;  %5294 = vmatprep.mubr.msk.bf16.mxu0 %vm615_vm3, %v4541_v12  ;;  %v363_v40 = vrot.slane %v362_v19, 4  ;;  %v557_v32 = vshll.u32 %v6081_v0, 16  ;;  %v561_v43 = vshrl.u32 %v6081_v0, 16  ;;  %v6109_v19 = vld [vmem:[%s5846_s9 + $0x54] sm:$0xf] }
  0x4b   : > { %v372_v41 = vor.u32 %v371_v22, %v367_v50  ;;  %v546_v46 = vsel %vm5884_vm4, %v541_v7, %v545_v44  ;;  %v553_v48 = vrot.slane %v551_v38, 5  ;;  %v567_v49 = vshll.u32 %v6084_v9, 16 }
  0x4c   : > { %v380_v55 = vshrl.u32 %v6090_v23, 16  ;;  %v4549_v60 = vcombine.low %v536_v15, %v546_v46  ;;  %v368_v63 = vsel %vm5884_vm4, %v363_v40, %v367_v50  ;;  %v559_v12 = vrot.slane %v557_v32, 5 }
  0x4d   : > { %v373_v3 = vrot.slane %v372_v41, 4  ;;  %v554_v44 = vor.u32 %v553_v48, %v550_v34  ;;  %v563_v22 = vrot.slane %v561_v43, 4  ;;  %v569_v7 = vrot.slane %v567_v49, 5  ;;  %v6119_v34 = vld [vmem:[%s5846_s9 + $0x58] sm:$0xf] }
  0x4e   : > { %v382_v38 = vrot.slane %v380_v55, 4  ;;  %5310 = vmatprep.mubr.msk.bf16.mxu1 %vm615_vm3, %v4549_v60  ;;  %v383_v15 = vshll.u32 %v6090_v23, 16  ;;  %v389_v46 = vshll.u32 %v6097_v8, 16  ;;  %v393_v50 = vshrl.u32 %v6097_v8, 16  ;;  %v6122_v43 = vld [vmem:[%s5846_s9 + $0x5c] sm:$0x1] }
  0x4f   : > { %v378_v61 = vsel %vm5884_vm4, %v373_v3, %v377_v26  ;;  %v555_v41 = vrot.slane %v554_v44, 4  ;;  %v564_v32 = vor.u32 %v563_v22, %v559_v12  ;;  %v399_v14 = vshll.u32 %v6103_v54, 16 }
  0x50   : > { %v4542_v40 = vcombine.low %v368_v63, %v378_v61  ;;  %v385_v48 = vrot.slane %v383_v15, 5  ;;  %v391_v49 = vrot.slane %v389_v46, 5  ;;  %v395_v55 = vrot.slane %v393_v50, 4 }
  0x51   : > { %v404_v26 = vshrl.u32 %v6109_v19, 16  ;;  %v560_v60 = vsel %vm5884_vm4, %v555_v41, %v559_v12  ;;  %v565_v61 = vrot.slane %v564_v32, 4  ;;  %v401_v63 = vrot.slane %v399_v14, 5 }
  0x52   : > { %5295 = vmatmul.mubr.msk.bf16.gmra.mxu0 %vm615_vm3, %v4542_v40  ;;  %v407_v3 = vshll.u32 %v6109_v19, 16  ;;  %v386_v44 = vor.u32 %v385_v48, %v382_v38  ;;  %v396_v22 = vor.u32 %v395_v55, %v391_v49  ;;  %v413_v9 = vshll.u32 %v6119_v34, 16 }
  0x53   : > { %v406_v11 = vrot.slane %v404_v26, 4  ;;  %v570_v15 = vsel %vm5884_vm4, %v565_v61, %v569_v7  ;;  %v417_v50 = vshrl.u32 %v6119_v34, 16  ;;  %v423_v40 = vshll.u32 %v6122_v43, 16 }
  0x54   : > { %v409_v46 = vrot.slane %v407_v3, 5  ;;  %v4550_v12 = vcombine.low %v560_v60, %v570_v15  ;;  %v387_v41 = vrot.slane %v386_v44, 4  ;;  %v397_v14 = vrot.slane %v396_v22, 4  ;;  %v1068_v60 = vld [vmem:[%s5846_s9 + $0xc] sm:$0xe] }
  0x55   : > { %v415_v32 = vrot.slane %v413_v9, 5  ;;  %v1117_v38 = vrot.slane %v5855_v6, 5  ;;  %v1121_v48 = vrot.slane %v5880_v28, 5  ;;  %v419_v26 = vrot.slane %v417_v50, 4  ;;  %v1069_v50 = vld [vmem:[%s5846_s9 + $0x18] sm:$0xe] }
  0x56   : > { %v410_v55 = vor.u32 %v409_v46, %v406_v11  ;;  %5311 = vmatmul.mubr.msk.bf16.gmra.mxu1 %vm615_vm3, %v4550_v12  ;;  %v392_v7 = vsel %vm5884_vm4, %v387_v41, %v391_v49  ;;  %v402_v61 = vsel %vm5884_vm4, %v397_v14, %v401_v63  ;;  %v425_v3 = vrot.slane %v423_v40, 5 }
  0x57   : > { %v4593_v6 = vrot.slane %v1067_v47, 9  ;;  %v4543_v11 = vcombine.low %v392_v7, %v402_v61  ;;  %v8032_v44 = vcombine.low %v5849_v4, %v5852_v5  ;;  %v420_v49 = vor.u32 %v419_v26, %v415_v32  ;;  %v1070_v7 = vld [vmem:[%s5846_s9 + $0x24] sm:$0xe]  ;;  %v1071_v61 = vld [vmem:[%s5846_s9 + $0x30] sm:$0xe] }
  0x58   : > { %v411_v22 = vrot.slane %v410_v55, 4  ;;  %v1114_v15 = vrot.slane %v5852_v5, 5  ;;  %v1124_v63 = vrot.slane %v5892_v39, 5  ;;  %v1619_v46 = vsel %vm658_vm0, %v5983_v10, 0 }
  0x59   : > { %5316 = vmatprep.mubr.msk.bf16.mxu1 %vm615_vm3, %v8032_v44  ;;  %5298 = vmatprep.mubr.msk.bf16.mxu0 %vm615_vm3, %v4543_v11  ;;  %v421_v4 = vrot.slane %v420_v49, 4  ;;  %v4566_v5 = vcombine.low %v5877_v27, %v5880_v28  ;;  %v4567_v39 = vcombine.low %v5925_v2, %v5932_v17  ;;  %v4594_v41 = vrot.slane %v1068_v60, 9  ;;  %v6179_v2 = vld [vmem:[%s8014_s1 + $0xa] sm:$0x3] }
  0x5a   : > { %v416_v47 = vsel %vm5884_vm4, %v411_v22, %v415_v32  ;;  %v1115_v40 = vsel %vm6144_vm7, %v4593_v6, %v1114_v15  ;;  %v1116_v12 = vrot.slane %v1114_v15, 4  ;;  %v1128_v10 = vrot.slane %v5932_v17, 5 }
  0x5b   : > { %v426_v14 = vsel %vm5884_vm4, %v421_v4, %v425_v3  ;;  %v1123_v55 = vrot.slane %v1121_v48, 4  ;;  %v4595_v26 = vrot.slane %v1069_v50, 9  ;;  %v1131_v27 = vrot.slane %v5938_v21, 5 }
  0x5c   : > { %v1118_v32 = vsel %vm6144_vm7, %v1116_v12, %v1117_v38  ;;  %v4544_v6 = vcombine.low %v416_v47, %v426_v14  ;;  %v1130_v44 = vrot.slane %v1128_v10, 4  ;;  %v1135_v28 = vrot.slane %v5977_v1, 5  ;;  %v1072_v47 = vld [vmem:[%s5846_s9 + $0x3c] sm:$0xe] }
  0x5d   : > { %v4608_v11 = vcombine.low %v1115_v40, %v1118_v32  ;;  %v1122_v17 = vsel %vm6144_vm7, %v4594_v41, %v1121_v48  ;;  %v4596_v38 = vrot.slane %v1070_v7, 9  ;;  %v1142_v3 = vrot.slane %v6023_v62, 5  ;;  %v1076_v7 = vld [vmem:[%s5846_s9 + $0x6c] sm:$0xe] }
  0x5e   : > { %5299 = vmatmul.mubr.msk.bf16.gmra.mxu0 %vm615_vm3, %v4544_v6  ;;  %5317 = vmatmul.mubr.msk.bf16.vlgmr.msra.gmra.mxu1 %vm615_vm3, %v4566_v5  ;;  %v1125_v21 = vsel %vm6144_vm7, %v1123_v55, %v1124_v63  ;;  %v1129_v60 = vsel %vm6144_vm7, %v4595_v26, %v1128_v10  ;;  %v1138_v22 = vrot.slane %v5988_v18, 5  ;;  %v4597_v49 = vrot.slane %v1071_v61, 9  ;;  %v1073_v18 = vld [vmem:[%s5846_s9 + $0x48] sm:$0xe]  ;;  %v6227_v61 = vld [vmem:[%s8014_s1 + $0xc] sm:$0x3] }
  0x5f   : > { %5375 = vmatpush3.bf16.msra.mxu1 %v1619_v46  ;;  %5320 = vmatprep.mubr.msk.bf16.mxu1 %vm615_vm3, %v4567_v39  ;;  %v1132_v48 = vsel %vm6144_vm7, %v1130_v44, %v1131_v27  ;;  %v1137_v15 = vrot.slane %v1135_v28, 4  ;;  %v1144_v50 = vrot.slane %v1142_v3, 4  ;;  %v1145_v46 = vrot.slane %v6031_v20, 5 }
  0x60   : > { %5346 = vmatprep.mubr.msk.bf16.mxu0 %vm615_vm3, %v4608_v11  ;;  %5562 = vmatprep.subr.msk.bf16.mxu1 %vm658_vm0, %v6179_v2  ;;  %v2259_v63 = vsel %vm658_vm0, %v5951_v36, 0  ;;  %v1149_v4 = vrot.slane %v6058_v33, 5  ;;  %v4568_v40 = vcombine.low %v5969_v58, %v5977_v1  ;;  %v4609_v12 = vcombine.low %v1122_v17, %v1125_v21  ;;  %v1077_v11 = vld [vmem:[%s5846_s9 + $0x78] sm:$0xe] }
  0x61   : > { %v4569_v5 = vcombine.low %v6018_v53, %v6023_v62  ;;  %v1156_v20 = vrot.slane %v6097_v8, 5  ;;  %v4610_v39 = vcombine.low %v1129_v60, %v1132_v48  ;;  %v1136_v41 = vsel %vm6144_vm7, %v4596_v38, %v1135_v28 }
  0x62   : > { %v1143_v36 = vsel %vm6144_vm7, %v4597_v49, %v1142_v3  ;;  %v4598_v10 = vrot.slane %v1072_v47, 9  ;;  %v1139_v14 = vsel %vm6144_vm7, %v1137_v15, %v1138_v22  ;;  %v1146_v58 = vsel %vm6144_vm7, %v1144_v50, %v1145_v46  ;;  %v1078_v22 = vld [vmem:[%s5846_s9 + $0x84] sm:$0xe]  ;;  %v1079_v46 = vld [vmem:[%s5846_s9 + $0x90] sm:$0xe] }
  0x63   : > { %v4599_v1 = vrot.slane %v1073_v18, 9  ;;  %v4574_v53 = vcombine.low %v5903_v51, %v5907_v56  ;;  %v4570_v62 = vcombine.low %v6055_v57, %v6058_v33  ;;  %v1151_v32 = vrot.slane %v1149_v4, 4  ;;  %v4699_v51 = vld [vmem:[%s5846_s9 + $0x24] sm:$0xf] }
  0x64   : > { %v1152_v55 = vrot.slane %v6063_v16, 5  ;;  %v4575_v26 = vcombine.low %v5945_v30, %v5956_v42  ;;  %v4571_v6 = vcombine.low %v6090_v23, %v6097_v8  ;;  %v4572_v57 = vcombine.low %v6109_v19, %v6119_v34 }
  0x65   : > { %v1158_v33 = vrot.slane %v1156_v20, 4  ;;  %v1159_v16 = vrot.slane %v6103_v54, 5  ;;  %v4611_v44 = vcombine.low %v1136_v41, %v1139_v14  ;;  %v4612_v27 = vcombine.low %v1143_v36, %v1146_v58  ;;  %v8033_v58 = vld [vmem:[#allocation7_spill] sm:$0xff] }
  0x66   : > { %5321 = vmatmul.mubr.msk.bf16.gmra.mxu1 %vm615_vm3, %v4568_v40  ;;  %5347 = vmatmul.mubr.msk.bf16.vlgmr.msra.gmra.mxu0 %vm615_vm3, %v4609_v12  ;;  %v4576_v28 = vcombine.low %v5995_v25, %v6002_v35  ;;  %v6243_v23 = vsel %vm6144_vm7, %v4598_v10, %v1149_v4  ;;  %v6247_v8 = vsel %vm6144_vm7, %v4599_v1, %v1156_v20  ;;  %v4602_v54 = vrot.slane %v1076_v7, 9  ;;  %v1080_v20 = vld [vmem:[%s5846_s9 + $0x9c] sm:$0xe] }
  0x67   : > { %5405 = vmatpush3.bf16.msra.mxu0 %v2259_v63  ;;  %5324 = vmatprep.mubr.msk.bf16.mxu1 %vm615_vm3, %v4569_v5  ;;  %v1177_v17 = vrot.slane %v5907_v56, 5  ;;  %v1153_v38 = vsel %vm6144_vm7, %v1151_v32, %v1152_v55  ;;  %v1180_v3 = vrot.slane %v5913_v59, 5  ;;  %v4577_v21 = vcombine.low %v6036_v24, %v6041_v37  ;;  %v1074_v32 = vld [vmem:[%s5846_s9 + $0x54] sm:$0xe]  ;;  %v6378_v56 = vld [vmem:[%s5846_s9 + $0x28] sm:$0xf] }
  0x68   : > { %5350 = vmatprep.mubr.msk.bf16.mxu0 %vm615_vm3, %v4610_v39  ;;  %5563 = vmatprep.subr.msk.bf16.mxu0 %vm658_vm0, %v6227_v61  ;;  %v4603_v60 = vrot.slane %v1077_v11, 9  ;;  %v1160_v49 = vsel %vm6144_vm7, %v1158_v33, %v1159_v16  ;;  %v1163_v48 = vrot.slane %v6119_v34, 5  ;;  %v1170_v47 = vrot.slane %v5866_v13, 5  ;;  %v8034_v33 = vld [vmem:[#allocation8_spill] sm:$0xff] }
  0x69   : > { %v6263_v15 = vsel %vm6144_vm7, %v4602_v54, %v1177_v17  ;;  %v1179_v50 = vrot.slane %v1177_v17, 4  ;;  %v1184_v59 = vrot.slane %v5956_v42, 5  ;;  %v1187_v63 = vrot.slane %v5963_v52, 5  ;;  %v8035_v54 = vld [vmem:[#allocation5_spill] sm:$0xff] }
  0x6a   : > { %v4578_v4 = vcombine.low %v6069_v31, %v6081_v0  ;;  %v4604_v40 = vrot.slane %v1078_v22, 9  ;;  %v1191_v12 = vrot.slane %v6002_v35, 5  ;;  %v1194_v5 = vrot.slane %v6010_v45, 5  ;;  %v6386_v42 = vld [vmem:[%s5846_s9 + $0x20] sm:$0x1] }
  0x6b   : > { %v6273_v18 = vsel %vm6144_vm7, %v1179_v50, %v1180_v3  ;;  %v6282_v52 = vsel %vm6144_vm7, %v4603_v60, %v1184_v59  ;;  %v1186_v41 = vrot.slane %v1184_v59, 4  ;;  %v4605_v36 = vrot.slane %v1079_v46, 9  ;;  %v1075_v3 = vld [vmem:[%s5846_s9 + $0x60] sm:$0xe] }
  0x6c   : > { %v4617_v39 = vcombine.low %v6263_v15, %v6273_v18  ;;  %v6288_v10 = vsel %vm6144_vm7, %v4604_v40, %v1191_v12  ;;  %v1193_v45 = vrot.slane %v1191_v12, 4  ;;  %v1198_v14 = vrot.slane %v6041_v37, 5 }
  0x6d   : > { %v1201_v1 = vrot.slane %v8033_v58, 5  ;;  %v4606_v55 = vrot.slane %v1080_v20, 9  ;;  %v1205_v7 = vrot.slane %v6081_v0, 5  ;;  %v1208_v16 = vrot.slane %v8034_v33, 5 }
  0x6e   : > { %5325 = vmatmul.mubr.msk.bf16.gmra.mxu1 %vm615_vm3, %v4570_v62  ;;  %5351 = vmatmul.mubr.msk.bf16.gmra.mxu0 %vm615_vm3, %v4611_v44  ;;  %v6297_v62 = vsel %vm6144_vm7, %v1186_v41, %v1187_v63  ;;  %v6305_v44 = vsel %vm6144_vm7, %v1193_v45, %v1194_v5  ;;  %v4573_v17 = vcombine.low %v8035_v54, %v5866_v13  ;;  %v4600_v59 = vrot.slane %v1074_v32, 9  ;;  %v8036_v41 = vld [vmem:[#allocation6_spill] sm:$0xff] }
  0x6f   : > { %5328 = vmatprep.mubr.msk.bf16.mxu1 %vm615_vm3, %v4571_v6  ;;  %5354 = vmatprep.mubr.msk.bf16.mxu0 %vm615_vm3, %v4612_v27  ;;  %v4618_v11 = vcombine.low %v6282_v52, %v6297_v62  ;;  %v6309_v6 = vsel %vm6144_vm7, %v4605_v36, %v1198_v14  ;;  %v1200_v27 = vrot.slane %v1198_v14, 4  ;;  %v4619_v60 = vcombine.low %v6288_v10, %v6305_v44 }
  0x70   : > { %v6318_v22 = vsel %vm6144_vm7, %v4606_v55, %v1205_v7  ;;  %v1207_v50 = vrot.slane %v1205_v7, 4  ;;  %v4613_v46 = vcombine.low %v6243_v23, %v1153_v38  ;;  %v1166_v63 = vrot.slane %v6122_v43, 5  ;;  %v4696_v55 = vld [vmem:[%s5846_s9 + $0x18] sm:$0xf]  ;;  %v6357_v7 = vld [vmem:[%s5846_s9 + $0x1c] sm:$0xf] }
  0x71   : > { %v6324_v40 = vsel %vm6144_vm7, %v1200_v27, %v1201_v1  ;;  %v4614_v13 = vcombine.low %v6247_v8, %v1160_v49  ;;  %v1165_v12 = vrot.slane %v1163_v48, 4  ;;  %v1173_v36 = vrot.slane %v8036_v41, 5  ;;  %v4693_v8 = vld [vmem:[%s5846_s9 + $0xc] sm:$0xf]  ;;  %v6353_v1 = vld [vmem:[%s5846_s9 + $0x10] sm:$0xf] }
  0x72   : > { %v4620_v5 = vcombine.low %v6309_v6, %v6324_v40  ;;  %v6331_v20 = vsel %vm6144_vm7, %v1207_v50, %v1208_v16  ;;  %v4601_v23 = vrot.slane %v1075_v3, 9  ;;  %v1172_v38 = vrot.slane %v1170_v47, 4 }
  0x73   : > { %v4621_v43 = vcombine.low %v6318_v22, %v6331_v20  ;;  %v1164_v49 = vsel %vm6144_vm7, %v4600_v59, %v1163_v48  ;;  %v1167_v45 = vsel %vm6144_vm7, %v1165_v12, %v1166_v63  ;;  %v1840_v14 = vshll.u32 %v4693_v8, 16  ;;  %v6360_v48 = vld [vmem:[%s5846_s9 + $0x14] sm:$0x1] }
  0x74   : > { %v1171_v19 = vsel %vm6144_vm7, %v4601_v23, %v1170_v47  ;;  %v1174_v34 = vsel %vm6144_vm7, %v1172_v38, %v1173_v36  ;;  %v4615_v58 = vcombine.low %v1164_v49, %v1167_v45  ;;  %v1846_v47 = vshll.u32 %v6353_v1, 16  ;;  %v6392_v49 = vld [vmem:[%s5846_s9 + $0x34] sm:$0xf] }
  0x75   : > { %v4616_v32 = vcombine.low %v1171_v19, %v1174_v34  ;;  %v1842_v16 = vrot.slane %v1840_v14, 5  ;;  %v1850_v27 = vshrl.u32 %v6353_v1, 16  ;;  %v1861_v54 = vshrl.u32 %v4696_v55, 16 }
  0x76   : > { %5329 = vmatmul.mubr.msk.bf16.gmra.mxu1 %vm615_vm3, %v4572_v57  ;;  %5355 = vmatmul.mubr.msk.bf16.gmra.mxu0 %vm615_vm3, %v4613_v46  ;;  %v1837_v57 = vshrl.u32 %v4693_v8, 16  ;;  %v1870_v3 = vshll.u32 %v6357_v7, 16  ;;  %v1874_v50 = vshrl.u32 %v6357_v7, 16  ;;  %v6380_v46 = vrot.slane %v1846_v47, 5  ;;  %v4702_v8 = vld [vmem:[%s5846_s9 + $0x30] sm:$0xf] }
  0x77   : > { %5332 = vmatprep.mubr.msk.bf16.mxu1 %vm615_vm3, %v4573_v17  ;;  %5358 = vmatprep.mubr.msk.bf16.mxu0 %vm615_vm3, %v4614_v13  ;;  %v1864_v17 = vshll.u32 %v4696_v55, 16  ;;  %v1852_v59 = vrot.slane %v1850_v27, 4  ;;  %v1856_v63 = vshll.u32 %v6360_v48, 16  ;;  %v1863_v13 = vrot.slane %v1861_v54, 4  ;;  %v6415_v55 = vld [vmem:[%s5846_s9 + $0x2c] sm:$0x1] }
  0x78   : > { %v1839_v33 = vrot.slane %v1837_v57, 4  ;;  %v6383_v41 = vrot.slane %v1870_v3, 5  ;;  %v1876_v30 = vrot.slane %v1874_v50, 4  ;;  %v1888_v36 = vshll.u32 %v4699_v51, 16  ;;  %v4705_v57 = vld [vmem:[%s5846_s9 + $0x3c] sm:$0xf] }
  0x79   : > { %v1866_v12 = vrot.slane %v1864_v17, 5  ;;  %v1894_v23 = vshll.u32 %v6378_v56, 16  ;;  %v1898_v38 = vshrl.u32 %v6378_v56, 16  ;;  %v6396_v45 = vsel %vm658_vm0, %v6179_v2, 0  ;;  %v5640_v27 = vld [vmem:[%s5846_s9 + $0xc] sm:$0xff]  }
  0x7a   : > { %v1853_v19 = vor.u32 %v1852_v59, %v6380_v46  ;;  %v6399_v34 = vrot.slane %v1856_v63, 5  ;;  %v1877_v2 = vor.u32 %v1876_v30, %v6383_v41  ;;  %v1890_v35 = vrot.slane %v1888_v36, 5  ;;  %v6443_v63 = vld [vmem:[%s5846_s9 + $0x38] sm:$0x1]  ;;  %v6446_v30 = vld [vmem:[%s5846_s9 + $0x44] sm:$0x1] }
  0x7b   : > { %v1900_v15 = vrot.slane %v1898_v38, 4  ;;  %v1909_v18 = vshrl.u32 %v4702_v8, 16  ;;  %v1922_v24 = vshrl.u32 %v6392_v49, 16  ;;  %v1933_v37 = vshrl.u32 %v4705_v57, 16 }
  0x7c   : > { %v1854_v52 = vrot.slane %v1853_v19, 4  ;;  %v1878_v3 = vrot.slane %v1877_v2, 4  ;;  %v1904_v50 = vshll.u32 %v6415_v55, 16  ;;  %v5641_v2 = vld [vmem:[%s5846_s9 + $0x18] sm:$0xff]  }
  0x7e   : > { %5333 = vmatmul.mubr.msk.bf16.gmra.mxu1 %vm615_vm3, %v4574_v53  ;;  %5359 = vmatmul.mubr.msk.bf16.gmra.mxu0 %vm615_vm3, %v4615_v58  ;;  %v1843_v53 = vor.u32 %v1842_v16, %v1839_v33  ;;  %v1867_v58 = vor.u32 %v1866_v12, %v1863_v13  ;;  %v6418_v33 = vld [vmem:[%s5846_s9 + $0x40] sm:$0xf]  ;;  %v1918_v16 = vshll.u32 %v6392_v49, 16  ;;  %v1911_v13 = vrot.slane %v1909_v18, 4  ;;  %v5642_v18 = vld [vmem:[%s5846_s9 + $0x24] sm:$0xff]  }
  0x7f   : > { %5336 = vmatprep.mubr.msk.bf16.mxu1 %vm615_vm3, %v4575_v26  ;;  %5362 = vmatprep.mubr.msk.bf16.mxu0 %vm615_vm3, %v4616_v32  ;;  %v1885_v26 = vshrl.u32 %v4699_v51, 16  ;;  %v1880_v32 = vshll.u32 %v6386_v42, 16  ;;  %v1946_v47 = vshrl.u32 %v6418_v33, 16  ;;  %v4708_v51 = vld [vmem:[%s5846_s9 + $0x48] sm:$0xf]  ;;  %v1859_v31 = vsel %vm5884_vm4, %v1854_v52, %v6399_v34 }
  0x80   : > { %v6410_v14 = vrot.slane %v1843_v53, 4  ;;  %v1868_v17 = vrot.slane %v1867_v58, 4  ;;  %v6451_v36 = vrot.slane %v1918_v16, 5  ;;  %v1906_v10 = vrot.slane %v1904_v50, 5 }
  0x81   : > { %v1887_v25 = vrot.slane %v1885_v26, 4  ;;  %v1882_v62 = vrot.slane %v1880_v32, 5  ;;  %v6449_v26 = vld [vmem:[%s5846_s9 + $0x4c] sm:$0xf]  ;;  %v1948_v19 = vrot.slane %v1946_v47, 4  ;;  %v1928_v58 = vshll.u32 %v6443_v63, 16 }
  0x82   : > { %v1849_v54 = vsel %vm5884_vm4, %v6410_v14, %v6380_v46  ;;  %v1935_v46 = vrot.slane %v1933_v37, 4  ;;  %v1960_v14 = vshll.u32 %v4708_v51, 16  ;;  %v1873_v0 = vsel %vm5884_vm4, %v1868_v17, %v6383_v41  ;;  %v6489_v37 = vld [vmem:[%s5846_s9 + $0x50] sm:$0x1] }
  0x83   : > { %v1891_v53 = vor.u32 %v1890_v35, %v1887_v25  ;;  %v1966_v6 = vshll.u32 %v6449_v26, 16  ;;  %v1970_v40 = vshrl.u32 %v6449_v26, 16  ;;  %v1952_v41 = vshll.u32 %v6446_v30, 16 }
  0x85   : > { %v1892_v44 = vrot.slane %v1891_v53, 4  ;;  %v1972_v47 = vrot.slane %v1970_v40, 4  ;;  %v1954_v50 = vrot.slane %v1952_v41, 5 }
  0x86   : > { %5337 = vmatmul.mubr.msk.bf16.gmra.mxu1 %vm615_vm3, %v4576_v28  ;;  %5363 = vmatmul.mubr.msk.bf16.gmra.mxu0 %vm615_vm3, %v4617_v39  ;;  %v6428_v28 = vrot.slane %v1894_v23, 5  ;;  %v1912_v39 = vshll.u32 %v4702_v8, 16  ;;  %v1924_v23 = vrot.slane %v1922_v24, 4  ;;  %v6486_v24 = vsel %vm658_vm0, %v6227_v61, 0 }
  0x87   : > { %5340 = vmatprep.mubr.msk.bf16.mxu1 %vm615_vm3, %v4577_v21  ;;  %5366 = vmatprep.mubr.msk.bf16.mxu0 %vm615_vm3, %v4618_v11  ;;  %v1936_v21 = vshll.u32 %v4705_v57, 16  ;;  %v1942_v11 = vshll.u32 %v6418_v33, 16  ;;  %v1957_v57 = vshrl.u32 %v4708_v51, 16  ;;  %v6506_v51 = vld [vmem:[%s8014_s1 + $0xe] sm:$0x3] }
  0x88   : > { %v1901_v59 = vor.u32 %v1900_v15, %v6428_v28  ;;  %v1914_v12 = vrot.slane %v1912_v39, 5  ;;  %v1925_v34 = vor.u32 %v1924_v23, %v6451_v36  ;;  %v1962_v15 = vrot.slane %v1960_v14, 5 }
  0x89   : > { %v1938_v38 = vrot.slane %v1936_v21, 5  ;;  %v6461_v8 = vrot.slane %v1942_v11, 5  ;;  %v1959_v35 = vrot.slane %v1957_v57, 4  ;;  %v4736_v39 = vcombine.low %v1849_v54, %v1859_v31  ;;  %v4711_v21 = vld [vmem:[%s5846_s9 + $0x54] sm:$0xf] }
  0x8a   : > { %v1897_v52 = vsel %vm5884_vm4, %v1892_v44, %v6428_v28  ;;  %v6497_v11 = vrot.slane %v1966_v6, 5  ;;  %v4714_v54 = vld [vmem:[%s5846_s9 + $0x60] sm:$0xf]  ;;  %v1926_v61 = vrot.slane %v1925_v34, 4  ;;  %v1981_v23 = vshrl.u32 %v4711_v21, 16 }
  0x8b   : > { %v1939_v32 = vor.u32 %v1938_v38, %v1935_v46  ;;  %v1949_v25 = vor.u32 %v1948_v19, %v6461_v8  ;;  %v1984_v22 = vshll.u32 %v4711_v21, 16  ;;  %v2005_v19 = vshrl.u32 %v4714_v54, 16  ;;  %v6531_v31 = vld [vmem:[%s5846_s9 + $0x5c] sm:$0x1] }
  0x8c   : > { %v1973_v38 = vor.u32 %v1972_v47, %v6497_v11  ;;  %v2008_v57 = vshll.u32 %v4714_v54, 16  ;;  %v5644_v44 = vld [vmem:[%s5846_s9 + $0x3c] sm:$0xff]   ;;  %v1983_v34 = vrot.slane %v1981_v23, 4  ;;  %v6561_v47 = vld [vmem:[%s8014_s1 + $0x10] sm:$0x3] }
  0x8d   : > { %v1940_v28 = vrot.slane %v1939_v32, 4  ;;  %v1950_v53 = vrot.slane %v1949_v25, 4  ;;  %v6550_v32 = vld [vmem:[%s5846_s9 + $0x70] sm:$0xf]  ;;  %v6578_v23 = vld [vmem:[%s5846_s9 + $0x7c] sm:$0xf] }
  0x8e   : > { %5341 = vmatmul.mubr.msk.bf16.gmra.mxu1 %vm615_vm3, %v4578_v4  ;;  %5367 = vmatmul.mubr.msk.bf16.gmra.mxu0 %vm615_vm3, %v4619_v60  ;;  %v1883_v4 = vsel %vm5884_vm4, %v1878_v3, %v1882_v62  ;;  %v1902_v60 = vrot.slane %v1901_v59, 4  ;;  %v1930_v3 = vrot.slane %v1928_v58, 5  ;;  %v1963_v59 = vor.u32 %v1962_v15, %v1959_v35  ;;  %v6554_v15 = vld [vmem:[%s5846_s9 + $0x68] sm:$0x1] }
  0x8f   : > { %5370 = vmatprep.mubr.msk.bf16.mxu0 %vm615_vm3, %v4620_v5  ;;  %5376 = vmatprep.mubr.msk.bf16.mxu1 %vm615_vm3, %v5640_v27  ;;  %v1915_v5 = vor.u32 %v1914_v12, %v1911_v13  ;;  %v4737_v16 = vcombine.low %v1873_v0, %v1883_v4  ;;  %v6500_v27 = vld [vmem:[%s5846_s9 + $0x58] sm:$0xf]  ;;  %v1976_v13 = vshll.u32 %v6489_v37, 16  ;;  %v6515_v12 = vld [vmem:[%s5846_s9 + $0x64] sm:$0xf]  ;;  %v1986_v58 = vrot.slane %v1984_v22, 5 }
  0x90   : > { %v1907_v62 = vsel %vm5884_vm4, %v1902_v60, %v1906_v10  ;;  %v1990_v20 = vshll.u32 %v6500_v27, 16  ;;  %v1931_v14 = vsel %vm5884_vm4, %v1926_v61, %v1930_v3  ;;  %v2014_v0 = vshll.u32 %v6515_v12, 16  ;;  %v5643_v10 = vld [vmem:[%s5846_s9 + $0x30] sm:$0xff]   ;;  %v5645_v22 = vld [vmem:[%s5846_s9 + $0x48] sm:$0xff]  }
  0x91   : > { %v1916_v17 = vrot.slane %v1915_v5, 4  ;;  %v4738_v46 = vcombine.low %v1897_v52, %v1907_v62  ;;  %v2018_v4 = vshrl.u32 %v6515_v12, 16  ;;  %v1945_v60 = vsel %vm5884_vm4, %v1940_v28, %v6461_v8  ;;  %v4717_v5 = vld [vmem:[%s5846_s9 + $0x6c] sm:$0xf] }
  0x92   : > { %v6542_v6 = vrot.slane %v1963_v59, 4  ;;  %v6544_v40 = vrot.slane %v1976_v13, 5  ;;  %v6547_v41 = vrot.slane %v1990_v20, 5  ;;  %v1974_v25 = vrot.slane %v1973_v38, 4  ;;  %v5646_v20 = vld [vmem:[%s5846_s9 + $0x54] sm:$0xff]  }
  0x93   : > { %v2000_v35 = vshll.u32 %v6531_v31, 16  ;;  %v2007_v8 = vrot.slane %v2005_v19, 4  ;;  %v2020_v21 = vrot.slane %v2018_v4, 4  ;;  %v2029_v52 = vshrl.u32 %v4717_v5, 16  ;;  %v4723_v19 = vld [vmem:[%s5846_s9 + $0x84] sm:$0xf] }
  0x94   : > { %v2032_v62 = vshll.u32 %v4717_v5, 16  ;;  %v2042_v61 = vshrl.u32 %v6550_v32, 16  ;;  %v6592_v4 = vld [vmem:[%s5846_s9 + $0x88] sm:$0xf] }
  0x95   : > { %v2002_v59 = vrot.slane %v2000_v35, 5  ;;  %v2086_v35 = vshll.u32 %v6592_v4, 16 }
  0x96   : > { %5371 = vmatmul.mubr.msk.bf16.gmra.mxu0 %vm615_vm3, %v4621_v43  ;;  %5377 = vmatmul.mubr.msk.bf16.vlgmr.msra.gmra.mxu1 %vm615_vm3, %v5641_v2  ;;  %v1994_v43 = vshrl.u32 %v6500_v27, 16  ;;  %v2034_v38 = vrot.slane %v2032_v62, 5 }
  0x97   : > { %5435 = vmatpush3.bf16.msra.mxu1 %v6396_v45  ;;  %5380 = vmatprep.mubr.msk.bf16.mxu1 %vm615_vm3, %v5642_v18  ;;  %v1921_v45 = vsel %vm5884_vm4, %v1916_v17, %v6451_v36  ;;  %v1955_v36 = vsel %vm5884_vm4, %v1950_v53, %v1954_v50  ;;  %v2010_v18 = vrot.slane %v2008_v57, 5  ;;  %v2038_v17 = vshll.u32 %v6550_v32, 16  ;;  %v4720_v53 = vld [vmem:[%s5846_s9 + $0x78] sm:$0xf] }
  0x98   : > { %5406 = vmatprep.mubr.msk.bf16.mxu0 %vm615_vm3, %v4736_v39  ;;  %5564 = vmatprep.subr.msk.bf16.mxu1 %vm658_vm0, %v6506_v51  ;;  %v1996_v2 = vrot.slane %v1994_v43, 4  ;;  %v6556_v39 = vrot.slane %v2014_v0, 5  ;;  %v4739_v54 = vcombine.low %v1921_v45, %v1931_v14  ;;  %v4740_v3 = vcombine.low %v1945_v60, %v1955_v36  ;;  %v6595_v60 = vld [vmem:[%s5846_s9 + $0x74] sm:$0x1] }
  0x99   : > { %v1987_v50 = vor.u32 %v1986_v58, %v1983_v34  ;;  %v2011_v13 = vor.u32 %v2010_v18, %v2007_v8  ;;  %v1979_v43 = vsel %vm5884_vm4, %v1974_v25, %v6544_v40  ;;  %v6589_v57 = vrot.slane %v2038_v17, 5 }
  0x9a   : > { %v1997_v28 = vor.u32 %v1996_v2, %v6547_v41  ;;  %v2044_v45 = vrot.slane %v2042_v61, 4  ;;  %v2053_v14 = vshrl.u32 %v4720_v53, 16  ;;  %v2056_v0 = vshll.u32 %v4720_v53, 16 }
  0x9b   : > { %v2062_v36 = vshll.u32 %v6578_v23, 16  ;;  %v2012_v40 = vrot.slane %v2011_v13, 4  ;;  %v2077_v34 = vshrl.u32 %v4723_v19, 16  ;;  %v2080_v58 = vshll.u32 %v4723_v19, 16  ;;  %v6621_v13 = vld [vmem:[%s5846_s9 + $0x8c] sm:$0x1] }
  0x9c   : > { %v2090_v8 = vshrl.u32 %v6592_v4, 16  ;;  %v2045_v18 = vor.u32 %v2044_v45, %v6589_v57  ;;  %v2058_v62 = vrot.slane %v2056_v0, 5  ;;  %v6631_v45 = vld [vmem:[%s5846_s9 + $0x94] sm:$0xf] }
  0x9e   : > { %5381 = vmatmul.mubr.msk.bf16.gmra.mxu1 %vm615_vm3, %v5643_v10  ;;  %5407 = vmatmul.mubr.msk.bf16.vlgmr.msra.gmra.mxu0 %vm615_vm3, %v4737_v16  ;;  %v1969_v16 = vsel %vm5884_vm4, %v6542_v6, %v6497_v11  ;;  %v2031_v11 = vrot.slane %v2029_v52, 4  ;;  %v1988_v10 = vrot.slane %v1987_v50, 4  ;;  %v2066_v6 = vshrl.u32 %v6578_v23, 16  ;;  %v6611_v50 = vld [vmem:[%s5846_s9 + $0x80] sm:$0x1] }
  0x9f   : > { %5465 = vmatpush3.bf16.msra.mxu0 %v6486_v24  ;;  %5384 = vmatprep.mubr.msk.bf16.mxu1 %vm615_vm3, %v5644_v44  ;;  %v2024_v24 = vshll.u32 %v6554_v15, 16  ;;  %v1998_v44 = vrot.slane %v1997_v28, 4  ;;  %v2055_v52 = vrot.slane %v2053_v14, 4  ;;  %v4741_v17 = vcombine.low %v1969_v16, %v1979_v43  ;;  %v5648_v14 = vld [vmem:[%s5846_s9 + $0x6c] sm:$0xff]  }
  0xa0   : > { %5410 = vmatprep.mubr.msk.bf16.mxu0 %vm615_vm3, %v4738_v46  ;;  %5565 = vmatprep.subr.msk.bf16.mxu0 %vm658_vm0, %v6561_v47  ;;  %v2021_v46 = vor.u32 %v2020_v21, %v6556_v39  ;;  %v2035_v25 = vor.u32 %v2034_v38, %v2031_v11  ;;  %v2048_v21 = vshll.u32 %v6595_v60, 16  ;;  %v1993_v61 = vsel %vm5884_vm4, %v1988_v10, %v6547_v41  ;;  %v5647_v11 = vld [vmem:[%s5846_s9 + $0x60] sm:$0xff]  }
  0xa1   : > { %v2026_v5 = vrot.slane %v2024_v24, 5  ;;  %v2068_v28 = vrot.slane %v2066_v6, 4  ;;  %v2003_v53 = vsel %vm5884_vm4, %v1998_v44, %v2002_v59  ;;  %v2079_v16 = vrot.slane %v2077_v34, 4 }
  0xa2   : > { %v2022_v2 = vrot.slane %v2021_v46, 4  ;;  %v2082_v24 = vrot.slane %v2080_v58, 5  ;;  %v2092_v43 = vrot.slane %v2090_v8, 4  ;;  %v4726_v46 = vld [vmem:[%s5846_s9 + $0x90] sm:$0xf]  ;;  %v2046_v59 = vrot.slane %v2045_v18, 4 }
  0xa3   : > { %v2050_v38 = vrot.slane %v2048_v21, 5  ;;  %v2059_v19 = vor.u32 %v2058_v62, %v2055_v52  ;;  %v4742_v0 = vcombine.low %v1993_v61, %v2003_v53  ;;  %v2096_v44 = vshll.u32 %v6621_v13, 16  ;;  %v4732_v62 = vld [vmem:[%s5846_s9 + $0xa8] sm:$0xf] }
  0xa4   : > { %v2027_v41 = vsel %vm5884_vm4, %v2022_v2, %v2026_v5  ;;  %v2083_v6 = vor.u32 %v2082_v24, %v2079_v16  ;;  %v4729_v5 = vld [vmem:[%s5846_s9 + $0x9c] sm:$0xf]  ;;  %v2104_v58 = vshll.u32 %v4726_v46, 16  ;;  %v2110_v2 = vshll.u32 %v6631_v45, 16 }
  0xa5   : > { %v2051_v18 = vsel %vm5884_vm4, %v2046_v59, %v2050_v38  ;;  %v2060_v21 = vrot.slane %v2059_v19, 4  ;;  %v2125_v53 = vshrl.u32 %v4729_v5, 16  ;;  %v5649_v38 = vld [vmem:[%s5846_s9 + $0x78] sm:$0xff]   ;;  %v2149_v19 = vshrl.u32 %v4732_v62, 16 }
  0xa6   : > { %5385 = vmatmul.mubr.msk.bf16.gmra.mxu1 %vm615_vm3, %v5645_v22  ;;  %5411 = vmatmul.mubr.msk.bf16.gmra.mxu0 %vm615_vm3, %v4739_v54  ;;  %v6613_v54 = vrot.slane %v2062_v36, 5  ;;  %v2036_v22 = vrot.slane %v2035_v25, 4  ;;  %v2114_v25 = vshrl.u32 %v6631_v45, 16 }
  0xa7   : > { %5388 = vmatprep.mubr.msk.bf16.mxu1 %vm615_vm3, %v5646_v20  ;;  %5414 = vmatprep.mubr.msk.bf16.mxu0 %vm615_vm3, %v4740_v3  ;;  %v2017_v3 = vsel %vm5884_vm4, %v2012_v40, %v6556_v39  ;;  %v6625_v20 = vrot.slane %v2086_v35, 5  ;;  %v2072_v39 = vshll.u32 %v6611_v50, 16  ;;  %v2101_v40 = vshrl.u32 %v4726_v46, 16  ;;  %v6641_v35 = vld [vmem:[%s5846_s9 + $0xa0] sm:$0xf] }
  0xa8   : > { %v2069_v10 = vor.u32 %v2068_v28, %v6613_v54  ;;  %v4743_v36 = vcombine.low %v2017_v3, %v2027_v41  ;;  %v2041_v8 = vsel %vm5884_vm4, %v2036_v22, %v6589_v57  ;;  %v2098_v28 = vrot.slane %v2096_v44, 5  ;;  %v6654_v3 = vld [vmem:[%s5846_s9 + $0xac] sm:$0xf] }
  0xa9   : > { %v2093_v34 = vor.u32 %v2092_v43, %v6625_v20  ;;  %v2074_v52 = vrot.slane %v2072_v39, 5  ;;  %v2084_v57 = vrot.slane %v2083_v6, 4  ;;  %v2103_v16 = vrot.slane %v2101_v40, 4  ;;  %v6659_v43 = vld [vmem:[%s5846_s9 + $0x98] sm:$0x1] }
  0xaa   : > { %v2070_v61 = vrot.slane %v2069_v10, 4  ;;  %v2134_v24 = vshll.u32 %v6641_v35, 16  ;;  %v2138_v41 = vshrl.u32 %v6641_v35, 16  ;;  %v2106_v46 = vrot.slane %v2104_v58, 5  ;;  %v5650_v10 = vld [vmem:[%s5846_s9 + $0x84] sm:$0xff]  }
  0xab   : > { %v2094_v22 = vrot.slane %v2093_v34, 4  ;;  %v2116_v59 = vrot.slane %v2114_v25, 4  ;;  %v2152_v39 = vshll.u32 %v4732_v62, 16  ;;  %v4744_v44 = vcombine.low %v2041_v8, %v2051_v18 }
  0xac   : > { %v2065_v6 = vsel %vm5884_vm4, %v2060_v21, %v6613_v54  ;;  %v2127_v40 = vrot.slane %v2125_v53, 4  ;;  %v2075_v34 = vsel %vm5884_vm4, %v2070_v61, %v2074_v52  ;;  %v2120_v58 = vshll.u32 %v6659_v43, 16  ;;  %v6682_v21 = vld [vmem:[%s5846_s9 + $0xa4] sm:$0x1] }
  0xad   : > { %v2140_v25 = vrot.slane %v2138_v41, 4  ;;  %v2089_v62 = vsel %vm5884_vm4, %v2084_v57, %v6625_v20  ;;  %v2099_v8 = vsel %vm5884_vm4, %v2094_v22, %v2098_v28  ;;  %v2107_v18 = vor.u32 %v2106_v46, %v2103_v16  ;;  %v6692_v57 = vld [vmem:[%s5846_s9 + $0xb0] sm:$0x1]  ;;  %v4764_v41 = vld [vmem:[%s5846_s9 + $0xc] sm:$0xe] }
  0xae   : > { %5389 = vmatmul.mubr.msk.bf16.gmra.mxu1 %vm615_vm3, %v5647_v11  ;;  %5415 = vmatmul.mubr.msk.bf16.gmra.mxu0 %vm615_vm3, %v4741_v17  ;;  %v2128_v17 = vshll.u32 %v4729_v5, 16  ;;  %v6661_v11 = vrot.slane %v2110_v2, 5  ;;  %v6673_v2 = vrot.slane %v2134_v24, 5  ;;  %v2151_v52 = vrot.slane %v2149_v19, 4  ;;  %v5651_v19 = vld [vmem:[%s5846_s9 + $0x90] sm:$0xff]  }
  0xaf   : > { %5392 = vmatprep.mubr.msk.bf16.mxu1 %vm615_vm3, %v5648_v14  ;;  %5418 = vmatprep.mubr.msk.bf16.mxu0 %vm615_vm3, %v4742_v0  ;;  %v2158_v14 = vshll.u32 %v6654_v3, 16  ;;  %v2162_v0 = vshrl.u32 %v6654_v3, 16  ;;  %v2154_v61 = vrot.slane %v2152_v39, 5  ;;  %v2492_v28 = vrot.slane %v6353_v1, 5 }
  0xb0   : > { %v2130_v5 = vrot.slane %v2128_v17, 5  ;;  %v2117_v54 = vor.u32 %v2116_v59, %v6661_v11  ;;  %v4745_v16 = vcombine.low %v2065_v6, %v2075_v34  ;;  %v2144_v24 = vshll.u32 %v6682_v21, 16 }
  0xb1   : > { %v6686_v53 = vrot.slane %v2158_v14, 5  ;;  %v2164_v17 = vrot.slane %v2162_v0, 4  ;;  %v4746_v22 = vcombine.low %v2089_v62, %v2099_v8  ;;  %v2108_v46 = vrot.slane %v2107_v18, 4  ;;  %v4765_v0 = vld [vmem:[%s5846_s9 + $0x18] sm:$0xe] }
  0xb2   : > { %v2131_v20 = vor.u32 %v2130_v5, %v2127_v40  ;;  %v2118_v59 = vrot.slane %v2117_v54, 4  ;;  %v2155_v39 = vor.u32 %v2154_v61, %v2151_v52  ;;  %v2168_v1 = vshll.u32 %v6692_v57, 16  ;;  %v4766_v52 = vld [vmem:[%s5846_s9 + $0x24] sm:$0xe] }
  0xb3   : > { %v2165_v14 = vor.u32 %v2164_v17, %v6686_v53  ;;  %v4778_v40 = vrot.slane %v4764_v41, 9  ;;  %v2494_v5 = vrot.slane %v2492_v28, 4  ;;  %v2495_v34 = vrot.slane %v6360_v48, 5 }
  0xb4   : > { %v2132_v6 = vrot.slane %v2131_v20, 4  ;;  %v2146_v62 = vrot.slane %v2144_v24, 5  ;;  %v2113_v8 = vsel %vm5884_vm4, %v2108_v46, %v6661_v11  ;;  %v4779_v54 = vrot.slane %v4765_v0, 9 }
  0xb5   : > { %v2156_v48 = vrot.slane %v2155_v39, 4  ;;  %v2166_v61 = vrot.slane %v2165_v14, 4  ;;  %v2496_v20 = vsel %vm6144_vm7, %v2494_v5, %v2495_v34  ;;  %v4780_v41 = vrot.slane %v4766_v52, 9  ;;  %v4772_v52 = vld [vmem:[%s5846_s9 + $0x6c] sm:$0xe] }
  0xb6   : > { %5393 = vmatmul.mubr.msk.bf16.gmra.mxu1 %vm615_vm3, %v5649_v38  ;;  %5419 = vmatmul.mubr.msk.bf16.gmra.mxu0 %vm615_vm3, %v4743_v36  ;;  %v2141_v36 = vor.u32 %v2140_v25, %v6673_v2  ;;  %v2122_v38 = vrot.slane %v2120_v58, 5  ;;  %v2506_v58 = vrot.slane %v6378_v56, 5  ;;  %v2170_v56 = vrot.slane %v2168_v1, 5 }
  0xb7   : > { %5396 = vmatprep.mubr.msk.bf16.mxu1 %vm615_vm3, %v5650_v10  ;;  %5422 = vmatprep.mubr.msk.bf16.mxu0 %vm615_vm3, %v4744_v44  ;;  %v2499_v10 = vrot.slane %v6357_v7, 5  ;;  %v5652_v44 = vld [vmem:[%s5846_s9 + $0x9c] sm:$0xff]   ;;  %v2502_v7 = vrot.slane %v6386_v42, 5  ;;  %v2137_v11 = vsel %vm5884_vm4, %v2132_v6, %v6673_v2  ;;  %v2493_v42 = vsel %vm6144_vm7, %v4778_v40, %v2492_v28  ;;  %v5653_v28 = vld [vmem:[%s5846_s9 + $0xa8] sm:$0xff]  }
  0xb8   : > { %v2142_v25 = vrot.slane %v2141_v36, 4  ;;  %v2123_v18 = vsel %vm5884_vm4, %v2118_v59, %v2122_v38  ;;  %v2513_v36 = vrot.slane %v6392_v49, 5  ;;  %v2508_v46 = vrot.slane %v2506_v58, 4 }
  0xb9   : > { %v2501_v17 = vrot.slane %v2499_v10, 4  ;;  %v4747_v59 = vcombine.low %v2113_v8, %v2123_v18  ;;  %v6730_v2 = vsel %vm6144_vm7, %v4779_v54, %v2499_v10  ;;  %v2161_v38 = vsel %vm5884_vm4, %v2156_v48, %v6686_v53  ;;  %v4768_v10 = vld [vmem:[%s5846_s9 + $0x3c] sm:$0xe]  ;;  %v4771_v18 = vld [vmem:[%s5846_s9 + $0x60] sm:$0xe] }
  0xba   : > { %v2147_v24 = vsel %vm5884_vm4, %v2142_v25, %v2146_v62  ;;  %v2171_v49 = vsel %vm5884_vm4, %v2166_v61, %v2170_v56  ;;  %v4793_v14 = vcombine.low %v2493_v42, %v2496_v20  ;;  %v2515_v1 = vrot.slane %v2513_v36, 4  ;;  %v4769_v25 = vld [vmem:[%s5846_s9 + $0x48] sm:$0xe]  ;;  %v4770_v62 = vld [vmem:[%s5846_s9 + $0x54] sm:$0xe] }
  0xbb   : > { %v2516_v0 = vrot.slane %v6443_v63, 5  ;;  %v2520_v6 = vrot.slane %v6418_v33, 5  ;;  %v4749_v40 = vcombine.low %v2161_v38, %v2171_v49  ;;  %v3637_v34 = vsel %vm658_vm0, %v6506_v51, 0  ;;  %v4775_v38 = vld [vmem:[%s5846_s9 + $0x90] sm:$0xe] }
  0xbc   : > { %v2527_v63 = vrot.slane %v6449_v26, 5  ;;  %v4782_v33 = vrot.slane %v4768_v10, 9  ;;  %v2534_v8 = vrot.slane %v6500_v27, 5  ;;  %v2541_v51 = vrot.slane %v6515_v12, 5  ;;  %v4773_v12 = vld [vmem:[%s5846_s9 + $0x78] sm:$0xe] }
  0xbd   : > { %v6766_v54 = vsel %vm6144_vm7, %v2515_v1, %v2516_v0  ;;  %v2548_v48 = vrot.slane %v6550_v32, 5  ;;  %v2522_v61 = vrot.slane %v2520_v6, 4  ;;  %v4783_v56 = vrot.slane %v4769_v25, 9  ;;  %v6839_v25 = vld [vmem:[%s5846_s9 + $0x9c] sm:$0xe] }
  0xbe   : > { %5397 = vmatmul.mubr.msk.bf16.gmra.mxu1 %vm615_vm3, %v5651_v19  ;;  %5423 = vmatmul.mubr.msk.bf16.gmra.mxu0 %vm615_vm3, %v4745_v16  ;;  %v4767_v16 = vld [vmem:[%s5846_s9 + $0x30] sm:$0xe]  ;;  %v2503_v19 = vsel %vm6144_vm7, %v2501_v17, %v2502_v7  ;;  %v2523_v7 = vrot.slane %v6446_v30, 5  ;;  %v2530_v27 = vrot.slane %v6489_v37, 5  ;;  %v2555_v17 = vrot.slane %v6578_v23, 5 }
  0xbf   : > { %5400 = vmatprep.mubr.msk.bf16.mxu1 %vm615_vm3, %v5652_v44  ;;  %5426 = vmatprep.mubr.msk.bf16.mxu0 %vm615_vm3, %v4746_v22  ;;  %v2509_v22 = vrot.slane %v6415_v55, 5  ;;  %v4781_v39 = vrot.slane %v4767_v16, 9  ;;  %v4748_v55 = vcombine.low %v2137_v11, %v2147_v24  ;;  %v2507_v44 = vsel %vm6144_vm7, %v4780_v41, %v2506_v58  ;;  %v4774_v23 = vld [vmem:[%s5846_s9 + $0x84] sm:$0xe] }
  0xc0   : > { %v4794_v5 = vcombine.low %v6730_v2, %v2503_v19  ;;  %v2529_v11 = vrot.slane %v2527_v63, 4  ;;  %v4784_v42 = vrot.slane %v4770_v62, 9  ;;  %v2537_v20 = vrot.slane %v6531_v31, 5 }
  0xc1   : > { %v2510_v53 = vsel %vm6144_vm7, %v2508_v46, %v2509_v22  ;;  %v6757_v58 = vsel %vm6144_vm7, %v4781_v39, %v2513_v36  ;;  %v4785_v16 = vrot.slane %v4771_v18, 9  ;;  %v2536_v36 = vrot.slane %v2534_v8, 4 }
  0xc2   : > { %v4795_v26 = vcombine.low %v2507_v44, %v2510_v53  ;;  %v2543_v30 = vrot.slane %v2541_v51, 4  ;;  %v2544_v24 = vrot.slane %v6554_v15, 5  ;;  %v4786_v32 = vrot.slane %v4772_v52, 9  ;;  %v5656_v52 = vld [vmem:[%s5846_s9 + $0x30] sm:$0xff]  }
  0xc3   : > { %v6778_v41 = vsel %vm6144_vm7, %v4782_v33, %v2520_v6  ;;  %v2550_v37 = vrot.slane %v2548_v48, 4  ;;  %v2551_v46 = vrot.slane %v6595_v60, 5  ;;  %v4787_v22 = vrot.slane %v4773_v12, 9  ;;  %v4884_v12 = vld [vmem:[%s5846_s9 + $0x30] sm:$0xf] }
  0xc4   : > { %v6785_v31 = vsel %vm6144_vm7, %v4783_v56, %v2527_v63  ;;  %v2557_v2 = vrot.slane %v2555_v17, 4  ;;  %v2562_v15 = vrot.slane %v6592_v4, 5  ;;  %v2524_v49 = vsel %vm6144_vm7, %v2522_v61, %v2523_v7  ;;  %v5655_v63 = vld [vmem:[%s5846_s9 + $0x24] sm:$0xff]  }
  0xc5   : > { %v6794_v19 = vsel %vm6144_vm7, %v2529_v11, %v2530_v27  ;;  %v6798_v60 = vsel %vm6144_vm7, %v4784_v42, %v2534_v8  ;;  %v6802_v39 = vsel %vm6144_vm7, %v4785_v16, %v2541_v51  ;;  %v6808_v4 = vsel %vm6144_vm7, %v2536_v36, %v2537_v20  ;;  %v6851_v8 = vld [vmem:[%s5846_s9 + $0x1c] sm:$0xf]  ;;  %v6867_v7 = vld [vmem:[%s5846_s9 + $0x28] sm:$0xf]  ;;  %v6880_v16 = vld [vmem:[%s5846_s9 + $0x34] sm:$0xf] }
  0xc6   : > { %5401 = vmatmul.mubr.msk.bf16.gmra.mxu1 %vm615_vm3, %v5653_v28  ;;  %5427 = vmatmul.mubr.msk.bf16.gmra.mxu0 %vm615_vm3, %v4747_v59  ;;  %v5654_v59 = vld [vmem:[%s5846_s9 + $0x18] sm:$0xff]   ;;  %v2558_v28 = vrot.slane %v6611_v50, 5  ;;  %v6812_v50 = vsel %vm6144_vm7, %v2543_v30, %v2544_v24  ;;  %v6825_v1 = vsel %vm6144_vm7, %v4787_v22, %v2555_v17  ;;  %v4788_v0 = vrot.slane %v4774_v23, 9 }
  0xc7   : > { %5430 = vmatprep.mubr.msk.bf16.mxu0 %vm615_vm3, %v4748_v55  ;;  %5436 = vmatprep.mubr.msk.bf16.mxu1 %vm615_vm3, %v4793_v14  ;;  %v6816_v55 = vsel %vm6144_vm7, %v4786_v32, %v2548_v48  ;;  %v6821_v14 = vsel %vm6144_vm7, %v2550_v37, %v2551_v46  ;;  %v4789_v10 = vrot.slane %v4775_v38, 9  ;;  %v2564_v53 = vrot.slane %v2562_v15, 4  ;;  %v5657_v22 = vld [vmem:[%s5846_s9 + $0x3c] sm:$0xff]  }
  0xc8   : > { %v6830_v44 = vsel %vm6144_vm7, %v2557_v2, %v2558_v28  ;;  %v2565_v6 = vrot.slane %v6621_v13, 5  ;;  %v4797_v62 = vcombine.low %v6778_v41, %v2524_v49  ;;  %v4798_v33 = vcombine.low %v6785_v31, %v6794_v19  ;;  %v4777_v2 = vld [vmem:[%s5846_s9 + $0xa8] sm:$0xe]  ;;  %v6902_v38 = vld [vmem:[%s5846_s9 + $0x20] sm:$0x1] }
  0xc9   : > { %v4799_v13 = vcombine.low %v6798_v60, %v6808_v4  ;;  %v4802_v18 = vcombine.low %v6825_v1, %v6830_v44  ;;  %v6859_v51 = vsel %vm6144_vm7, %v4788_v0, %v2562_v15  ;;  %v2572_v56 = vrot.slane %v6659_v43, 5  ;;  %v5658_v15 = vld [vmem:[%s5846_s9 + $0x48] sm:$0xff]   ;;  %v4949_v4 = vld [vmem:[%s5846_s9 + $0x18] sm:$0xe] }
  0xca   : > { %v6872_v48 = vsel %vm6144_vm7, %v2564_v53, %v2565_v6  ;;  %v4790_v27 = vrot.slane %v6839_v25, 9  ;;  %v3224_v42 = vshll.u32 %v6851_v8, 16  ;;  %v3228_v20 = vshrl.u32 %v6851_v8, 16  ;;  %v4887_v25 = vld [vmem:[%s5846_s9 + $0x3c] sm:$0xf] }
  0xcb   : > { %v3248_v43 = vshll.u32 %v6867_v7, 16  ;;  %v3252_v24 = vshrl.u32 %v6867_v7, 16  ;;  %v2576_v32 = vrot.slane %v6641_v35, 5  ;;  %v2579_v41 = vrot.slane %v6682_v21, 5 }
  0xcc   : > { %v3263_v37 = vshrl.u32 %v4884_v12, 16  ;;  %v3266_v46 = vshll.u32 %v4884_v12, 16  ;;  %v4803_v23 = vcombine.low %v6859_v51, %v6872_v48  ;;  %v3272_v28 = vshll.u32 %v6880_v16, 16 }
  0xcd   : > { %v3276_v35 = vshrl.u32 %v6880_v16, 16  ;;  %v3230_v53 = vrot.slane %v3228_v20, 4  ;;  %v6923_v20 = vld [vmem:[%s5846_s9 + $0x38] sm:$0x1]  ;;  %v2578_v31 = vrot.slane %v2576_v32, 4  ;;  %v2586_v19 = vrot.slane %v6692_v57, 5 }
  0xce   : > { %5431 = vmatmul.mubr.msk.bf16.gmra.mxu0 %vm615_vm3, %v4749_v40  ;;  %5437 = vmatmul.mubr.msk.bf16.vlgmr.msra.gmra.mxu1 %vm615_vm3, %v4794_v5  ;;  %v2569_v40 = vrot.slane %v6631_v45, 5  ;;  %v4796_v5 = vcombine.low %v6757_v58, %v6766_v54  ;;  %v4800_v45 = vcombine.low %v6802_v39, %v6812_v50  ;;  %v4878_v58 = vld [vmem:[%s5846_s9 + $0x18] sm:$0xf]  ;;  %v4881_v54 = vld [vmem:[%s5846_s9 + $0x24] sm:$0xf]  ;;  %v6919_v12 = vrot.slane %v3272_v28, 5 }
  0xcf   : > { %5495 = vmatpush3.bf16.msra.mxu1 %v3637_v34  ;;  %5440 = vmatprep.mubr.msk.bf16.mxu1 %vm615_vm3, %v4795_v26  ;;  %v4053_v34 = vsel %vm658_vm0, %v6561_v47, 0  ;;  %v4801_v47 = vcombine.low %v6816_v55, %v6821_v14  ;;  %v3215_v17 = vshrl.u32 %v4878_v58, 16  ;;  %v3218_v11 = vshll.u32 %v4878_v58, 16  ;;  %v6911_v58 = vld [vmem:[%s5846_s9 + $0x2c] sm:$0x1] }
  0xd0   : > { %5466 = vmatprep.mubr.msk.bf16.mxu0 %vm615_vm3, %v5654_v59  ;;  %v6863_v26 = vsel %vm6144_vm7, %v4789_v10, %v2569_v40  ;;  %v2571_v61 = vrot.slane %v2569_v40, 4  ;;  %v3239_v36 = vshrl.u32 %v4881_v54, 16  ;;  %v3242_v30 = vshll.u32 %v4881_v54, 16 }
  0xd1   : > { %v3217_v49 = vrot.slane %v3215_v17, 4  ;;  %v3220_v0 = vrot.slane %v3218_v11, 5  ;;  %v6904_v10 = vrot.slane %v3224_v42, 5  ;;  %v3265_v54 = vrot.slane %v3263_v37, 4 }
  0xd2   : > { %v6895_v59 = vsel %vm6144_vm7, %v2571_v61, %v2572_v56  ;;  %v3241_v6 = vrot.slane %v3239_v36, 4  ;;  %v3244_v40 = vrot.slane %v3242_v30, 5  ;;  %v6917_v56 = vsel %vm6144_vm7, %v4790_v27, %v2576_v32 }
  0xd3   : > { %v4804_v61 = vcombine.low %v6863_v26, %v6895_v59  ;;  %v3278_v17 = vrot.slane %v3276_v35, 4  ;;  %v3221_v11 = vor.u32 %v3220_v0, %v3217_v49  ;;  %v3234_v42 = vshll.u32 %v6902_v38, 16  ;;  %v6948_v35 = vld [vmem:[%s5846_s9 + $0x40] sm:$0xf] }
  0xd4   : > { %v3290_v36 = vshll.u32 %v4887_v25, 16  ;;  %v3231_v27 = vor.u32 %v3230_v53, %v6904_v10  ;;  %v3245_v30 = vor.u32 %v3244_v40, %v3241_v6  ;;  %v3870_v37 = vrot.slane %v6851_v8, 5  ;;  %v5660_v6 = vld [vmem:[%s5846_s9 + $0x60] sm:$0xff]  }
  0xd5   : > { %v3282_v60 = vshll.u32 %v6923_v20, 16  ;;  %v3236_v28 = vrot.slane %v3234_v42, 5 }
  0xd6   : > { %5441 = vmatmul.mubr.msk.bf16.gmra.mxu1 %vm615_vm3, %v4796_v5  ;;  %5467 = vmatmul.mubr.msk.bf16.vlgmr.msra.gmra.mxu0 %vm615_vm3, %v5655_v63  ;;  %v6906_v5 = vrot.slane %v3248_v43, 5  ;;  %v4791_v63 = vrot.slane %v4777_v2, 9  ;;  %v3279_v2 = vor.u32 %v3278_v17, %v6919_v12  ;;  %v3292_v57 = vrot.slane %v3290_v36, 5 }
  0xd7   : > { %5525 = vmatpush3.bf16.msra.mxu0 %v4053_v34  ;;  %5444 = vmatprep.mubr.msk.bf16.mxu1 %vm615_vm3, %v4797_v62  ;;  %v3254_v34 = vrot.slane %v3252_v24, 4  ;;  %v2583_v62 = vrot.slane %v6654_v3, 5  ;;  %v3287_v3 = vshrl.u32 %v4887_v25, 16  ;;  %v3258_v24 = vshll.u32 %v6911_v58, 16 }
  0xd8   : > { %5470 = vmatprep.mubr.msk.bf16.mxu0 %vm615_vm3, %v5656_v52  ;;  %v3268_v52 = vrot.slane %v3266_v46, 5  ;;  %v3232_v49 = vrot.slane %v3231_v27, 4  ;;  %v3246_v8 = vrot.slane %v3245_v30, 4  ;;  %v3872_v25 = vrot.slane %v3870_v37, 4 }
  0xd9   : > { %v3255_v43 = vor.u32 %v3254_v34, %v6906_v5  ;;  %v6942_v46 = vsel %vm6144_vm7, %v4791_v63, %v2583_v62  ;;  %v3289_v32 = vrot.slane %v3287_v3, 4  ;;  %v3260_v53 = vrot.slane %v3258_v24, 5  ;;  %v6969_v3 = vld [vmem:[%s5846_s9 + $0x44] sm:$0x1] }
  0xda   : > { %v4963_v34 = vrot.slane %v4949_v4, 9  ;;  %v3873_v63 = vrot.slane %v6902_v38, 5  ;;  %v3300_v17 = vshrl.u32 %v6948_v35, 16  ;;  %v3237_v21 = vsel %vm5884_vm4, %v3232_v49, %v3236_v28  ;;  %v4893_v4 = vld [vmem:[%s5846_s9 + $0x54] sm:$0xf] }
  0xdb   : > { %v3256_v0 = vrot.slane %v3255_v43, 4  ;;  %v3293_v36 = vor.u32 %v3292_v57, %v3289_v32  ;;  %v3306_v27 = vshll.u32 %v6969_v3, 16 }
  0xdc   : > { %v6993_v50 = vsel %vm6144_vm7, %v4963_v34, %v3870_v37 }
  0xdd   : > { %v7012_v24 = vrot.slane %v3293_v36, 4 }
  0xde   : > { %5445 = vmatmul.mubr.msk.bf16.gmra.mxu1 %vm615_vm3, %v4798_v33  ;;  %5471 = vmatmul.mubr.msk.bf16.gmra.mxu0 %vm615_vm3, %v5657_v22  ;;  %v3269_v33 = vor.u32 %v3268_v52, %v3265_v54  ;;  %v2585_v22 = vrot.slane %v2583_v62, 4  ;;  %v3280_v62 = vrot.slane %v3279_v2, 4  ;;  %v3284_v54 = vrot.slane %v3282_v60, 5 }
  0xdf   : > { %5448 = vmatprep.mubr.msk.bf16.mxu1 %vm615_vm3, %v4799_v13  ;;  %5474 = vmatprep.mubr.msk.bf16.mxu0 %vm615_vm3, %v5658_v15  ;;  %v3222_v13 = vrot.slane %v3221_v11, 4  ;;  %v5659_v15 = vld [vmem:[%s5846_s9 + $0x54] sm:$0xff]   ;;  %v3296_v52 = vshll.u32 %v6948_v35, 16  ;;  %v6959_v11 = vsel %vm6144_vm7, %v2578_v31, %v2579_v41  ;;  %v3251_v41 = vsel %vm5884_vm4, %v3246_v8, %v6906_v5  ;;  %v4890_v5 = vld [vmem:[%s5846_s9 + $0x48] sm:$0xf] }
  0xe0   : > { %v3270_v40 = vrot.slane %v3269_v33, 4  ;;  %v6963_v42 = vsel %vm6144_vm7, %v2585_v22, %v2586_v19  ;;  %v3285_v55 = vsel %vm5884_vm4, %v3280_v62, %v3284_v54  ;;  %v4805_v30 = vcombine.low %v6917_v56, %v6959_v11  ;;  %v4950_v31 = vld [vmem:[%s5846_s9 + $0x24] sm:$0xe]  ;;  %v5661_v33 = vld [vmem:[%s5846_s9 + $0x6c] sm:$0xff]  }
  0xe1   : > { %v3227_v38 = vsel %vm5884_vm4, %v3222_v13, %v6904_v10  ;;  %v3261_v10 = vsel %vm5884_vm4, %v3256_v0, %v3260_v53  ;;  %v7002_v14 = vrot.slane %v3296_v52, 5  ;;  %v4806_v43 = vcombine.low %v6942_v46, %v6963_v42  ;;  %v5662_v13 = vld [vmem:[%s5846_s9 + $0x78] sm:$0xff]   ;;  %v7042_v62 = vld [vmem:[%s5846_s9 + $0x64] sm:$0xf] }
  0xe2   : > { %v3275_v39 = vsel %vm5884_vm4, %v3270_v40, %v6919_v12  ;;  %v7006_v12 = vld [vmem:[%s5846_s9 + $0x4c] sm:$0xf]  ;;  %v3877_v19 = vrot.slane %v6867_v7, 5  ;;  %v7017_v37 = vcombine.low %v3227_v38, %v3237_v21  ;;  %v7019_v22 = vcombine.low %v3251_v41, %v3261_v10  ;;  %v7183_v46 = vld [vmem:[%s5846_s9 + $0x7c] sm:$0xf] }
  0xe3   : > { %v3311_v2 = vshrl.u32 %v4890_v5, 16  ;;  %v3314_v60 = vshll.u32 %v4890_v5, 16  ;;  %v7023_v28 = vcombine.low %v3275_v39, %v3285_v55  ;;  %v3320_v57 = vshll.u32 %v7006_v12, 16 }
  0xe4   : > { %v3324_v7 = vshrl.u32 %v7006_v12, 16  ;;  %v7033_v8 = vrot.slane %v3306_v27, 5  ;;  %v4964_v0 = vrot.slane %v4950_v31, 9  ;;  %v3880_v53 = vrot.slane %v6911_v58, 5  ;;  %v7050_v58 = vld [vmem:[%s5846_s9 + $0x50] sm:$0x1] }
  0xe5   : > { %v3879_v34 = vrot.slane %v3877_v19, 4  ;;  %v3313_v54 = vrot.slane %v3311_v2, 4  ;;  %v3316_v52 = vrot.slane %v3314_v60, 5  ;;  %v7059_v1 = vrot.slane %v3320_v57, 5 }
  0xe6   : > { %5449 = vmatmul.mubr.msk.bf16.gmra.mxu1 %vm615_vm3, %v4800_v45  ;;  %5475 = vmatmul.mubr.msk.bf16.gmra.mxu0 %vm615_vm3, %v5659_v15  ;;  %v6997_v45 = vsel %vm6144_vm7, %v3872_v25, %v3873_v63  ;;  %v7030_v15 = vld [vmem:[%s5846_s9 + $0x58] sm:$0xf]  ;;  %v3335_v25 = vshrl.u32 %v4893_v4, 16  ;;  %v3338_v63 = vshll.u32 %v4893_v4, 16  ;;  %v3326_v44 = vrot.slane %v3324_v7, 4  ;;  %v5664_v4 = vld [vmem:[%s5846_s9 + $0x90] sm:$0xff]  }
  0xe7   : > { %5452 = vmatprep.mubr.msk.bf16.mxu1 %vm615_vm3, %v4801_v47  ;;  %5478 = vmatprep.mubr.msk.bf16.mxu0 %vm615_vm3, %v5660_v6  ;;  %v3302_v47 = vrot.slane %v3300_v17, 4  ;;  %v4896_v6 = vld [vmem:[%s5846_s9 + $0x60] sm:$0xf]  ;;  %v3344_v17 = vshll.u32 %v7030_v15, 16  ;;  %v3348_v38 = vshrl.u32 %v7030_v15, 16  ;;  %v7066_v10 = vsel %vm6144_vm7, %v4964_v0, %v3877_v19 }
  0xe8   : > { %v3359_v36 = vshrl.u32 %v4896_v6, 16  ;;  %v3362_v21 = vshll.u32 %v4896_v6, 16  ;;  %v3368_v51 = vshll.u32 %v7042_v62, 16  ;;  %v3372_v48 = vshrl.u32 %v7042_v62, 16  ;;  %v7087_v7 = vld [vmem:[%s5846_s9 + $0x68] sm:$0x1] }
  0xe9   : > { %v3303_v49 = vor.u32 %v3302_v47, %v7002_v14  ;;  %v7075_v5 = vsel %vm6144_vm7, %v3879_v34, %v3880_v53  ;;  %v3330_v55 = vshll.u32 %v7050_v58, 16  ;;  %v3337_v47 = vrot.slane %v3335_v25, 4 }
  0xea   : > { %v3340_v27 = vrot.slane %v3338_v63, 5  ;;  %v3884_v19 = vrot.slane %v6880_v16, 5  ;;  %v7082_v2 = vrot.slane %v3344_v17, 5  ;;  %v3350_v60 = vrot.slane %v3348_v38, 4  ;;  %v4899_v38 = vld [vmem:[%s5846_s9 + $0x6c] sm:$0xf] }
  0xeb   : > { %v7062_v41 = vrot.slane %v3303_v49, 4  ;;  %v3327_v57 = vor.u32 %v3326_v44, %v7059_v1  ;;  %v3361_v49 = vrot.slane %v3359_v36, 4  ;;  %v3364_v0 = vrot.slane %v3362_v21, 5  ;;  %v4952_v36 = vld [vmem:[%s5846_s9 + $0x3c] sm:$0xe] }
  0xec   : > { %v7095_v6 = vrot.slane %v3368_v51, 5  ;;  %v3374_v34 = vrot.slane %v3372_v48, 4  ;;  %v7099_v63 = vrot.slane %v3330_v55, 5  ;;  %v3891_v21 = vrot.slane %v6948_v35, 5 }
  0xed   : > { %v3378_v51 = vshll.u32 %v7087_v7, 16  ;;  %v7126_v59 = vrot.slane %v3327_v57, 4  ;;  %v3365_v48 = vor.u32 %v3364_v0, %v3361_v49  ;;  %v3898_v35 = vrot.slane %v7006_v12, 5  ;;  %v5666_v12 = vld [vmem:[%s5846_s9 + $0xa8] sm:$0xff]  }
  0xee   : > { %5453 = vmatmul.mubr.msk.bf16.gmra.mxu1 %vm615_vm3, %v4802_v18  ;;  %5479 = vmatmul.mubr.msk.bf16.gmra.mxu0 %vm615_vm3, %v5661_v33  ;;  %v4951_v18 = vld [vmem:[%s5846_s9 + $0x30] sm:$0xe]  ;;  %v7080_v33 = vld [vmem:[%s5846_s9 + $0x5c] sm:$0x1]  ;;  %v3375_v55 = vor.u32 %v3374_v34, %v7095_v6  ;;  %v3383_v56 = vshrl.u32 %v4899_v38, 16  ;;  %v3386_v11 = vshll.u32 %v4899_v38, 16 }
  0xef   : > { %5456 = vmatprep.mubr.msk.bf16.mxu1 %vm615_vm3, %v4803_v23  ;;  %5482 = vmatprep.mubr.msk.bf16.mxu0 %vm615_vm3, %v5662_v13  ;;  %v5663_v23 = vld [vmem:[%s5846_s9 + $0x84] sm:$0xff]   ;;  %v7071_v39 = vpop.f32.mrf.mxu0  ;;  %v4965_v31 = vrot.slane %v4951_v18, 9  ;;  %v3317_v13 = vor.u32 %v3316_v52, %v3313_v54  ;;  %v3887_v54 = vrot.slane %v6923_v20, 5  ;;  %v3341_v52 = vor.u32 %v3340_v27, %v3337_v47  ;;  %v7132_v47 = vld [vmem:[%s5846_s9 + $0x70] sm:$0xf] }
  0xf0   : > { %v3354_v17 = vshll.u32 %v7080_v33, 16  ;;  %v3351_v20 = vor.u32 %v3350_v60, %v7082_v2  ;;  %v4966_v60 = vrot.slane %v4952_v36, 9  ;;  %v3893_v49 = vrot.slane %v3891_v21, 4 }
  0xf1   : > { %v7097_v25 = vpop.f32.mrf.mxu0  ;;  %v7113_v18 = vsel %vm6144_vm7, %v4965_v31, %v3884_v19  ;;  %v7124_v26 = vrot.slane %v3317_v13, 4  ;;  %v3342_v27 = vrot.slane %v3341_v52, 4  ;;  %v5665_v13 = vld [vmem:[%s5846_s9 + $0x9c] sm:$0xff]   ;;  %v3380_v0 = vrot.slane %v3378_v51, 5 }
  0xf2   : > { %v3356_v31 = vrot.slane %v3354_v17, 5  ;;  %v3352_v57 = vrot.slane %v3351_v20, 4  ;;  %v3366_v53 = vrot.slane %v3365_v48, 4  ;;  %v3901_v32 = vrot.slane %v7050_v58, 5 }
  0xf3   : > { %v3392_v38 = vshll.u32 %v7132_v47, 16  ;;  %v3396_v52 = vshrl.u32 %v7132_v47, 16  ;;  %v3376_v17 = vrot.slane %v3375_v55, 4  ;;  %v3900_v36 = vrot.slane %v3898_v35, 4 }
  0xf4   : > { %v7109_v44 = vpop.f32.mrf.mxu1  ;;  %v3388_v40 = vrot.slane %v3386_v11, 5  ;;  %v3323_v20 = vsel %vm5884_vm4, %v7124_v26, %v7059_v1  ;;  %v3333_v58 = vsel %vm5884_vm4, %v7126_v59, %v7099_v63  ;;  %v7160_v48 = vsel %vm6144_vm7, %v4966_v60, %v3891_v21  ;;  %v4902_v26 = vld [vmem:[%s5846_s9 + $0x78] sm:$0xf] }
  0xf5   : > { %v3347_v63 = vsel %vm5884_vm4, %v3342_v27, %v7082_v2  ;;  %v3371_v42 = vsel %vm5884_vm4, %v3366_v53, %v7095_v6  ;;  %v7195_v2 = vrot.slane %v3392_v38, 5  ;;  %v3398_v59 = vrot.slane %v3396_v52, 4  ;;  %v7207_v53 = vld [vmem:[%s5846_s9 + $0x54] sm:$0xe]  ;;  %v7244_v38 = vld [vmem:[%s5846_s9 + $0x88] sm:$0xf] }
  0xf6   : > { %5457 = vmatmul.mubr.msk.bf16.gmra.mxu1 %vm615_vm3, %v4804_v61  ;;  %5483 = vmatmul.mubr.msk.bf16.gmra.mxu0 %vm615_vm3, %v5663_v23  ;;  %v3886_v61 = vrot.slane %v3884_v19, 4  ;;  %v4953_v23 = vld [vmem:[%s5846_s9 + $0x48] sm:$0xe]  ;;  %v7138_v19 = vpop.f32.mrf.mxu1  ;;  %v7201_v55 = vsel %vm6144_vm7, %v3900_v36, %v3901_v32  ;;  %v3407_v6 = vshrl.u32 %v4902_v26, 16  ;;  %v3416_v27 = vshll.u32 %v7183_v46, 16  ;;  %v5667_v60 = vld [vmem:[%s5846_s9 + $0xb4] sm:$0xff]  }
  0xf7   : > { %5460 = vmatprep.mubr.msk.bf16.mxu1 %vm615_vm3, %v4805_v30  ;;  %5486 = vmatprep.mubr.msk.bf16.mxu0 %vm615_vm3, %v5664_v4  ;;  %v7134_v30 = vpop.f32.mrf.mxu0  ;;  %v3894_v4 = vrot.slane %v6969_v3, 5  ;;  %8037 = vst [vmem:[#allocation7_spill] sm:$0xff] %v7138_v19  ;;  %v4967_v34 = vrot.slane %v4953_v23, 9  ;;  %v3385_v3 = vrot.slane %v3383_v56, 4  ;;  %v7163_v23 = vld [vmem:[%s5846_s9 + $0x74] sm:$0x1]  ;;  %v8040_v32 = vsel %vm5884_vm4, %v7062_v41, %v7033_v8 }
  0xf8   : > { %v7156_v51 = vsel %vm6144_vm7, %v3886_v61, %v3887_v54  ;;  %v7170_v1 = vpop.f32.mrf.mxu1  ;;  %v3357_v54 = vsel %vm5884_vm4, %v3352_v57, %v3356_v31  ;;  %v3381_v61 = vsel %vm5884_vm4, %v3376_v17, %v3380_v0  ;;  %v3420_v31 = vshrl.u32 %v7183_v46, 16  ;;  %v4905_v41 = vld [vmem:[%s5846_s9 + $0x84] sm:$0xf]  ;;  %v4955_v8 = vld [vmem:[%s5846_s9 + $0x60] sm:$0xe] }
  0xf9   : > { %v7144_v16 = vpop.f32.mrf.mxu0  ;;  %8038 = vst [vmem:[#allocation8_spill] sm:$0xff] %v7170_v1  ;;  %v7179_v21 = vsel %vm6144_vm7, %v3893_v49, %v3894_v4  ;;  %v3389_v56 = vor.u32 %v3388_v40, %v3385_v3  ;;  %v8041_v40 = vsel %vm5884_vm4, %v7012_v24, %v7002_v14  ;;  %v7226_v57 = vcombine.low %v3323_v20, %v3333_v58  ;;  %v7240_v24 = vld [vmem:[%s5846_s9 + $0x80] sm:$0x1]  ;;  %v4908_v20 = vld [vmem:[%s5846_s9 + $0x90] sm:$0xf] }
  0xfa   : > { %v7212_v4 = vpop.f32.mrf.mxu1  ;;  %v7230_v0 = vcombine.low %v3347_v63, %v3357_v54  ;;  %v3399_v14 = vor.u32 %v3398_v59, %v7195_v2  ;;  %v8021_v3 = vrot.slane %v7030_v15, 5  ;;  %v3409_v63 = vrot.slane %v3407_v6, 4  ;;  %v7258_v59 = vld [vmem:[%s5846_s9 + $0x94] sm:$0xf]  ;;  %v7291_v36 = vld [vmem:[%s5846_s9 + $0x8c] sm:$0x1] }
  0xfb   : > { %8039 = vst [vmem:[#allocation5_spill] sm:$0xff] %v7212_v4  ;;  %v7246_v52 = vrot.slane %v3389_v56, 4  ;;  %v3431_v56 = vshrl.u32 %v4905_v41, 16  ;;  %v3444_v6 = vshrl.u32 %v7244_v38, 16 }
  0xfd   : > { %v3446_v4 = vrot.slane %v3444_v6, 4 }
  0xfe   : > { %5461 = vmatmul.mubr.msk.bf16.gmra.mxu1 %vm615_vm3, %v4806_v43  ;;  %5487 = vmatmul.mubr.msk.bf16.gmra.mxu0 %vm615_vm3, %v5665_v13  ;;  %v7193_v43 = vsel %vm6144_vm7, %v4967_v34, %v3898_v35  ;;  %v3410_v35 = vshll.u32 %v4902_v26, 16  ;;  %v7224_v13 = vcombine.low %v8041_v40, %v8040_v32  ;;  %v7255_v26 = vrot.slane %v3416_v27, 5 }
  0xff   : > { %5490 = vmatprep.mubr.msk.bf16.mxu0 %vm615_vm3, %v5666_v12  ;;  %5496 = vmatprep.mubr.msk.bf16.mxu1 %vm615_vm3, %v7017_v37  ;;  %v3402_v37 = vshll.u32 %v7163_v23, 16  ;;  %v7234_v12 = vcombine.low %v3371_v42, %v3381_v61  ;;  %v3422_v42 = vrot.slane %v3420_v31, 4  ;;  %v3440_v32 = vshll.u32 %v7244_v38, 16 }
 0x100   : > { %v7204_v11 = vpop.f32.mrf.mxu0  ;;  %v3412_v54 = vrot.slane %v3410_v35, 5  ;;  %v8043_v35 = vcombine.low %v6993_v50, %v6997_v45  ;;  %v3400_v27 = vrot.slane %v3399_v14, 4  ;;  %v3455_v31 = vshrl.u32 %v4908_v20, 16 }
 0x101   : > { %v7248_v17 = vrot.slane %v3402_v37, 5  ;;  %v3434_v37 = vshll.u32 %v4905_v41, 16  ;;  %v3907_v40 = vrot.slane %v8021_v3, 4  ;;  %v3426_v41 = vshll.u32 %v7240_v24, 16 }
 0x102   : > { %v7253_v58 = vpop.f32.mrf.mxu0  ;;  %v3468_v34 = vshrl.u32 %v7258_v59, 16  ;;  %v3395_v45 = vsel %vm5884_vm4, %v7246_v52, %v7195_v2  ;;  %v3423_v14 = vor.u32 %v3422_v42, %v7255_v26  ;;  %v3433_v3 = vrot.slane %v3431_v56, 4  ;;  %v4956_v52 = vld [vmem:[%s5846_s9 + $0x6c] sm:$0xe] }
 0x103   : > { %v3436_v49 = vrot.slane %v3434_v37, 5  ;;  %v3405_v1 = vsel %vm5884_vm4, %v3400_v27, %v7248_v17  ;;  %v4969_v2 = vrot.slane %v4955_v8, 9  ;;  %v7299_v42 = vrot.slane %v3426_v41, 5 }
 0x104   : > { %v7263_v61 = vpop.f32.mrf.mxu1  ;;  %v7280_v50 = vpop.f32.mrf.mxu0  ;;  %v3470_v56 = vrot.slane %v3468_v34, 4  ;;  %v7311_v6 = vrot.slane %v3423_v14, 4  ;;  %v3450_v8 = vshll.u32 %v7291_v36, 16  ;;  %v3919_v41 = vrot.slane %v7132_v47, 5 }
 0x105   : > { %8042 = vst [vmem:[#allocation6_spill] sm:$0xff] %v7263_v61  ;;  %v7293_v61 = vrot.slane %v3440_v32, 5  ;;  %v3437_v34 = vor.u32 %v3436_v49, %v3433_v3  ;;  %v8049_v49 = vrot.slane %v7207_v53, 9  ;;  %v7340_v3 = vcombine.low %v3395_v45, %v3405_v1  ;;  %v7367_v45 = vld [vmem:[%s5846_s9 + $0xa0] sm:$0xf] }
 0x106   : > { %5491 = vmatmul.mubr.msk.bf16.gmra.mxu0 %vm615_vm3, %v5667_v60  ;;  %5497 = vmatmul.mubr.msk.bf16.vlgmr.msra.gmra.mxu1 %vm615_vm3, %v7019_v22  ;;  %v3908_v22 = vrot.slane %v7080_v33, 5  ;;  %v3458_v60 = vshll.u32 %v4908_v20, 16  ;;  %v3413_v33 = vor.u32 %v3412_v54, %v3409_v63  ;;  %v3912_v20 = vrot.slane %v7042_v62, 5  ;;  %v7307_v37 = vpop.f32.mrf.mxu0 }
 0x107   : > { %5500 = vmatprep.mubr.msk.bf16.mxu1 %vm615_vm3, %v7023_v28  ;;  %5526 = vmatprep.mubr.msk.bf16.mxu0 %vm615_vm3, %v8043_v35  ;;  %v3464_v28 = vshll.u32 %v7258_v59, 16  ;;  %v7288_v35 = vpop.f32.mrf.mxu1  ;;  %v3457_v63 = vrot.slane %v3455_v31, 4  ;;  %v3915_v62 = vrot.slane %v7087_v7, 5  ;;  %v8045_v7 = vcombine.low %v7066_v10, %v7075_v5 }
 0x108   : > { %8044 = vst [vmem:[#allocation9_spill] sm:$0xff] %v7288_v35  ;;  %v3460_v54 = vrot.slane %v3458_v60, 5  ;;  %v7303_v35 = vld [vmem:[%s5846_s9 + $0x98] sm:$0x1]  ;;  %v7309_v32 = vrot.slane %v3413_v33, 4  ;;  %v3914_v17 = vrot.slane %v3912_v20, 4  ;;  %v3447_v31 = vor.u32 %v3446_v4, %v7293_v61 }
 0x109   : > { %v7305_v19 = vrot.slane %v3464_v28, 5  ;;  %v7320_v27 = vpop.f32.mrf.mxu1  ;;  %v4970_v60 = vrot.slane %v4956_v52, 9  ;;  %v3922_v10 = vrot.slane %v7163_v23, 5  ;;  %v8048_v5 = vrot.slane %v7030_v15, 5  ;;  %v4911_v23 = vld [vmem:[%s5846_s9 + $0x9c] sm:$0xf] }
 0x10a   : > { %8046 = vst [vmem:[#allocation10_spill] sm:$0xff] %v7320_v27  ;;  %v3461_v47 = vor.u32 %v3460_v54, %v3457_v63  ;;  %v3419_v1 = vsel %vm5884_vm4, %v7309_v32, %v7255_v26  ;;  %v3452_v28 = vrot.slane %v3450_v8, 5  ;;  %v4914_v33 = vld [vmem:[%s5846_s9 + $0xa8] sm:$0xf]  ;;  %v3921_v52 = vrot.slane %v3919_v41, 4 }
 0x10b   : > { %v7337_v4 = vsel %vm6144_vm7, %v8049_v49, %v8048_v5  ;;  %v3471_v15 = vor.u32 %v3470_v56, %v7305_v19  ;;  %v7370_v14 = vpop.f32.mrf.mxu1  ;;  %v7374_v26 = vsel %vm6144_vm7, %v4970_v60, %v3919_v41  ;;  %v7377_v63 = vld [vmem:[%s5846_s9 + $0xac] sm:$0xf]  ;;  %v4957_v56 = vld [vmem:[%s5846_s9 + $0x78] sm:$0xe]  ;;  %v3926_v32 = vrot.slane %v7183_v46, 5 }
 0x10c   : > { %v3482_v8 = vshll.u32 %v4911_v23, 16  ;;  %v3506_v60 = vshll.u32 %v4914_v33, 16  ;;  %v3512_v41 = vshll.u32 %v7377_v63, 16  ;;  %v8051_v46 = vcombine.low %v7160_v48, %v7179_v21 }
 0x10d   : > { %v8052_v48 = vcombine.low %v7193_v43, %v7201_v55 }
 0x10e   : > { %5501 = vmatmul.mubr.msk.bf16.gmra.mxu1 %vm615_vm3, %v7224_v13  ;;  %5527 = vmatmul.mubr.msk.bf16.vlgmr.msra.gmra.mxu0 %vm615_vm3, %v8045_v7  ;;  %v8047_v13 = vcombine.low %v7113_v18, %v7156_v51  ;;  %v7344_v18 = vsel %vm6144_vm7, %v3907_v40, %v3908_v22  ;;  %v7348_v51 = vsel %vm6144_vm7, %v4969_v2, %v3912_v20  ;;  %v3438_v20 = vrot.slane %v3437_v34, 4 }
 0x10f   : > { %5504 = vmatprep.mubr.msk.bf16.mxu1 %vm615_vm3, %v7226_v57  ;;  %v3474_v57 = vshll.u32 %v7303_v35, 16  ;;  %v3429_v22 = vsel %vm5884_vm4, %v7311_v6, %v7299_v42  ;;  %v7364_v40 = vsel %vm6144_vm7, %v3914_v17, %v3915_v62  ;;  %v3448_v2 = vrot.slane %v3447_v31, 4 }
 0x110   : > { %5530 = vmatprep.mubr.msk.bf16.mxu0 %vm615_vm3, %v8047_v13  ;;  %v3462_v42 = vrot.slane %v3461_v47, 4  ;;  %v3479_v6 = vshrl.u32 %v4911_v23, 16  ;;  %v3472_v17 = vrot.slane %v3471_v15, 4  ;;  %v3488_v7 = vshll.u32 %v7367_v45, 16 }
 0x111   : > { %v3476_v62 = vrot.slane %v3474_v57, 5  ;;  %v3492_v34 = vshrl.u32 %v7367_v45, 16  ;;  %v3503_v31 = vshrl.u32 %v4914_v33, 16  ;;  %v3516_v13 = vshrl.u32 %v7377_v63, 16 }
 0x112   : > { %v7352_v53 = vpop.f32.mrf.mxu0  ;;  %v3443_v47 = vsel %vm5884_vm4, %v3438_v20, %v7293_v61  ;;  %v3453_v57 = vsel %vm5884_vm4, %v3448_v2, %v3452_v28  ;;  %v7404_v15 = vsel %vm6144_vm7, %v3921_v52, %v3922_v10  ;;  %v3467_v21 = vsel %vm5884_vm4, %v3462_v42, %v7305_v19  ;;  %v7426_v2 = vld [vmem:[%s5846_s9 + $0xb0] sm:$0x1] }
 0x113   : > { %v3928_v61 = vrot.slane %v3926_v32, 4  ;;  %v3929_v23 = vrot.slane %v7240_v24, 5  ;;  %v3481_v28 = vrot.slane %v3479_v6, 4  ;;  %v3477_v10 = vsel %vm5884_vm4, %v3472_v17, %v3476_v62 }
 0x114   : > { %v7379_v54 = vpop.f32.mrf.mxu0  ;;  %v3484_v20 = vrot.slane %v3482_v8, 5  ;;  %v7423_v43 = vrot.slane %v3488_v7, 5  ;;  %v3494_v55 = vrot.slane %v3492_v34, 4  ;;  %v3505_v19 = vrot.slane %v3503_v31, 4  ;;  %v4958_v34 = vld [vmem:[%s5846_s9 + $0x84] sm:$0xe] }
 0x115   : > { %v3508_v52 = vrot.slane %v3506_v60, 5  ;;  %v7428_v24 = vrot.slane %v3512_v41, 5  ;;  %v3518_v42 = vrot.slane %v3516_v13, 4  ;;  %v4983_v62 = vcombine.low %v7337_v4, %v7344_v18  ;;  %v4917_v4 = vld [vmem:[%s5846_s9 + $0xb4] sm:$0xf] }
 0x116   : > { %v7387_v5 = vpop.f32.mrf.mxu1  ;;  %5505 = vmatmul.mubr.msk.bf16.gmra.mxu1 %vm615_vm3, %v7230_v0  ;;  %5531 = vmatmul.mubr.msk.bf16.gmra.mxu0 %vm615_vm3, %v8051_v46  ;;  %v7395_v49 = vpop.f32.mrf.mxu0  ;;  %v4971_v0 = vrot.slane %v4957_v56, 9  ;;  %v4929_v17 = vcombine.low %v3419_v1, %v3429_v22  ;;  %v4984_v8 = vcombine.low %v7348_v51, %v7364_v40  ;;  %v7438_v7 = vcombine.low %v3443_v47, %v3453_v57  ;;  %v7452_v18 = vld [vmem:[%s5846_s9 + $0xb8] sm:$0xf] }
 0x117   : > { %8050 = vst [vmem:[#allocation11_spill] sm:$0xff] %v7387_v5  ;;  %5508 = vmatprep.mubr.msk.bf16.mxu1 %vm615_vm3, %v7234_v12  ;;  %5534 = vmatprep.mubr.msk.bf16.mxu0 %vm615_vm3, %v8052_v48  ;;  %v7421_v12 = vld [vmem:[%s5846_s9 + $0xa4] sm:$0x1]  ;;  %v7443_v60 = vcombine.low %v3467_v21, %v3477_v10  ;;  %v3485_v51 = vor.u32 %v3484_v20, %v3481_v28  ;;  %v3933_v40 = vrot.slane %v7244_v38, 5  ;;  %v3522_v46 = vshll.u32 %v7426_v2, 16 }
 0x118   : > { %v7416_v33 = vpop.f32.mrf.mxu1  ;;  %v7432_v6 = vpop.f32.mrf.mxu0  ;;  %v7447_v41 = vsel %vm6144_vm7, %v4971_v0, %v3926_v32  ;;  %v3498_v13 = vshll.u32 %v7421_v12, 16  ;;  %v3495_v22 = vor.u32 %v3494_v55, %v7423_v43  ;;  %v3930_v47 = vsel %vm6144_vm7, %v3928_v61, %v3929_v23  ;;  %v4959_v28 = vld [vmem:[%s5846_s9 + $0x90] sm:$0xe]  ;;  %v7486_v5 = vld [vmem:[%s5846_s9 + $0xbc] sm:$0x1] }
 0x119   : > { %8053 = vst [vmem:[#allocation12_spill] sm:$0xff] %v7416_v33  ;;  %v4972_v32 = vrot.slane %v4958_v34, 9  ;;  %v3509_v57 = vor.u32 %v3508_v52, %v3505_v19  ;;  %v3519_v0 = vor.u32 %v3518_v42, %v7428_v24  ;;  %v3527_v10 = vshrl.u32 %v4917_v4, 16 }
 0x11a   : > { %v7430_v56 = vpop.f32.mrf.mxu1  ;;  %v3530_v38 = vshll.u32 %v4917_v4, 16  ;;  %v3536_v20 = vshll.u32 %v7452_v18, 16  ;;  %v3540_v55 = vshrl.u32 %v7452_v18, 16  ;;  %v3500_v23 = vrot.slane %v3498_v13, 5 }
 0x11b   : > { %8054 = vst [vmem:[#allocation13_spill] sm:$0xff] %v7430_v56  ;;  %v3936_v19 = vrot.slane %v7291_v36, 5  ;;  %v3496_v34 = vrot.slane %v3495_v22, 4  ;;  %v3935_v4 = vrot.slane %v3933_v40, 4  ;;  %v3524_v31 = vrot.slane %v3522_v46, 5 }
 0x11c   : > { %v7454_v1 = vpop.f32.mrf.mxu1  ;;  %v3529_v13 = vrot.slane %v3527_v10, 4  ;;  %v3532_v36 = vrot.slane %v3530_v38, 5  ;;  %v7480_v33 = vrot.slane %v3536_v20, 5  ;;  %v3943_v46 = vrot.slane %v7303_v35, 5 }
 0x11d   : > { %8055 = vst [vmem:[#allocation14_spill] sm:$0xff] %v7454_v1  ;;  %v3501_v35 = vsel %vm5884_vm4, %v3496_v34, %v3500_v23 }
 0x11e   : > { %v7462_v48 = vpop.f32.mrf.mxu0  ;;  %v5318_v21 = vpop.f32.mrf.mxu1  ;;  %5509 = vmatmul.mubr.msk.bf16.gmra.mxu1 %vm615_vm3, %v7340_v3  ;;  %5535 = vmatmul.mubr.msk.bf16.gmra.mxu0 %vm615_vm3, %v4983_v62  ;;  %v3940_v3 = vrot.slane %v7258_v59, 5  ;;  %v3486_v62 = vrot.slane %v3485_v51, 4  ;;  %v3542_v59 = vrot.slane %v3540_v55, 4  ;;  %v4986_v51 = vcombine.low %v7447_v41, %v3930_v47  ;;  %v4960_v55 = vld [vmem:[%s5846_s9 + $0x9c] sm:$0xe] }
 0x11f   : > { %v965_v61 = vadd.f32 %v5318_v21, %v7071_v39  ;;  %5512 = vmatprep.mubr.msk.bf16.mxu1 %vm615_vm3, %v4929_v17  ;;  %5538 = vmatprep.mubr.msk.bf16.mxu0 %vm615_vm3, %v4984_v8  ;;  %v3510_v39 = vrot.slane %v3509_v57, 4  ;;  %v3520_v21 = vrot.slane %v3519_v0, 4  ;;  %v4973_v17 = vrot.slane %v4959_v28, 9 }
 0x120   : > { %v7475_v52 = vpop.f32.mrf.mxu0  ;;  %v956_v42 = vpop.f32.mrf.mxu1  ;;  %v3942_v22 = vrot.slane %v3940_v3, 4  ;;  %v3491_v0 = vsel %vm5884_vm4, %v3486_v62, %v7423_v43  ;;  %v3934_v28 = vsel %vm6144_vm7, %v4972_v32, %v3933_v40  ;;  %v8056_v40 = vcombine.low %v7374_v26, %v7404_v15 }
 0x121   : > { %v957_v1 = vadd.f32 %v956_v42, %v7097_v25  ;;  %v3515_v47 = vsel %vm5884_vm4, %v3510_v39, %v7428_v24  ;;  %v3941_v10 = vsel %vm6144_vm7, %v4973_v17, %v3940_v3  ;;  %v3533_v32 = vor.u32 %v3532_v36, %v3529_v13 }
 0x122   : > { %v7478_v56 = vpop.f32.mrf.mxu0  ;;  %v5319_v8 = vpop.f32.mrf.mxu1  ;;  %v3543_v20 = vor.u32 %v3542_v59, %v7480_v33  ;;  %v3546_v24 = vshll.u32 %v7486_v5, 16  ;;  %v3944_v26 = vsel %vm6144_vm7, %v3942_v22, %v3943_v46  ;;  %v3947_v15 = vrot.slane %v7367_v45, 5 }
 0x123   : > { %v968_v27 = vadd.f32 %v5319_v8, %v7134_v30  ;;  %v3937_v30 = vsel %vm6144_vm7, %v3935_v4, %v3936_v19  ;;  %v4932_v3 = vcombine.low %v3491_v0, %v3501_v35  ;;  %v3954_v62 = vrot.slane %v7377_v63, 5 }
 0x124   : > { %v7488_v25 = vpop.f32.mrf.mxu0  ;;  %v959_v57 = vpop.f32.mrf.mxu1  ;;  %v4987_v42 = vcombine.low %v3934_v28, %v3937_v30  ;;  %v4974_v4 = vrot.slane %v4960_v55, 9  ;;  %v4988_v17 = vcombine.low %v3941_v10, %v3944_v26  ;;  %v3534_v8 = vrot.slane %v3533_v32, 4 }
 0x125   : > { %v960_v41 = vadd.f32 %v959_v57, %v7144_v16  ;;  %v3525_v16 = vsel %vm5884_vm4, %v3520_v21, %v3524_v31  ;;  %v3544_v13 = vrot.slane %v3543_v20, 4  ;;  %v3548_v36 = vrot.slane %v3546_v24, 5 }
 0x126   : > { %v5322_v38 = vpop.f32.mrf.mxu1  ;;  %v5348_v43 = vpop.f32.mrf.mxu0  ;;  %5513 = vmatmul.mubr.msk.bf16.gmra.mxu1 %vm615_vm3, %v7438_v7  ;;  %5539 = vmatmul.mubr.msk.bf16.gmra.mxu0 %vm615_vm3, %v8056_v40  ;;  %v4933_v34 = vcombine.low %v3515_v47, %v3525_v16  ;;  %v3950_v63 = vrot.slane %v7421_v12, 5  ;;  %v3956_v46 = vrot.slane %v3954_v62, 4  ;;  %v3957_v57 = vrot.slane %v7426_v2, 5 }
 0x127   : > { %v981_v23 = vadd.f32 %v5322_v38, %v7204_v11  ;;  %v7517_v19 = vadd.f32 %v5348_v43, %v965_v61  ;;  %5516 = vmatprep.mubr.msk.bf16.mxu1 %vm615_vm3, %v7443_v60  ;;  %5542 = vmatprep.mubr.msk.bf16.mxu0 %vm615_vm3, %v4986_v51  ;;  %v4961_v60 = vld [vmem:[%s5846_s9 + $0xa8] sm:$0xe]  ;;  %v3949_v51 = vrot.slane %v3947_v15, 4  ;;  %v3948_v12 = vsel %vm6144_vm7, %v4974_v4, %v3947_v15 }
 0x128   : > { %v972_v7 = vpop.f32.mrf.mxu1  ;;  %v1333_v31 = vpop.f32.mrf.mxu0 }
 0x129   : > { %v973_v11 = vadd.f32 %v972_v7, %v7253_v58  ;;  %v7527_v61 = vadd.f32 %v1333_v31, %v957_v1  ;;  %v4975_v1 = vrot.slane %v4961_v60, 9  ;;  %v3951_v47 = vsel %vm6144_vm7, %v3949_v51, %v3950_v63 }
 0x12a   : > { %v5323_v39 = vpop.f32.mrf.mxu1  ;;  %v5349_v21 = vpop.f32.mrf.mxu0  ;;  %v4989_v20 = vcombine.low %v3948_v12, %v3951_v47  ;;  %v3964_v7 = vrot.slane %v7486_v5, 5 }
 0x12b   : > { %v984_v45 = vadd.f32 %v5323_v39, %v7280_v50  ;;  %v7531_v59 = vadd.f32 %v5349_v21, %v968_v27  ;;  %v3539_v50 = vsel %vm5884_vm4, %v3534_v8, %v7480_v33  ;;  %v3549_v27 = vsel %vm5884_vm4, %v3544_v13, %v3548_v36  ;;  %v4962_v33 = vld [vmem:[%s5846_s9 + $0xb4] sm:$0xe]  ;;  %s7860_s9 = scalar_lea.vmem [#allocation2], %s5566_s8 }
 0x12c   : > { %v975_v22 = vpop.f32.mrf.mxu1  ;;  %v1336_v58 = vpop.f32.mrf.mxu0  ;;  %v3955_v38 = vsel %vm6144_vm7, %v4975_v1, %v3954_v62  ;;  %v4934_v32 = vcombine.low %v3539_v50, %v3549_v27  ;;  %v4976_v24 = vrot.slane %v4962_v33, 9  ;;  %s4447_s11 = sshll.u32 %s7860_s9, 4  ;;  %s7963_s11 = int_to_ptr.vmem [resolvable:$true] %s4447_s11 }
 0x12d   : > { %v976_v0 = vadd.f32 %v975_v22, %v7307_v37  ;;  %v7536_v28 = vadd.f32 %v1336_v58, %v960_v41  ;;  %v3961_v37 = vrot.slane %v7452_v18, 5  ;;  %v3958_v18 = vsel %vm6144_vm7, %v3956_v46, %v3957_v57  ;;  %s5668_s23 = scalar_lea.vmem %s7963_s11, 1792  ;;  %p5675_p1 = scmp.lt.s32.totalorder %s7963_s11, %s5673_s27 }
 0x12e   : > { %v5326_v30 = vpop.f32.mrf.mxu1  ;;  %v5352_v35 = vpop.f32.mrf.mxu0  ;;  %5517 = vmatmul.mubr.msk.bf16.gmra.mxu1 %vm615_vm3, %v4932_v3  ;;  %5543 = vmatmul.mubr.msk.bf16.gmra.mxu0 %vm615_vm3, %v4987_v42  ;;  %v4990_v15 = vcombine.low %v3955_v38, %v3958_v18  ;;  %v8058_v38 = vld [vmem:[#allocation8_spill] sm:$0xff]  ;;  %p5669_p12 = scmp.ne.s32.totalorder %s7963_s11, %s5668_s23  ;;  %p5676_p2 = scmp.lt.s32.totalorder %s5674_s28, %s5668_s23 }
 0x12f   : > { %v997_v2 = vadd.f32 %v5326_v30, %v7352_v53  ;;  %v7549_v41 = vadd.f32 %v5352_v35, %v981_v23  ;;  %5520 = vmatprep.mubr.msk.bf16.mxu1 %vm615_vm3, %v4933_v34  ;;  %5546 = vmatprep.mubr.msk.bf16.mxu0 %vm615_vm3, %v4988_v17  ;;  %v3963_v55 = vrot.slane %v3961_v37, 4  ;;  %v3962_v5 = vsel %vm6144_vm7, %v4976_v24, %v3961_v37 }
 0x130   : > { %v988_v10 = vpop.f32.mrf.mxu1  ;;  %v1349_v29 = vpop.f32.mrf.mxu0  ;;  %p5670_p13 = pnand %p5669_p12, %p5809_p4  ;;  %p5677_p3 = por %p5676_p2, %p5675_p1 }
 0x131   : > { %v989_v53 = vadd.f32 %v988_v10, %v7379_v54  ;;  %v7561_v43 = vadd.f32 %v1349_v29, %v973_v11 }
 0x132   : > { %v5327_v40 = vpop.f32.mrf.mxu1  ;;  %v5353_v16 = vpop.f32.mrf.mxu0  ;;  %p5671_p0 = pneg %p5670_p13 }
 0x133   : > { %v1000_v23 = vadd.f32 %v5327_v40, %v7395_v49  ;;  %v7564_v26 = vadd.f32 %v5353_v16, %v984_v45 }
 0x134   : > { %v991_v31 = vpop.f32.mrf.mxu1  ;;  %v1352_v3 = vpop.f32.mrf.mxu0  ;;  %p5678_p5 = pnand %p5677_p3, %p5671_p0 }
 0x135   : > { %v992_v42 = vadd.f32 %v991_v31, %v7432_v6  ;;  %v7568_v54 = vadd.f32 %v1352_v3, %v976_v0  ;;  %v3965_v6 = vsel %vm6144_vm7, %v3963_v55, %v3964_v7 }
 0x136   : > { %v5330_v62 = vpop.f32.mrf.mxu1  ;;  %v5356_v11 = vpop.f32.mrf.mxu0  ;;  %5521 = vmatmul.mubr.msk.bf16.gmra.mxu1 %vm615_vm3, %v4934_v32  ;;  %5547 = vmatmul.mubr.msk.bf16.gmra.mxu0 %vm615_vm3, %v4989_v20  ;;  %v4991_v13 = vcombine.low %v3962_v5, %v3965_v6  ;;  %v8059_v32 = vld [vmem:[#allocation5_spill] sm:$0xff] }
 0x137   : > { %v1013_v34 = vadd.f32 %v5330_v62, %v7462_v48  ;;  %v7573_v49 = vadd.f32 %v5356_v11, %v997_v2  ;;  %5550 = vmatprep.mubr.msk.bf16.mxu0 %vm615_vm3, %v4990_v15  ;;  %v8057_v2 = vld [vmem:[#allocation7_spill] sm:$0xff]  ;;  %v8061_v62 = vld [vmem:[#allocation9_spill] sm:$0xff] }
 0x138   : > { %v1004_v4 = vpop.f32.mrf.mxu1  ;;  %v1365_v60 = vpop.f32.mrf.mxu0 }
 0x139   : > { %v1005_v39 = vadd.f32 %v1004_v4, %v7475_v52  ;;  %v7581_v21 = vadd.f32 %v1365_v60, %v989_v53 }
 0x13a   : > { %v5331_v17 = vpop.f32.mrf.mxu1  ;;  %v5357_v8 = vpop.f32.mrf.mxu0 }
 0x13b   : > { %v1016_v48 = vadd.f32 %v5331_v17, %v7478_v56  ;;  %v7584_v36 = vadd.f32 %v5357_v8, %v1000_v23  ;;  %v8060_v23 = vld [vmem:[#allocation6_spill] sm:$0xff]  ;;  %v8064_v8 = vld [vmem:[#allocation12_spill] sm:$0xff] }
 0x13c   : > { %v1007_v45 = vpop.f32.mrf.mxu1  ;;  %v1368_v51 = vpop.f32.mrf.mxu0 }
 0x13d   : > { %v1008_v63 = vadd.f32 %v1007_v45, %v7488_v25  ;;  %v7587_v22 = vadd.f32 %v1368_v51, %v992_v42  ;;  %v8065_v51 = vld [vmem:[#allocation13_spill] sm:$0xff] }
 0x13e   : > { %v5334_v9 = vpop.f32.mrf.mxu1  ;;  %v5360_v58 = vpop.f32.mrf.mxu0  ;;  %5551 = vmatmul.mubr.msk.bf16.gmra.mxu0 %vm615_vm3, %v4991_v13 }
 0x13f   : > { %v7590_v52 = vadd.f32 %v5360_v58, %v1013_v34  ;;  %v1029_v25 = vadd.f32 %v5334_v9, %v7109_v44  ;;  %v8062_v34 = vld [vmem:[#allocation11_spill] sm:$0xff] }
 0x140   : > { %v1020_v1 = vpop.f32.mrf.mxu1  ;;  %v1381_v46 = vpop.f32.mrf.mxu0 }
 0x141   : > { %v7592_v57 = vadd.f32 %v1381_v46, %v1005_v39  ;;  %v1021_v47 = vadd.f32 %v1020_v1, %v8057_v2  ;;  %v8063_v39 = vld [vmem:[#allocation10_spill] sm:$0xff] }
 0x142   : > { %v5335_v0 = vpop.f32.mrf.mxu1  ;;  %v5361_v56 = vpop.f32.mrf.mxu0  ;;  %v8066_v46 = vld [vmem:[#allocation14_spill] sm:$0xff] }
 0x143   : > { %v7594_v30 = vadd.f32 %v5361_v56, %v1016_v48  ;;  %v1032_v18 = vadd.f32 %v5335_v0, %v8058_v38 }
 0x144   : > { %v1023_v35 = vpop.f32.mrf.mxu1  ;;  %v1384_v50 = vpop.f32.mrf.mxu0 }
 0x145   : > { %v7597_v27 = vadd.f32 %v1384_v50, %v1008_v63  ;;  %v1024_v20 = vadd.f32 %v1023_v35, %v8059_v32 }
 0x146   : > { %v5338_v12 = vpop.f32.mrf.mxu1  ;;  %v5364_v37 = vpop.f32.mrf.mxu0 }
 0x147   : > { %v7600_v33 = vadd.f32 %v5364_v37, %v1029_v25  ;;  %v1045_v15 = vadd.f32 %v5338_v12, %v8060_v23 }
 0x148   : > { %v1036_v10 = vpop.f32.mrf.mxu1  ;;  %v1397_v29 = vpop.f32.mrf.mxu0 }
 0x149   : > { %v7603_v53 = vadd.f32 %v1397_v29, %v1021_v47  ;;  %v1037_v11 = vadd.f32 %v1036_v10, %v8061_v62 }
 0x14a   : > { %v5339_v40 = vpop.f32.mrf.mxu1  ;;  %v5365_v16 = vpop.f32.mrf.mxu0 }
 0x14b   : > { %v7606_v24 = vadd.f32 %v5365_v16, %v1032_v18  ;;  %v1048_v17 = vadd.f32 %v5339_v40, %v8063_v39 }
 0x14c   : > { %v1039_v44 = vpop.f32.mrf.mxu1  ;;  %v1400_v55 = vpop.f32.mrf.mxu0 }
 0x14d   : > { %v1040_v7 = vadd.f32 %v1039_v44, %v7370_v14  ;;  %v7610_v31 = vadd.f32 %v1400_v55, %v1024_v20 }
 0x14e   : > { %v5342_v3 = vpop.f32.mrf.mxu1  ;;  %v5368_v42 = vpop.f32.mrf.mxu0 }
 0x14f   : > { %v1061_v5 = vadd.f32 %v5342_v3, %v8062_v34  ;;  %v7614_v6 = vadd.f32 %v5368_v42, %v1045_v15 }
 0x150   : > { %v1052_v4 = vpop.f32.mrf.mxu1  ;;  %v1413_v60 = vpop.f32.mrf.mxu0 }
 0x151   : > { %v1053_v13 = vadd.f32 %v1052_v4, %v8064_v8  ;;  %v7618_v48 = vadd.f32 %v1413_v60, %v1037_v11 }
 0x152   : > { %v5343_v45 = vpop.f32.mrf.mxu1  ;;  %v5369_v14 = vpop.f32.mrf.mxu0 }
 0x153   : > { %v1064_v63 = vadd.f32 %v5343_v45, %v8065_v51  ;;  %v7621_v9 = vadd.f32 %v5369_v14, %v1048_v17 }
 0x154   : > { %v1055_v58 = vpop.f32.mrf.mxu1  ;;  %v1416_v1 = vpop.f32.mrf.mxu0 }
 0x155   : > { %v1056_v0 = vadd.f32 %v1055_v58, %v8066_v46  ;;  %v7624_v56 = vadd.f32 %v1416_v1, %v1040_v7 }
 0x156   : > { %v5372_v35 = vpop.f32.mrf.mxu0  ;;  %v5378_v50 = vpop.f32.mrf.mxu1 }
 0x157   : > { %v7626_v25 = vadd.f32 %v5372_v35, %v1061_v5  ;;  %v1768_v12 = vadd.f32 %v5378_v50, %v7517_v19 }
 0x158   : > { %v1429_v37 = vpop.f32.mrf.mxu0  ;;  %v1655_v2 = vpop.f32.mrf.mxu1 }
 0x159   : > { %v7629_v47 = vadd.f32 %v1429_v37, %v1053_v13  ;;  %v1766_v10 = vadd.f32 %v1655_v2, %v7527_v61 }
 0x15a   : > { %v5373_v29 = vpop.f32.mrf.mxu0  ;;  %v5379_v38 = vpop.f32.mrf.mxu1 }
 0x15b   : > { %v7632_v18 = vadd.f32 %v5373_v29, %v1064_v63  ;;  %v1769_v40 = vadd.f32 %v5379_v38, %v7531_v59 }
 0x15c   : > { %v1432_v16 = vpop.f32.mrf.mxu0  ;;  %v1658_v32 = vpop.f32.mrf.mxu1 }
 0x15d   : > { %v7635_v20 = vadd.f32 %v1432_v16, %v1056_v0  ;;  %v1767_v44 = vadd.f32 %v1658_v32, %v7536_v28 }
 0x15e   : > { %v5382_v55 = vpop.f32.mrf.mxu1  ;;  %v5408_v19 = vpop.f32.mrf.mxu0 }
 0x15f   : > { %v1772_v23 = vadd.f32 %v5382_v55, %v7549_v41  ;;  %v7639_v15 = vadd.f32 %v5408_v19, %v1768_v12 }
 0x160   : > { %v1671_v7 = vpop.f32.mrf.mxu1  ;;  %v2295_v61 = vpop.f32.mrf.mxu0 }
 0x161   : > { %v1770_v3 = vadd.f32 %v1671_v7, %v7561_v43  ;;  %v7642_v42 = vadd.f32 %v2295_v61, %v1766_v10 }
 0x162   : > { %v5383_v62 = vpop.f32.mrf.mxu1  ;;  %v5409_v59 = vpop.f32.mrf.mxu0 }
 0x163   : > { %v1773_v11 = vadd.f32 %v5383_v62, %v7564_v26  ;;  %v7645_v34 = vadd.f32 %v5409_v59, %v1769_v40 }
 0x164   : > { %v1674_v5 = vpop.f32.mrf.mxu1  ;;  %v2298_v28 = vpop.f32.mrf.mxu0 }
 0x165   : > { %v1771_v4 = vadd.f32 %v1674_v5, %v7568_v54  ;;  %v7648_v60 = vadd.f32 %v2298_v28, %v1767_v44 }
 0x166   : > { %v5386_v41 = vpop.f32.mrf.mxu1  ;;  %v5412_v39 = vpop.f32.mrf.mxu0 }
 0x167   : > { %v1776_v17 = vadd.f32 %v5386_v41, %v7573_v49  ;;  %v7651_v8 = vadd.f32 %v5412_v39, %v1772_v23 }
 0x168   : > { %v1687_v43 = vpop.f32.mrf.mxu1  ;;  %v2311_v13 = vpop.f32.mrf.mxu0 }
 0x169   : > { %v1774_v45 = vadd.f32 %v1687_v43, %v7581_v21  ;;  %v7654_v14 = vadd.f32 %v2311_v13, %v1770_v3 }
 0x16a   : > { %v5387_v26 = vpop.f32.mrf.mxu1  ;;  %v5413_v51 = vpop.f32.mrf.mxu0 }
 0x16b   : > { %v1777_v63 = vadd.f32 %v5387_v26, %v7584_v36  ;;  %v7657_v58 = vadd.f32 %v5413_v51, %v1773_v11 }
 0x16c   : > { %v1690_v54 = vpop.f32.mrf.mxu1  ;;  %v2314_v1 = vpop.f32.mrf.mxu0 }
 0x16d   : > { %v1775_v46 = vadd.f32 %v1690_v54, %v7587_v22  ;;  %v7660_v0 = vadd.f32 %v2314_v1, %v1771_v4 }
 0x16e   : > { %v5390_v49 = vpop.f32.mrf.mxu1  ;;  %v5416_v35 = vpop.f32.mrf.mxu0 }
 0x16f   : > { %v1780_v50 = vadd.f32 %v5390_v49, %v7590_v52  ;;  %v7663_v12 = vadd.f32 %v5416_v35, %v1776_v17 }
 0x170   : > { %v1703_v21 = vpop.f32.mrf.mxu1  ;;  %v2327_v37 = vpop.f32.mrf.mxu0 }
 0x171   : > { %v1778_v2 = vadd.f32 %v1703_v21, %v7592_v57  ;;  %v7666_v10 = vadd.f32 %v2327_v37, %v1774_v45 }
 0x172   : > { %v5391_v36 = vpop.f32.mrf.mxu1  ;;  %v5417_v29 = vpop.f32.mrf.mxu0 }
 0x173   : > { %v1781_v38 = vadd.f32 %v5391_v36, %v7594_v30  ;;  %v7669_v40 = vadd.f32 %v5417_v29, %v1777_v63 }
 0x174   : > { %v1706_v22 = vpop.f32.mrf.mxu1  ;;  %v2330_v16 = vpop.f32.mrf.mxu0 }
 0x175   : > { %v1779_v32 = vadd.f32 %v1706_v22, %v7597_v27  ;;  %v7672_v44 = vadd.f32 %v2330_v16, %v1775_v46 }
 0x176   : > { %v5394_v52 = vpop.f32.mrf.mxu1  ;;  %v5420_v55 = vpop.f32.mrf.mxu0 }
 0x177   : > { %v1784_v19 = vadd.f32 %v5394_v52, %v7600_v33  ;;  %v7675_v23 = vadd.f32 %v5420_v55, %v1780_v50 }
 0x178   : > { %v1719_v57 = vpop.f32.mrf.mxu1  ;;  %v2343_v7 = vpop.f32.mrf.mxu0 }
 0x179   : > { %v1782_v61 = vadd.f32 %v1719_v57, %v7603_v53  ;;  %v7678_v3 = vadd.f32 %v2343_v7, %v1778_v2 }
 0x17a   : > { %v5395_v30 = vpop.f32.mrf.mxu1  ;;  %v5421_v62 = vpop.f32.mrf.mxu0 }
 0x17b   : > { %v1785_v59 = vadd.f32 %v5395_v30, %v7606_v24  ;;  %v7681_v11 = vadd.f32 %v5421_v62, %v1781_v38 }
 0x17c   : > { %v1722_v27 = vpop.f32.mrf.mxu1  ;;  %v2346_v5 = vpop.f32.mrf.mxu0 }
 0x17d   : > { %v1783_v28 = vadd.f32 %v1722_v27, %v7610_v31  ;;  %v7684_v4 = vadd.f32 %v2346_v5, %v1779_v32 }
 0x17e   : > { %v5398_v33 = vpop.f32.mrf.mxu1  ;;  %v5424_v41 = vpop.f32.mrf.mxu0 }
 0x17f   : > { %v1788_v39 = vadd.f32 %v5398_v33, %v7614_v6  ;;  %v7687_v17 = vadd.f32 %v5424_v41, %v1784_v19 }
 0x180   : > { %v1735_v53 = vpop.f32.mrf.mxu1  ;;  %v2359_v43 = vpop.f32.mrf.mxu0 }
 0x181   : > { %v1786_v13 = vadd.f32 %v1735_v53, %v7618_v48  ;;  %v7690_v45 = vadd.f32 %v2359_v43, %v1782_v61 }
 0x182   : > { %v5399_v24 = vpop.f32.mrf.mxu1  ;;  %v5425_v26 = vpop.f32.mrf.mxu0 }
 0x183   : > { %8067 = vst [vmem:[#allocation7_spill] sm:$0xff] %v7690_v45  ;;  %v1789_v51 = vadd.f32 %v5399_v24, %v7621_v9  ;;  %v7693_v63 = vadd.f32 %v5425_v26, %v1785_v59 }
 0x184   : > { %v1738_v31 = vpop.f32.mrf.mxu1  ;;  %v2362_v54 = vpop.f32.mrf.mxu0 }
 0x185   : > { %8068 = vst [vmem:[#allocation8_spill] sm:$0xff] %v7693_v63  ;;  %v1787_v1 = vadd.f32 %v1738_v31, %v7624_v56  ;;  %v7696_v46 = vadd.f32 %v2362_v54, %v1783_v28 }
 0x186   : > { %v5402_v6 = vpop.f32.mrf.mxu1  ;;  %v5428_v49 = vpop.f32.mrf.mxu0 }
 0x187   : > { %8069 = vst [vmem:[#allocation5_spill] sm:$0xff] %v7696_v46  ;;  %v1792_v35 = vadd.f32 %v5402_v6, %v7626_v25  ;;  %v7699_v50 = vadd.f32 %v5428_v49, %v1788_v39 }
 0x188   : > { %v1751_v48 = vpop.f32.mrf.mxu1  ;;  %v2375_v21 = vpop.f32.mrf.mxu0 }
 0x189   : > { %8070 = vst [vmem:[#allocation6_spill] sm:$0xff] %v7699_v50  ;;  %v1790_v37 = vadd.f32 %v1751_v48, %v7629_v47  ;;  %v7702_v2 = vadd.f32 %v2375_v21, %v1786_v13 }
 0x18a   : > { %v5403_v9 = vpop.f32.mrf.mxu1  ;;  %v5429_v36 = vpop.f32.mrf.mxu0 }
 0x18b   : > { %8071 = vst [vmem:[#allocation9_spill] sm:$0xff] %v7702_v2  ;;  %v1793_v29 = vadd.f32 %v5403_v9, %v7632_v18  ;;  %v7705_v38 = vadd.f32 %v5429_v36, %v1789_v51 }
 0x18c   : > { %v1754_v56 = vpop.f32.mrf.mxu1  ;;  %v2378_v22 = vpop.f32.mrf.mxu0 }
 0x18d   : > { %8072 = vst [vmem:[#allocation11_spill] sm:$0xff] %v7705_v38  ;;  %v1791_v16 = vadd.f32 %v1754_v56, %v7635_v20  ;;  %v7708_v32 = vadd.f32 %v2378_v22, %v1787_v1 }
 0x18e   : > { %v5432_v25 = vpop.f32.mrf.mxu0  ;;  %v7710_v52 = vpop.f32.mrf.mxu1 }
 0x18f   : > { %8073 = vst [vmem:[#allocation10_spill] sm:$0xff] %v7708_v32  ;;  %v7712_v55 = vadd.f32 %v5432_v25, %v1792_v35 }
 0x190   : > { %v2391_v47 = vpop.f32.mrf.mxu0  ;;  %v7714_v19 = vpop.f32.mrf.mxu1 }
 0x191   : > { %8074 = vst [vmem:[#allocation12_spill] sm:$0xff] %v7712_v55  ;;  %v7716_v57 = vadd.f32 %v2391_v47, %v1790_v37 }
 0x192   : > { %v5433_v7 = vpop.f32.mrf.mxu0  ;;  %v7718_v18 = vpop.f32.mrf.mxu1 }
 0x193   : > { %8075 = vst [vmem:[#allocation13_spill] sm:$0xff] %v7716_v57  ;;  %v7720_v61 = vadd.f32 %v5433_v7, %v1793_v29 }
 0x194   : > { %v2394_v30 = vpop.f32.mrf.mxu0  ;;  %v7722_v62 = vpop.f32.mrf.mxu1 }
 0x195   : > { %8076 = vst [vmem:[#allocation14_spill] sm:$0xff] %v7720_v61  ;;  %v7724_v20 = vadd.f32 %v2394_v30, %v1791_v16 }
 0x196   : > { %v7726_v59 = vpop.f32.mrf.mxu1  ;;  %v5468_v27 = vpop.f32.mrf.mxu0 }
 0x197   : > { %8077 = vst [vmem:[#allocation15_spill] sm:$0xff] %v7724_v20 }
 0x198   : > { %v7728_v5 = vpop.f32.mrf.mxu1  ;;  %v3033_v28 = vpop.f32.mrf.mxu0 }
 0x19a   : > { %v7730_v33 = vpop.f32.mrf.mxu1  ;;  %v5469_v41 = vpop.f32.mrf.mxu0 }
 0x19c   : > { %v7732_v39 = vpop.f32.mrf.mxu1  ;;  %v7734_v53 = vpop.f32.mrf.mxu0 }
 0x19e   : > { %v7736_v43 = vpop.f32.mrf.mxu1  ;;  %v7738_v13 = vpop.f32.mrf.mxu0 }
 0x1a0   : > { %v7740_v24 = vpop.f32.mrf.mxu1  ;;  %v7742_v26 = vpop.f32.mrf.mxu0 }
 0x1a2   : > { %v7744_v51 = vpop.f32.mrf.mxu1  ;;  %v7746_v31 = vpop.f32.mrf.mxu0 }
 0x1a4   : > { %v7748_v54 = vpop.f32.mrf.mxu1  ;;  %v7750_v1 = vpop.f32.mrf.mxu0 }
 0x1a6   : > { %v7752_v6 = vpop.f32.mrf.mxu1  ;;  %v7754_v49 = vpop.f32.mrf.mxu0 }
 0x1a8   : > { %v7756_v35 = vpop.f32.mrf.mxu1  ;;  %v7758_v48 = vpop.f32.mrf.mxu0 }
 0x1aa   : > { %v7760_v21 = vpop.f32.mrf.mxu1  ;;  %v7762_v37 = vpop.f32.mrf.mxu0 }
 0x1ac   : > { %v7764_v9 = vpop.f32.mrf.mxu1  ;;  %v7766_v36 = vpop.f32.mrf.mxu0 }
 0x1ae   : > { %v7768_v29 = vpop.f32.mrf.mxu1  ;;  %v7770_v56 = vpop.f32.mrf.mxu0 }
 0x1b0   : > { %v7772_v22 = vpop.f32.mrf.mxu1  ;;  %v7774_v16 = vpop.f32.mrf.mxu0 }
 0x1b1   : > { %8078 = vst [vmem:[#allocation16_spill] sm:$0xff] %v7772_v22 }
 0x1b2   : > { %v7776_v25 = vpop.f32.mrf.mxu1  ;;  %v7778_v47 = vpop.f32.mrf.mxu0 }
 0x1b3   : > { %8079 = vst [vmem:[#allocation17_spill] sm:$0xff] %v7776_v25 }
 0x1b4   : > { %v7780_v7 = vpop.f32.mrf.mxu1  ;;  %v7782_v30 = vpop.f32.mrf.mxu0 }
 0x1b5   : > { %8080 = vst [vmem:[#allocation18_spill] sm:$0xff] %v7780_v7  ;;  %8081 = vst [vmem:[#allocation19_spill] sm:$0xff] %v7782_v30 }
 0x1b6   : > { %v7784_v20 = vpop.f32.mrf.mxu1  ;;  %v7786_v61 = vpop.f32.mrf.mxu0 }
 0x1b7   : > { %8082 = vst [vmem:[#allocation20_spill] sm:$0xff] %v7784_v20  ;;  %8083 = vst [vmem:[#allocation21_spill] sm:$0xff] %v7786_v61 }
 0x1b8   : > { %v7788_v57 = vpop.f32.mrf.mxu1  ;;  %v7790_v55 = vpop.f32.mrf.mxu0 }
 0x1b9   : > { %8084 = vst [vmem:[#allocation22_spill] sm:$0xff] %v7788_v57  ;;  %8085 = vst [vmem:[#allocation23_spill] sm:$0xff] %v7790_v55 }
 0x1ba   : > { %v7792_v32 = vpop.f32.mrf.mxu1  ;;  %v7794_v38 = vpop.f32.mrf.mxu0 }
 0x1bb   : > { %8086 = vst [vmem:[#allocation24_spill] sm:$0xff] %v7792_v32  ;;  %8087 = vst [vmem:[#allocation25_spill] sm:$0xff] %v7794_v38 }
 0x1bc   : > { %v7796_v2 = vpop.f32.mrf.mxu1  ;;  %v7798_v50 = vpop.f32.mrf.mxu0 }
 0x1bd   : > { %8088 = vst [vmem:[#allocation26_spill] sm:$0xff] %v7796_v2  ;;  %8089 = vst [vmem:[#allocation27_spill] sm:$0xff] %v7798_v50 }
 0x1be   : > { %v7800_v46 = vpop.f32.mrf.mxu1  ;;  %v7802_v7 = vpop.f32.mrf.mxu0 }
 0x1bf   : > { %8090 = vst [vmem:[#allocation28_spill] sm:$0xff] %v7800_v46  ;;  %8091 = vst [vmem:[#allocation29_spill] sm:$0xff] %v7802_v7  ;;  %v2824_v7 = vadd.f32 %v7710_v52, %v7639_v15  ;;  %v2823_v15 = vadd.f32 %v7722_v62, %v7648_v60  ;;  %v2829_v62 = vadd.f32 %v7730_v33, %v7657_v58 }
 0x1c0   : > { %v7804_v25 = vpop.f32.mrf.mxu1  ;;  %v7806_v20 = vpop.f32.mrf.mxu0 }
 0x1c1   : > { %8092 = vst [vmem:[#allocation30_spill] sm:$0xff] %v7804_v25  ;;  %8093 = vst [vmem:[#allocation31_spill] sm:$0xff] %v7806_v20 }
 0x1c2   : > { %v7808_v63 = vpop.f32.mrf.mxu1  ;;  %v7810_v57 = vpop.f32.mrf.mxu0 }
 0x1c3   : > { %8094 = vst [vmem:[#allocation32_spill] sm:$0xff] %v7808_v63  ;;  %8095 = vst [vmem:[#allocation33_spill] sm:$0xff] %v7810_v57  ;;  %v2822_v63 = vadd.f32 %v7714_v19, %v7642_v42  ;;  %v3146_v57 = vadd.f32 %v5468_v27, %v2824_v7  ;;  %v7835_v42 = vld [vmem:[%s8015_s2] ss:$0 sm:$0xff] }
 0x1c4   : > { %v7812_v55 = vpop.f32.mrf.mxu1  ;;  %v7814_v32 = vpop.f32.mrf.mxu0 }
 0x1c5   : > { %8096 = vst [vmem:[#allocation34_spill] sm:$0xff] %v7812_v55  ;;  %8097 = vst [vmem:[#allocation35_spill] sm:$0xff] %v7814_v32  ;;  %v3144_v32 = vadd.f32 %v3033_v28, %v2822_v63  ;;  %v3145_v63 = vadd.f32 %v7734_v53, %v2823_v15 }
 0x1c6   : > { %v7816_v38 = vpop.f32.mrf.mxu0  ;;  %v5498_v2 = vpop.f32.mrf.mxu1 }
 0x1c7   : > { %8098 = vst [vmem:[#allocation36_spill] sm:$0xff] %v7816_v38  ;;  %v2825_v38 = vadd.f32 %v7718_v18, %v7645_v34  ;;  %v2828_v34 = vadd.f32 %v7726_v59, %v7651_v8 }
 0x1c8   : > { %v7818_v50 = vpop.f32.mrf.mxu0  ;;  %v3673_v46 = vpop.f32.mrf.mxu1 }
 0x1c9   : > { %8099 = vst [vmem:[#allocation37_spill] sm:$0xff] %v7818_v50  ;;  %v3786_v50 = vadd.f32 %v5498_v2, %v3146_v57  ;;  %v3147_v52 = vadd.f32 %v5469_v41, %v2825_v38 }
 0x1ca   : > { %v7822_v25 = vpop.f32.mrf.mxu0  ;;  %v5499_v20 = vpop.f32.mrf.mxu1 }
 0x1cb   : > { %8100 = vst [vmem:[#allocation38_spill] sm:$0xff] %v7822_v25  ;;  %v3784_v25 = vadd.f32 %v3673_v46, %v3144_v32  ;;  %v3787_v2 = vadd.f32 %v5499_v20, %v3147_v52  ;;  %v3150_v46 = vadd.f32 %v7738_v13, %v2828_v34 }
 0x1cc   : > { %v7826_v22 = vpop.f32.mrf.mxu0  ;;  %v3676_v55 = vpop.f32.mrf.mxu1 }
 0x1ce   : > { %v5502_v45 = vpop.f32.mrf.mxu1  ;;  %v5528_v61 = vpop.f32.mrf.mxu0 }
 0x1cf   : > { %v4202_v30 = vadd.f32 %v5528_v61, %v3786_v50  ;;  %v3785_v50 = vadd.f32 %v3676_v55, %v3145_v63  ;;  %v2826_v61 = vadd.f32 %v7728_v5, %v7654_v14  ;;  %v3790_v59 = vadd.f32 %v5502_v45, %v3150_v46 }
 0x1d0   : > { %v3689_v19 = vpop.f32.mrf.mxu1  ;;  %v4089_v27 = vpop.f32.mrf.mxu0  ;;  %v2827_v55 = vadd.f32 %v7732_v39, %v7660_v0  ;;  %v3151_v14 = vadd.f32 %v7746_v31, %v2829_v62  ;;  %v2832_v45 = vadd.f32 %v7736_v43, %v7663_v12  ;;  %v2833_v46 = vadd.f32 %v7744_v51, %v7669_v40 }
 0x1d1   : > { %v4200_v57 = vadd.f32 %v4089_v27, %v3784_v25  ;;  %v4237_v32 = vadd.f32 %v7835_v42, %v4202_v30  ;;  %v3148_v13 = vadd.f32 %v7742_v26, %v2826_v61 }
 0x1d2   : > { %v5503_v60 = vpop.f32.mrf.mxu1  ;;  %v5529_v38 = vpop.f32.mrf.mxu0  ;;  %v3149_v15 = vadd.f32 %v7750_v1, %v2827_v55  ;;  %v3154_v31 = vadd.f32 %v7754_v49, %v2832_v45 }
 0x1d3   : > { %v4203_v18 = vadd.f32 %v5529_v38, %v3787_v2  ;;  %v4235_v28 = vadd.f32 %v7835_v42, %v4200_v57  ;;  %v4265_v58 = vmax.f32 %v4237_v32, 0.0  ;;  %v3788_v52 = vadd.f32 %v3689_v19, %v3148_v13 }
 0x1d4   : > { %v3692_v8 = vpop.f32.mrf.mxu1  ;;  %v4092_v20 = vpop.f32.mrf.mxu0  ;;  %v3791_v39 = vadd.f32 %v5503_v60, %v3151_v14  ;;  %v2830_v60 = vadd.f32 %v7740_v24, %v7666_v10 }
 0x1d5   : > { %v4238_v41 = vadd.f32 %v7835_v42, %v4203_v18  ;;  %v4201_v53 = vadd.f32 %v4092_v20, %v3785_v50  ;;  %v4263_v0 = vmax.f32 %v4235_v28, 0.0  ;;  %v3789_v12 = vadd.f32 %v3692_v8, %v3149_v15 }
 0x1d6   : > { %v5506_v5 = vpop.f32.mrf.mxu1  ;;  %v5532_v25 = vpop.f32.mrf.mxu0  ;;  %v2831_v8 = vadd.f32 %v7748_v54, %v7672_v44  ;;  %v3152_v20 = vadd.f32 %v7758_v48, %v2830_v60  ;;  %v2837_v15 = vadd.f32 %v7760_v21, %v7681_v11 }
 0x1d7   : > { %v4266_v33 = vmax.f32 %v4238_v41, 0.0  ;;  %v4236_v7 = vadd.f32 %v7835_v42, %v4201_v53  ;;  %v4206_v30 = vadd.f32 %v5532_v25, %v3790_v59  ;;  %v3794_v32 = vadd.f32 %v5506_v5, %v3154_v31 }
 0x1d8   : > { %v3705_v27 = vpop.f32.mrf.mxu1  ;;  %v4105_v34 = vpop.f32.mrf.mxu0  ;;  %v3155_v59 = vadd.f32 %v7762_v37, %v2833_v46  ;;  %v2836_v53 = vadd.f32 %v7752_v6, %v7675_v23  ;;  %v3153_v55 = vadd.f32 %v7766_v36, %v2831_v8  ;;  %v2834_v36 = vadd.f32 %v7756_v35, %v7678_v3  ;;  %v8102_v46 = vld [vmem:[#allocation21_spill] sm:$0xff]  ;;  %v8103_v8 = vld [vmem:[#allocation7_spill] sm:$0xff] }
 0x1d9   : > { %v5074_v26 = vpack.c.bf16 %v4266_v33, %v4265_v58  ;;  %v4264_v63 = vmax.f32 %v4236_v7, 0.0  ;;  %v4204_v2 = vadd.f32 %v4105_v34, %v3788_v52  ;;  %v4241_v1 = vadd.f32 %v7835_v42, %v4206_v30 }
 0x1da   : > { %v5507_v57 = vpop.f32.mrf.mxu1  ;;  %v5533_v38 = vpop.f32.mrf.mxu0  ;;  %v3792_v13 = vadd.f32 %v3705_v27, %v3152_v20  ;;  %v3158_v25 = vadd.f32 %v7770_v56, %v2836_v53  ;;  %v3159_v31 = vadd.f32 %v7778_v47, %v2837_v15  ;;  %v8104_v20 = vld [vmem:[#allocation16_spill] sm:$0xff] }
 0x1db   : > { %5136 = vst [vmem:[%s7860_s9 + $0x8] sm:$0xff] %v5074_v26   ;;  %v5069_v43 = vpack.c.bf16 %v4264_v63, %v4263_v0  ;;  %v4207_v19 = vadd.f32 %v5533_v38, %v3791_v39  ;;  %v4239_v18 = vadd.f32 %v7835_v42, %v4204_v2  ;;  %v4269_v28 = vmax.f32 %v4241_v1, 0.0 }
 0x1dc   : > { %v3708_v49 = vpop.f32.mrf.mxu1  ;;  %v4108_v50 = vpop.f32.mrf.mxu0  ;;  %v3795_v48 = vadd.f32 %v5507_v57, %v3155_v59  ;;  %v2835_v26 = vadd.f32 %v7764_v9, %v7684_v4  ;;  %v3156_v63 = vadd.f32 %v7774_v16, %v2834_v36  ;;  %v2840_v38 = vadd.f32 %v7768_v29, %v7687_v17  ;;  %v8112_v36 = vld [vmem:[#allocation20_spill] sm:$0xff] }
 0x1dd   : > { %5070 = vst [vmem:[%s7860_s9] sm:$0xff] %v5069_v43   ;;  %v4242_v61 = vadd.f32 %v7835_v42, %v4207_v19  ;;  %v4205_v62 = vadd.f32 %v4108_v50, %v3789_v12  ;;  %v4267_v54 = vmax.f32 %v4239_v18, 0.0  ;;  %v3793_v30 = vadd.f32 %v3708_v49, %v3153_v55  ;;  %v8101_v12 = vld [vmem:[#allocation19_spill] sm:$0xff] }
 0x1de   : > { %v5510_v10 = vpop.f32.mrf.mxu1  ;;  %v5536_v24 = vpop.f32.mrf.mxu0  ;;  %v3157_v43 = vadd.f32 %v8101_v12, %v2835_v26  ;;  %v3162_v49 = vadd.f32 %v8102_v46, %v2840_v38  ;;  %v2838_v59 = vadd.f32 %v8104_v20, %v8103_v8  ;;  %v8122_v20 = vld [vmem:[#allocation33_spill] sm:$0xff] }
 0x1df   : > { %v4270_v40 = vmax.f32 %v4242_v61, 0.0  ;;  %v4240_v51 = vadd.f32 %v7835_v42, %v4205_v62  ;;  %v4210_v41 = vadd.f32 %v5536_v24, %v3794_v32  ;;  %v3798_v34 = vadd.f32 %v5510_v10, %v3158_v25  ;;  %v8105_v10 = vld [vmem:[#allocation8_spill] sm:$0xff]  ;;  %v8106_v24 = vld [vmem:[#allocation17_spill] sm:$0xff] }
 0x1e0   : > { %v3721_v14 = vpop.f32.mrf.mxu1  ;;  %v4121_v44 = vpop.f32.mrf.mxu0 }
 0x1e1   : > { %v5084_v37 = vpack.c.bf16 %v4270_v40, %v4269_v28  ;;  %v4268_v5 = vmax.f32 %v4240_v51, 0.0  ;;  %v4208_v58 = vadd.f32 %v4121_v44, %v3792_v13  ;;  %v4245_v23 = vadd.f32 %v7835_v42, %v4210_v41  ;;  %v8108_v44 = vld [vmem:[#allocation18_spill] sm:$0xff] }
 0x1e2   : > { %v5511_v33 = vpop.f32.mrf.mxu1  ;;  %v5537_v7 = vpop.f32.mrf.mxu0  ;;  %v3796_v1 = vadd.f32 %v3721_v14, %v3156_v63  ;;  %v2841_v28 = vadd.f32 %v8106_v24, %v8105_v10  ;;  %v8107_v14 = vld [vmem:[#allocation5_spill] sm:$0xff] }
 0x1e3   : > { %5138 = vst [vmem:[%s7860_s9 + $0x18] sm:$0xff] %v5084_v37   ;;  %v5079_v45 = vpack.c.bf16 %v4268_v5, %v4267_v54  ;;  %v4211_v6 = vadd.f32 %v5537_v7, %v3795_v48  ;;  %v4243_v56 = vadd.f32 %v7835_v42, %v4208_v58  ;;  %v4273_v2 = vmax.f32 %v4245_v23, 0.0  ;;  %v8109_v48 = vld [vmem:[#allocation23_spill] sm:$0xff]  ;;  %v8110_v5 = vld [vmem:[#allocation25_spill] sm:$0xff] }
 0x1e4   : > { %v3724_v52 = vpop.f32.mrf.mxu1  ;;  %v4124_v27 = vpop.f32.mrf.mxu0  ;;  %v3799_v16 = vadd.f32 %v5511_v33, %v3159_v31  ;;  %v2839_v54 = vadd.f32 %v8108_v44, %v8107_v14  ;;  %v3160_v37 = vadd.f32 %v8109_v48, %v2838_v59  ;;  %v3163_v25 = vadd.f32 %v8110_v5, %v2841_v28  ;;  %v8125_v14 = vld [vmem:[#allocation35_spill] sm:$0xff] }
 0x1e5   : > { %5137 = vst [vmem:[%s7860_s9 + $0x10] sm:$0xff] %v5079_v45   ;;  %v4246_v0 = vadd.f32 %v7835_v42, %v4211_v6  ;;  %v4209_v39 = vadd.f32 %v4124_v27, %v3793_v30  ;;  %v4271_v9 = vmax.f32 %v4243_v56, 0.0  ;;  %v3797_v61 = vadd.f32 %v3724_v52, %v3157_v43  ;;  %v8111_v6 = vld [vmem:[#allocation6_spill] sm:$0xff]  ;;  %v8113_v52 = vld [vmem:[#allocation27_spill] sm:$0xff] }
 0x1e6   : > { %v5514_v3 = vpop.f32.mrf.mxu1  ;;  %v5540_v35 = vpop.f32.mrf.mxu0  ;;  %v2844_v15 = vadd.f32 %v8112_v36, %v8111_v6  ;;  %v3161_v27 = vadd.f32 %v8113_v52, %v2839_v54 }
 0x1e7   : > { %v4274_v11 = vmax.f32 %v4246_v0, 0.0  ;;  %v4244_v21 = vadd.f32 %v7835_v42, %v4209_v39  ;;  %v4214_v57 = vadd.f32 %v5540_v35, %v3798_v34  ;;  %v3802_v41 = vadd.f32 %v5514_v3, %v3162_v49  ;;  %v8114_v3 = vld [vmem:[#allocation29_spill] sm:$0xff] }
 0x1e8   : > { %v3737_v19 = vpop.f32.mrf.mxu1  ;;  %v4137_v4 = vpop.f32.mrf.mxu0  ;;  %v3166_v35 = vadd.f32 %v8114_v3, %v2844_v15 }
 0x1e9   : > { %v5094_v47 = vpack.c.bf16 %v4274_v11, %v4273_v2  ;;  %v4272_v60 = vmax.f32 %v4244_v21, 0.0  ;;  %v4212_v50 = vadd.f32 %v4137_v4, %v3796_v1  ;;  %v4249_v17 = vadd.f32 %v7835_v42, %v4214_v57  ;;  %v8115_v1 = vld [vmem:[#allocation9_spill] sm:$0xff] }
 0x1ea   : > { %v5515_v32 = vpop.f32.mrf.mxu1  ;;  %v5541_v18 = vpop.f32.mrf.mxu0  ;;  %v3800_v34 = vadd.f32 %v3737_v19, %v3160_v37  ;;  %v8116_v19 = vld [vmem:[#allocation22_spill] sm:$0xff] }
 0x1eb   : > { %5140 = vst [vmem:[%s7860_s9 + $0x28] sm:$0xff] %v5094_v47   ;;  %v5089_v62 = vpack.c.bf16 %v4272_v60, %v4271_v9  ;;  %v4215_v29 = vadd.f32 %v5541_v18, %v3799_v16  ;;  %v4247_v53 = vadd.f32 %v7835_v42, %v4212_v50  ;;  %v4277_v7 = vmax.f32 %v4249_v17, 0.0  ;;  %v8117_v9 = vld [vmem:[#allocation11_spill] sm:$0xff]  ;;  %v8118_v16 = vld [vmem:[#allocation24_spill] sm:$0xff] }
 0x1ec   : > { %v3740_v40 = vpop.f32.mrf.mxu1  ;;  %v4140_v51 = vpop.f32.mrf.mxu0  ;;  %v3803_v26 = vadd.f32 %v5515_v32, %v3163_v25  ;;  %v2842_v4 = vadd.f32 %v8116_v19, %v8115_v1  ;;  %v2845_v47 = vadd.f32 %v8118_v16, %v8117_v9  ;;  %v8134_v1 = vld [vmem:[#allocation38_spill] sm:$0xff] }
 0x1ed   : > { %5139 = vst [vmem:[%s7860_s9 + $0x20] sm:$0xff] %v5089_v62   ;;  %v4250_v55 = vadd.f32 %v7835_v42, %v4215_v29  ;;  %v4213_v13 = vadd.f32 %v4140_v51, %v3797_v61  ;;  %v4275_v39 = vmax.f32 %v4247_v53, 0.0  ;;  %v3801_v57 = vadd.f32 %v3740_v40, %v3161_v27  ;;  %v8119_v61 = vld [vmem:[#allocation10_spill] sm:$0xff]  ;;  %v8121_v29 = vld [vmem:[#allocation31_spill] sm:$0xff]  ;;  %v8123_v53 = vld [vmem:[#allocation12_spill] sm:$0xff] }
 0x1ee   : > { %v5518_v58 = vpop.f32.mrf.mxu1  ;;  %v5544_v33 = vpop.f32.mrf.mxu0  ;;  %v8120_v62 = vld [vmem:[#allocation26_spill] sm:$0xff]  ;;  %v3164_v8 = vadd.f32 %v8121_v29, %v2842_v4  ;;  %v3167_v59 = vadd.f32 %v8122_v20, %v2845_v47 }
 0x1ef   : > { %v4278_v30 = vmax.f32 %v4250_v55, 0.0  ;;  %v4248_v45 = vadd.f32 %v7835_v42, %v4213_v13  ;;  %v4218_v23 = vadd.f32 %v5544_v33, %v3802_v41  ;;  %v3806_v49 = vadd.f32 %v5518_v58, %v3166_v35  ;;  %v8124_v55 = vld [vmem:[#allocation28_spill] sm:$0xff] }
 0x1f0   : > { %v3753_v56 = vpop.f32.mrf.mxu1  ;;  %v4153_v0 = vpop.f32.mrf.mxu0  ;;  %v2843_v17 = vadd.f32 %v8120_v62, %v8119_v61  ;;  %v2848_v13 = vadd.f32 %v8124_v55, %v8123_v53 }
 0x1f1   : > { %v5104_v63 = vpack.c.bf16 %v4278_v30, %v4277_v7  ;;  %v4276_v31 = vmax.f32 %v4248_v45, 0.0  ;;  %v4216_v2 = vadd.f32 %v4153_v0, %v3800_v34  ;;  %v4253_v12 = vadd.f32 %v7835_v42, %v4218_v23  ;;  %v8126_v7 = vld [vmem:[#allocation13_spill] sm:$0xff]  ;;  %v8127_v30 = vld [vmem:[#allocation30_spill] sm:$0xff]  ;;  %v8128_v23 = vld [vmem:[#allocation36_spill] sm:$0xff] }
 0x1f2   : > { %v5519_v11 = vpop.f32.mrf.mxu1  ;;  %v5545_v21 = vpop.f32.mrf.mxu0  ;;  %v3165_v44 = vadd.f32 %v8125_v14, %v2843_v17  ;;  %v3804_v54 = vadd.f32 %v3753_v56, %v3164_v8  ;;  %v2846_v45 = vadd.f32 %v8127_v30, %v8126_v7  ;;  %v3170_v6 = vadd.f32 %v8128_v23, %v2848_v13  ;;  %v8129_v0 = vld [vmem:[#allocation14_spill] sm:$0xff] }
 0x1f3   : > { %5142 = vst [vmem:[%s7860_s9 + $0x38] sm:$0xff] %v5104_v63   ;;  %v5099_v38 = vpack.c.bf16 %v4276_v31, %v4275_v39  ;;  %v4219_v43 = vadd.f32 %v5545_v21, %v3803_v26  ;;  %v4251_v50 = vadd.f32 %v7835_v42, %v4216_v2  ;;  %v4281_v28 = vmax.f32 %v4253_v12, 0.0  ;;  %v8130_v39 = vld [vmem:[#allocation32_spill] sm:$0xff]  ;;  %v8131_v63 = vld [vmem:[#allocation37_spill] sm:$0xff]  ;;  %v8133_v12 = vld [vmem:[#allocation34_spill] sm:$0xff] }
 0x1f4   : > { %v3756_v60 = vpop.f32.mrf.mxu1  ;;  %v4156_v46 = vpop.f32.mrf.mxu0  ;;  %v3807_v25 = vadd.f32 %v5519_v11, %v3167_v59  ;;  %v2849_v26 = vadd.f32 %v8130_v39, %v8129_v0  ;;  %v3168_v31 = vadd.f32 %v8131_v63, %v2846_v45 }
 0x1f5   : > { %5141 = vst [vmem:[%s7860_s9 + $0x30] sm:$0xff] %v5099_v38   ;;  %v4254_v32 = vadd.f32 %v7835_v42, %v4219_v43  ;;  %v4217_v18 = vadd.f32 %v4156_v46, %v3801_v57  ;;  %v4279_v5 = vmax.f32 %v4251_v50, 0.0  ;;  %v3805_v52 = vadd.f32 %v3756_v60, %v3165_v44  ;;  %v8132_v38 = vld [vmem:[#allocation15_spill] sm:$0xff] }
 0x1f6   : > { %v5522_v10 = vpop.f32.mrf.mxu1  ;;  %v5548_v24 = vpop.f32.mrf.mxu0  ;;  %v2847_v43 = vadd.f32 %v8133_v12, %v8132_v38  ;;  %v3171_v19 = vadd.f32 %v8134_v1, %v2849_v26 }
 0x1f7   : > { %v4282_v40 = vmax.f32 %v4254_v32, 0.0  ;;  %v4252_v51 = vadd.f32 %v7835_v42, %v4217_v18  ;;  %v4222_v41 = vadd.f32 %v5548_v24, %v3806_v49  ;;  %v3810_v2 = vadd.f32 %v5522_v10, %v3170_v6 }
 0x1f8   : > { %v3769_v48 = vpop.f32.mrf.mxu1  ;;  %v4169_v37 = vpop.f32.mrf.mxu0  ;;  %v3169_v49 = vadd.f32 %v7826_v22, %v2847_v43 }
 0x1f9   : > { %v5114_v58 = vpack.c.bf16 %v4282_v40, %v4281_v28  ;;  %v4280_v33 = vmax.f32 %v4252_v51, 0.0  ;;  %v4220_v36 = vadd.f32 %v4169_v37, %v3804_v54  ;;  %v4257_v34 = vadd.f32 %v7835_v42, %v4222_v41 }
 0x1fa   : > { %v5549_v15 = vpop.f32.mrf.mxu0  ;;  %v5523_v3 = vpop.f32.mrf.mxu1  ;;  %v3808_v4 = vadd.f32 %v3769_v48, %v3168_v31 }
 0x1fb   : > { %5144 = vst [vmem:[%s7860_s9 + $0x48] sm:$0xff] %v5114_v58   ;;  %v5109_v27 = vpack.c.bf16 %v4280_v33, %v4279_v5  ;;  %v4223_v56 = vadd.f32 %v5549_v15, %v3807_v25  ;;  %v4255_v11 = vadd.f32 %v7835_v42, %v4220_v36  ;;  %v4285_v16 = vmax.f32 %v4257_v34, 0.0 }
 0x1fc   : > { %v4172_v35 = vpop.f32.mrf.mxu0  ;;  %v3811_v50 = vadd.f32 %v5523_v3, %v3171_v19  ;;  %v3772_v32 = vpop.f32.mrf.mxu1 }
 0x1fd   : > { %5143 = vst [vmem:[%s7860_s9 + $0x40] sm:$0xff] %v5109_v27   ;;  %v4258_v21 = vadd.f32 %v7835_v42, %v4223_v56  ;;  %v4221_v57 = vadd.f32 %v4172_v35, %v3805_v52  ;;  %v4283_v61 = vmax.f32 %v4255_v11, 0.0  ;;  %v3809_v20 = vadd.f32 %v3772_v32, %v3169_v49 }
 0x1fe   : > { %v5552_v9 = vpop.f32.mrf.mxu0 }
 0x1ff   : > { %v4286_v47 = vmax.f32 %v4258_v21, 0.0  ;;  %v4256_v60 = vadd.f32 %v7835_v42, %v4221_v57  ;;  %v4226_v46 = vadd.f32 %v5552_v9, %v3810_v2 }
 0x200   : > { %v4185_v18 = vpop.f32.mrf.mxu0 }
 0x201   : > { %v5124_v62 = vpack.c.bf16 %v4286_v47, %v4285_v16  ;;  %v4284_v17 = vmax.f32 %v4256_v60, 0.0  ;;  %v4224_v29 = vadd.f32 %v4185_v18, %v3808_v4  ;;  %v4261_v10 = vadd.f32 %v7835_v42, %v4226_v46 }
 0x202   : > { %v5553_v8 = vpop.f32.mrf.mxu0 }
 0x203   : > { %5146 = vst [vmem:[%s7860_s9 + $0x58] sm:$0xff] %v5124_v62   ;;  %v5119_v59 = vpack.c.bf16 %v4284_v17, %v4283_v61  ;;  %v4227_v24 = vadd.f32 %v5553_v8, %v3811_v50  ;;  %v4259_v22 = vadd.f32 %v7835_v42, %v4224_v29  ;;  %v4289_v41 = vmax.f32 %v4261_v10, 0.0 }
 0x204   : > { %v4188_v28 = vpop.f32.mrf.mxu0 }
 0x205   : > { %5145 = vst [vmem:[%s7860_s9 + $0x50] sm:$0xff] %v5119_v59   ;;  %v4262_v40 = vadd.f32 %v7835_v42, %v4227_v24  ;;  %v4225_v51 = vadd.f32 %v4188_v28, %v3809_v20  ;;  %v4287_v13 = vmax.f32 %v4259_v22, 0.0 }
 0x207   : > { %v4290_v53 = vmax.f32 %v4262_v40, 0.0  ;;  %v4260_v55 = vadd.f32 %v7835_v42, %v4225_v51 }
 0x209   : > { %v5134_v14 = vpack.c.bf16 %v4290_v53, %v4289_v41  ;;  %v4288_v44 = vmax.f32 %v4260_v55, 0.0 }
 0x20b   : > { %5148 = vst [vmem:[%s7860_s9 + $0x68] sm:$0xff] %v5134_v14   ;;  %v5129_v54 = vpack.c.bf16 %v4288_v44, %v4287_v13 }
 0x20d   : > { %5147 = vst [vmem:[%s7860_s9 + $0x60] sm:$0xff] %v5129_v54  }
 0x20e   : > { %5681 = shalt.err (!%p5678_p5)
}
 0x20f   : > { %s5682_s29 = scalar_lea.hbm %s7960_s21, 1792  ;;  %s5686_s5 = scalar_lea.hbm %s8016_s3, 3584 }
 0x210   : > { %p5683_p6 = scmp.ne.s32.totalorder %s7960_s21, %s5682_s29  ;;  %p5687_p10 = scmp.lt.s32.totalorder %s7960_s21, %s8016_s3 }
 0x211   : > { %p5688_p11 = scmp.lt.s32.totalorder %s5686_s5, %s5682_s29 }
 0x212   : > { %p5684_p7 = pnand %p5683_p6, %p5809_p4 }
 0x213   : > { %p5689_p12 = por %p5688_p11, %p5687_p10 }
 0x214   : > { %p5685_p9 = pneg %p5684_p7 }
 0x216   : > { %p5690_p13 = pnand %p5689_p12, %p5685_p9 }
 0x218   : > { %5693 = shalt.err (!%p5690_p13)
}
 0x219   : > { %s5747_s8 = smov 64   ;;  %s5748_s9 = smov 4  }
 0x21a   : > { %5569 = dma.vmem_to_hbm [thread:$0]  (%p5809_p4), %s7963_s11, 1792, %s7960_s21, %s7968_s15, %s5747_s8, %s5747_s8, %s5748_s9  }
 0x21b PF: > { %p5575_p0 = scmp.ge.s32.totalorder %s5744_s17, 2  ;;  %s4462_s10 = sand.u32 1, %s5724_s12  }
 0x21c   : > { %s4463_s18 = scalar_lea.sflag [#allocation3], %s4462_s10 }
 0x21d   : > { %p5572_p1 = pnand %p5575_p0, %p5816_p8 }
 0x21f   : > { %p5573_p2 = pneg %p5572_p1 }
 0x221   : > { %5719 = dma.done.wait (%p5573_p2), %s4463_s18, 1792  }
 0x222   : > { %5721 = vsyncadd (%p5573_p2), %s4463_s18, 4294965504  ;;  %s16_s17 = sadd.s32 1, %s5744_s17   ;;  %s8135_s12 = smov %s5728_s13 }
 0x223   : > { %p13_p3 = scmp.ge.s32.totalorder %s16_s17, 4   ;;  %s8136_s13 = smov %s5732_s14 }
 0x224   : > { %s8137_s14 = smov %s5822_s25  ;;  %s8138_s15 = smov %s5740_s16 }
 0x225   : > { %s8139_s16 = smov %s8141_s20  ;;  %15 = sbr.rel (!%p13_p3) target bundleno = 4 (0x4), region = 78 }
 0x22a   :  { %4468 = vsyncpa [#allocation3], 1 }
 0x22b   :  { %4470 = vsyncpa [#allocation3 + $0x1], 1 }

</bundles_post_ra>
